<compile_context>
chip_gen: v6e
topology: v6e:2x2x1
jax: 0.10.0
libtpu: 0.0.40
codegen_flags: <defaults>
</compile_context>

<pallas_src>
import math
from functools import partial

import jax
import jax.numpy as jnp
from jax import lax
from jax.experimental import pallas as pl
from jax.experimental.pallas import tpu as pltpu


NEG_INF = -1e30  # numerically-safe stand-in for float('-inf') in masks (f32)

_CONTRACT_LAST = (((1,), (1,)), ((), ()))  # x:(N,K) . w:(Cout,K) -> (N,Cout)


def _pick_row_tile(n, target=256):
    # full block if small (valid because it equals the array dim), else a
    # multiple-of-8 tile; partial trailing blocks are masked on write.
    return n if n <= target else target


def _pick_col_tile(c, target=512):
    # full block if small, else a lane-dense multiple of 128.
    return c if c <= target else target


def _const_spec(shape):
    nz = len(shape)
    return pl.BlockSpec(shape, lambda i: (0,) * nz)


# ----------------------------------------------------------------------------
# Pallas kernels
# ----------------------------------------------------------------------------

def _linear_kernel(x_ref, w_ref, b_ref, o_ref):
    # x: (rm, Din), w: (cn, Din), b: (1, cn) -> o: (rm, cn)
    acc = lax.dot_general(x_ref[...], w_ref[...], _CONTRACT_LAST,
                          preferred_element_type=jnp.float32)
    o_ref[...] = (acc + b_ref[...]).astype(o_ref.dtype)


def linear(x, w, b):
    """y = x @ w.T + b  (nn.Linear semantics), tiled over rows and out-cols."""
    n, d_in = x.shape
    d_out = w.shape[0]
    rm = _pick_row_tile(n)
    cn = _pick_col_tile(d_out)
    return pl.pallas_call(
        _linear_kernel,
        out_shape=jax.ShapeDtypeStruct((n, d_out), x.dtype),
        grid=(pl.cdiv(n, rm), pl.cdiv(d_out, cn)),
        in_specs=[
            pl.BlockSpec((rm, d_in), lambda i, j: (i, 0)),
            pl.BlockSpec((cn, d_in), lambda i, j: (j, 0)),
            pl.BlockSpec((1, cn), lambda i, j: (0, j)),
        ],
        out_specs=pl.BlockSpec((rm, cn), lambda i, j: (i, j)),
        compiler_params=pltpu.CompilerParams(
            dimension_semantics=("parallel", "parallel")),
    )(x, w, b.reshape(1, d_out))


def _ffn_add_ln_kernel(x_ref, w1_ref, b1_ref, w2_ref, b2_ref, g_ref, bb_ref,
                       o_ref, acc_ref, *, eps):
    # linear1 -> ReLU -> linear2 (reduction over d_ff tiles) + residual + LN.
    j = pl.program_id(1)

    @pl.when(j == 0)
    def _():
        acc_ref[...] = jnp.zeros_like(acc_ref)

    h = lax.dot_general(x_ref[...], w1_ref[...], _CONTRACT_LAST,
                        preferred_element_type=jnp.float32) + b1_ref[...]
    h = jnp.maximum(h, 0.0)
    acc_ref[...] += lax.dot_general(h, w2_ref[...], _CONTRACT_LAST,
                                    preferred_element_type=jnp.float32)

    @pl.when(j == pl.num_programs(1) - 1)
    def _():
        y = acc_ref[...] + b2_ref[...] + x_ref[...].astype(jnp.float32)
        mean = jnp.mean(y, axis=-1, keepdims=True)
        var = jnp.mean((y - mean) ** 2, axis=-1, keepdims=True)
        y = (y - mean) * lax.rsqrt(var + eps)
        o_ref[...] = (y * g_ref[...] + bb_ref[...]).astype(o_ref.dtype)


def ffn_add_layernorm(x, w1, b1, w2, b2, gamma, beta, eps=1e-5):
    n, d = x.shape
    d_ff = w1.shape[0]
    rm = _pick_row_tile(n)
    # d_ff tile must divide exactly (reduction axis); fall back to full if not.
    tf = d_ff if d_ff <= 512 else (512 if d_ff % 512 == 0 else d_ff)
    return pl.pallas_call(
        partial(_ffn_add_ln_kernel, eps=eps),
        out_shape=jax.ShapeDtypeStruct((n, d), x.dtype),
        grid=(pl.cdiv(n, rm), d_ff // tf),
        in_specs=[
            pl.BlockSpec((rm, d), lambda i, j: (i, 0)),
            pl.BlockSpec((tf, d), lambda i, j: (j, 0)),
            pl.BlockSpec((1, tf), lambda i, j: (0, j)),
            pl.BlockSpec((d, tf), lambda i, j: (0, j)),
            pl.BlockSpec((1, d), lambda i, j: (0, 0)),
            pl.BlockSpec((1, d), lambda i, j: (0, 0)),
            pl.BlockSpec((1, d), lambda i, j: (0, 0)),
        ],
        out_specs=pl.BlockSpec((rm, d), lambda i, j: (i, 0)),
        scratch_shapes=[pltpu.VMEM((rm, d), jnp.float32)],
        compiler_params=pltpu.CompilerParams(
            dimension_semantics=("parallel", "arbitrary")),
    )(x, w1, b1.reshape(1, d_ff), w2, b2.reshape(1, d), gamma.reshape(1, d),
      beta.reshape(1, d))


def _mha_sublayer_kernel(*refs, nhead, scale, causal, self_attn, has_key_bias,
                         eps):
    """Fused attention sublayer for one batch element:
       per-head QKV proj -> softmax(QK^T)V -> out-proj -> +residual -> LN."""
    if self_attn:
        (x_ref, wq_ref, bq_ref, wk_ref, bk_ref, wv_ref, bv_ref,
         wo_ref, bo_ref, g_ref, bb_ref, o_ref) = refs
        kv_ref, kb_ref = x_ref, None
    elif has_key_bias:
        (x_ref, kv_ref, kb_ref, wq_ref, bq_ref, wk_ref, bk_ref, wv_ref, bv_ref,
         wo_ref, bo_ref, g_ref, bb_ref, o_ref) = refs
    else:
        (x_ref, kv_ref, wq_ref, bq_ref, wk_ref, bk_ref, wv_ref, bv_ref,
         wo_ref, bo_ref, g_ref, bb_ref, o_ref) = refs
        kb_ref = None

    x = x_ref[0].astype(jnp.float32)        # (Sq, D) -- also the residual
    xkv = kv_ref[0].astype(jnp.float32)     # (Sk, D)
    sq = x.shape[0]
    sk = xkv.shape[0]

    bias = None
    if causal:
        row = lax.broadcasted_iota(jnp.int32, (sq, sk), 0)
        col = lax.broadcasted_iota(jnp.int32, (sq, sk), 1)
        bias = jnp.where(col > row, NEG_INF, 0.0).astype(jnp.float32)
    if kb_ref is not None:
        kb = kb_ref[0]                       # (1, Sk), broadcasts over queries
        bias = kb if bias is None else bias + kb

    acc = None
    for h in range(nhead):                   # static unroll; all heads fused
        qh = lax.dot_general(x, wq_ref[h], _CONTRACT_LAST,
                             preferred_element_type=jnp.float32) + bq_ref[h]
        kh = lax.dot_general(xkv, wk_ref[h], _CONTRACT_LAST,
                             preferred_element_type=jnp.float32) + bk_ref[h]
        vh = lax.dot_general(xkv, wv_ref[h], _CONTRACT_LAST,
                             preferred_element_type=jnp.float32) + bv_ref[h]
        s = lax.dot_general(qh, kh, _CONTRACT_LAST,
                            preferred_element_type=jnp.float32) * scale
        if bias is not None:
            s = s + bias
        s = s - jnp.max(s, axis=-1, keepdims=True)
        p = jnp.exp(s)
        p = p * pl.reciprocal(jnp.sum(p, axis=-1, keepdims=True), approx=True)
        oh = jnp.dot(p, vh, preferred_element_type=jnp.float32)     # (Sq, hd)
        # per-head slice of the out-projection, summed into a (Sq, D) slab
        contrib = lax.dot_general(oh, wo_ref[h], _CONTRACT_LAST,
                                  preferred_element_type=jnp.float32)
        acc = contrib if acc is None else acc + contrib

    y = acc + bo_ref[...] + x                # residual add
    mean = jnp.mean(y, axis=-1, keepdims=True)
    var = jnp.mean((y - mean) ** 2, axis=-1, keepdims=True)
    y = (y - mean) * lax.rsqrt(var + eps)
    o_ref[0] = (y * g_ref[...] + bb_ref[...]).astype(o_ref.dtype)


def mha_sublayer(x_q, x_kv, p, gamma, beta, nhead, *, causal, key_bias=None,
                 is_self_attn=False, eps=1e-5):
    """One fused pallas_call per attention sublayer, grid over batch."""
    b, sq, d = x_q.shape
    sk = x_kv.shape[1]
    hd = d // nhead
    scale = 1.0 / math.sqrt(hd)

    # host-side weight splitting so the kernel never lane-slices/concats heads
    in_w, in_b = p["in_w"], p["in_b"]
    wq = in_w[:d].reshape(nhead, hd, d)
    wk = in_w[d:2 * d].reshape(nhead, hd, d)
    wv = in_w[2 * d:].reshape(nhead, hd, d)
    bq = in_b[:d].reshape(nhead, 1, hd)
    bk = in_b[d:2 * d].reshape(nhead, 1, hd)
    bv = in_b[2 * d:].reshape(nhead, 1, hd)
    wo = jnp.transpose(p["out_w"].reshape(d, nhead, hd), (1, 0, 2))  # (H, D, hd)
    bo = p["out_b"].reshape(1, d)
    g = gamma.reshape(1, d)
    bb = beta.reshape(1, d)

    has_bias = (key_bias is not None) and (not is_self_attn)

    weight_args = [wq, bq, wk, bk, wv, bv, wo, bo, g, bb]
    weight_specs = [_const_spec(a.shape) for a in weight_args]

    args = [x_q]
    in_specs = [pl.BlockSpec((1, sq, d), lambda i: (i, 0, 0))]
    if not is_self_attn:
        args.append(x_kv)
        in_specs.append(pl.BlockSpec((1, sk, d), lambda i: (i, 0, 0)))
        if has_bias:
            args.append(key_bias)
            in_specs.append(pl.BlockSpec((1, 1, sk), lambda i: (i, 0, 0)))
    args += weight_args
    in_specs += weight_specs

    kernel = partial(_mha_sublayer_kernel, nhead=nhead, scale=scale,
                     causal=causal, self_attn=is_self_attn,
                     has_key_bias=has_bias, eps=eps)

    return pl.pallas_call(
        kernel,
        out_shape=jax.ShapeDtypeStruct((b, sq, d), x_q.dtype),
        grid=(b,),
        in_specs=in_specs,
        out_specs=pl.BlockSpec((1, sq, d), lambda i: (i, 0, 0)),
        compiler_params=pltpu.CompilerParams(dimension_semantics=("parallel",)),
    )(*args)


# ----------------------------------------------------------------------------
# Model glue (plain JAX around the Pallas kernels)
# ----------------------------------------------------------------------------

def decoder_layer(x, memory, p, mem_key_bias, nhead, *, causal):
    """Post-norm nn.TransformerDecoderLayer (ReLU activation, dropout=0).
       Three fused kernels: self-attn sublayer, cross-attn sublayer, FFN."""
    b, s, d = x.shape
    n = b * s

    # self-attention sublayer (QKV proj + attn + out-proj + residual + norm1)
    x = mha_sublayer(x, x, p["self_attn"], p["norm1_g"], p["norm1_b"], nhead,
                     causal=causal, is_self_attn=True)

    # cross-attention sublayer (+ residual + norm2)
    x = mha_sublayer(x, memory, p["cross_attn"], p["norm2_g"], p["norm2_b"],
                     nhead, causal=False, key_bias=mem_key_bias,
                     is_self_attn=False)

    # feed-forward sublayer (fused with residual + norm3)
    x = ffn_add_layernorm(x.reshape(n, d), p["ffn_w1"], p["ffn_b1"],
                          p["ffn_w2"], p["ffn_b2"],
                          p["norm3_g"], p["norm3_b"]).reshape(b, s, d)
    return x


def sinusoidal_pe(seq_len, d_model):
    pos = jnp.arange(seq_len, dtype=jnp.float32)[:, None]
    div = jnp.exp(
        jnp.arange(0, d_model, 2, dtype=jnp.float32) * (-math.log(10000.0) / d_model)
    )
    pe = jnp.zeros((seq_len, d_model), jnp.float32)
    pe = pe.at[:, 0::2].set(jnp.sin(pos * div))
    pe = pe.at[:, 1::2].set(jnp.cos(pos * div))
    return pe


def text_decoder_forward(params, input_ids, encoder_hidden_states,
                         memory_key_padding_mask=None, *, config, causal=True):
    """TextDecoder.forward (eval mode)."""
    nhead, d_model = config["nhead"], config["d_model"]
    b, s = input_ids.shape

    # embedding lookup (glue)
    x = jnp.take(params["embedding"], input_ids, axis=0)          # (B, S, D)
    # positional encoding (dropout is identity in eval mode)
    x = x + sinusoidal_pe(s, d_model)[None, :, :]

    # thin key-padding bias (B, 1, M); the causal mask is built inside the kernel.
    if memory_key_padding_mask is not None:  # True = padded
        mem_key_bias = jnp.where(memory_key_padding_mask[:, None, :],
                                 NEG_INF, 0.0).astype(jnp.float32)
    else:
        mem_key_bias = None
    # TODO(synk): memory_mask / attention_mask args of the PyTorch forward are not
    # plumbed through; add them as extra additive biases if needed.

    for layer_params in params["layers"]:
        x = decoder_layer(x, encoder_hidden_states, layer_params, mem_key_bias,
                          nhead, causal=causal)

    # LMHead: nn.Linear with weight tied to the embedding table (+ its own bias),
    # tiled over rows and vocab columns.
    logits = linear(x.reshape(b * s, d_model), params["embedding"],
                    params["readout_b"])
    return logits.reshape(b, s, config["vocab_size"])


# ----------------------------------------------------------------------------
# Deterministic parameter construction
# ----------------------------------------------------------------------------

def init_params(key, config):
    d, v, nl = config["d_model"], config["vocab_size"], config["num_layers"]
    d_ff = 4 * d

    def nrm(k, shape, scale=0.05):
        return (scale * jax.random.normal(k, shape)).astype(jnp.float32)

    # 12 keys per layer (2 MHA x 4 + FFN x 4) + embedding + readout bias.
    keys = iter(jax.random.split(key, 12 * nl + 4))

    def mha_params():
        return {
            "in_w": nrm(next(keys), (3 * d, d)),
            "in_b": nrm(next(keys), (3 * d,)),
            "out_w": nrm(next(keys), (d, d)),
            "out_b": nrm(next(keys), (d,)),
        }

    layers = []
    for _ in range(nl):
        layers.append({
            "self_attn": mha_params(),
            "cross_attn": mha_params(),
            "norm1_g": jnp.ones((d,), jnp.float32), "norm1_b": jnp.zeros((d,), jnp.float32),
            "norm2_g": jnp.ones((d,), jnp.float32), "norm2_b": jnp.zeros((d,), jnp.float32),
            "norm3_g": jnp.ones((d,), jnp.float32), "norm3_b": jnp.zeros((d,), jnp.float32),
            "ffn_w1": nrm(next(keys), (d_ff, d)), "ffn_b1": nrm(next(keys), (d_ff,)),
            "ffn_w2": nrm(next(keys), (d, d_ff)), "ffn_b2": nrm(next(keys), (d,)),
        })

    return {
        "embedding": nrm(next(keys), (v, d)),   # tied: embedding + LM-head weight
        "readout_b": nrm(next(keys), (v,)),
        "layers": layers,
    }


# ----------------------------------------------------------------------------
# Demo
# ----------------------------------------------------------------------------

if __name__ == "__main__":
    config = dict(d_model=32, nhead=4, num_layers=2, dropout=0.0, vocab_size=48)
    B, S, M = 2, 8, 8

    root = jax.random.PRNGKey(0)
    k_params, k_ids, k_mem = jax.random.split(root, 3)

    params = init_params(k_params, config)
    input_ids = jax.random.randint(k_ids, (B, S), 0, config["vocab_size"], dtype=jnp.int32)
    encoder_hidden_states = (
        0.1 * jax.random.normal(k_mem, (B, M, config["d_model"]))
    ).astype(jnp.float32)
    # pad the last memory position of batch 1 to exercise the key-padding path
    memory_key_padding_mask = jnp.zeros((B, M), dtype=bool).at[1, M - 1].set(True)

    fwd = jax.jit(partial(text_decoder_forward, config=config, causal=True))
    logits = fwd(params, input_ids, encoder_hidden_states, memory_key_padding_mask)
    jax.block_until_ready(logits)

    assert logits.shape == (B, S, config["vocab_size"])
    assert logits.dtype == jnp.float32
    assert bool(jnp.all(jnp.isfinite(logits)))
    print("KERNEL_OK")
</pallas_src>

<mosaic_0001>
module attributes {stable_mosaic.version = 11 : i64} {
  func.func @_mha_sublayer_kernel(%arg0: i32, %arg1: memref<1x8x32xf32, #tpu.memory_space<vmem>>, %arg2: memref<1x8x32xf32, #tpu.memory_space<vmem>>, %arg3: memref<1x1x8xf32, #tpu.memory_space<vmem>>, %arg4: memref<4x8x32xf32, #tpu.memory_space<vmem>>, %arg5: memref<4x1x8xf32, #tpu.memory_space<vmem>>, %arg6: memref<4x8x32xf32, #tpu.memory_space<vmem>>, %arg7: memref<4x1x8xf32, #tpu.memory_space<vmem>>, %arg8: memref<4x8x32xf32, #tpu.memory_space<vmem>>, %arg9: memref<4x1x8xf32, #tpu.memory_space<vmem>>, %arg10: memref<4x32x8xf32, #tpu.memory_space<vmem>>, %arg11: memref<1x32xf32, #tpu.memory_space<vmem>>, %arg12: memref<1x32xf32, #tpu.memory_space<vmem>>, %arg13: memref<1x32xf32, #tpu.memory_space<vmem>>, %arg14: memref<1x8x32xf32, #tpu.memory_space<vmem>>) attributes {dimension_semantics = [#tpu.dimension_semantics<parallel>], iteration_bounds = array<i64: 2>, scalar_prefetch = 0 : i64, scratch_operands = 0 : i64, tpu.core_type = #tpu.core_type<tc>, window_params = [{transform_indices = @transform_0, window_bounds = array<i64: 1, 8, 32>}, {transform_indices = @transform_1, window_bounds = array<i64: 1, 8, 32>}, {transform_indices = @transform_2, window_bounds = array<i64: 1, 1, 8>}, {pipeline_mode = #tpu.pipeline_mode<synchronous>, transform_indices = @transform_3, window_bounds = array<i64: 4, 8, 32>}, {pipeline_mode = #tpu.pipeline_mode<synchronous>, transform_indices = @transform_4, window_bounds = array<i64: 4, 1, 8>}, {pipeline_mode = #tpu.pipeline_mode<synchronous>, transform_indices = @transform_5, window_bounds = array<i64: 4, 8, 32>}, {pipeline_mode = #tpu.pipeline_mode<synchronous>, transform_indices = @transform_6, window_bounds = array<i64: 4, 1, 8>}, {pipeline_mode = #tpu.pipeline_mode<synchronous>, transform_indices = @transform_7, window_bounds = array<i64: 4, 8, 32>}, {pipeline_mode = #tpu.pipeline_mode<synchronous>, transform_indices = @transform_8, window_bounds = array<i64: 4, 1, 8>}, {pipeline_mode = #tpu.pipeline_mode<synchronous>, transform_indices = @transform_9, window_bounds = array<i64: 4, 32, 8>}, {pipeline_mode = #tpu.pipeline_mode<synchronous>, transform_indices = @transform_10, window_bounds = array<i64: 1, 32>}, {pipeline_mode = #tpu.pipeline_mode<synchronous>, transform_indices = @transform_11, window_bounds = array<i64: 1, 32>}, {pipeline_mode = #tpu.pipeline_mode<synchronous>, transform_indices = @transform_12, window_bounds = array<i64: 1, 32>}, {transform_indices = @transform_13, window_bounds = array<i64: 1, 8, 32>}]} {
    %c0 = arith.constant 0 : index
    %c0_0 = arith.constant 0 : index
    %c0_1 = arith.constant 0 : index
    %0 = vector.load %arg1[%c0, %c0_0, %c0_1] : memref<1x8x32xf32, #tpu.memory_space<vmem>>, vector<1x8x32xf32>
    %1 = vector.shape_cast %0 : vector<1x8x32xf32> to vector<8x32xf32>
    %c0_2 = arith.constant 0 : index
    %c0_3 = arith.constant 0 : index
    %c0_4 = arith.constant 0 : index
    %2 = vector.load %arg2[%c0_2, %c0_3, %c0_4] : memref<1x8x32xf32, #tpu.memory_space<vmem>>, vector<1x8x32xf32>
    %3 = vector.shape_cast %2 : vector<1x8x32xf32> to vector<8x32xf32>
    %c0_5 = arith.constant 0 : index
    %c0_6 = arith.constant 0 : index
    %c0_7 = arith.constant 0 : index
    %4 = vector.load %arg3[%c0_5, %c0_6, %c0_7] : memref<1x1x8xf32, #tpu.memory_space<vmem>>, vector<1x1x8xf32>
    %5 = vector.shape_cast %4 : vector<1x1x8xf32> to vector<1x8xf32>
    %c0_8 = arith.constant 0 : index
    %c0_9 = arith.constant 0 : index
    %c0_10 = arith.constant 0 : index
    %6 = vector.load %arg4[%c0_8, %c0_9, %c0_10] : memref<4x8x32xf32, #tpu.memory_space<vmem>>, vector<1x8x32xf32>
    %7 = vector.shape_cast %6 : vector<1x8x32xf32> to vector<8x32xf32>
    %cst = arith.constant dense<0.000000e+00> : vector<8x8xf32>
    %8 = tpu.matmul %1, %7, %cst {dimension_numbers = #tpu.dot_dimension_numbers<[1], [1], [0], [0], [0, 0, 1, 0], [], []>} : vector<8x32xf32>, vector<8x32xf32>, vector<8x8xf32> -> vector<8x8xf32>
    %c0_11 = arith.constant 0 : index
    %c0_12 = arith.constant 0 : index
    %c0_13 = arith.constant 0 : index
    %9 = vector.load %arg5[%c0_11, %c0_12, %c0_13] : memref<4x1x8xf32, #tpu.memory_space<vmem>>, vector<1x1x8xf32>
    %10 = vector.shape_cast %9 : vector<1x1x8xf32> to vector<1x8xf32>
    %11 = vector.broadcast %10 : vector<1x8xf32> to vector<8x8xf32>
    %12 = arith.addf %8, %11 : vector<8x8xf32>
    %c0_14 = arith.constant 0 : index
    %c0_15 = arith.constant 0 : index
    %c0_16 = arith.constant 0 : index
    %13 = vector.load %arg6[%c0_14, %c0_15, %c0_16] : memref<4x8x32xf32, #tpu.memory_space<vmem>>, vector<1x8x32xf32>
    %14 = vector.shape_cast %13 : vector<1x8x32xf32> to vector<8x32xf32>
    %cst_17 = arith.constant dense<0.000000e+00> : vector<8x8xf32>
    %15 = tpu.matmul %3, %14, %cst_17 {dimension_numbers = #tpu.dot_dimension_numbers<[1], [1], [0], [0], [0, 0, 1, 0], [], []>} : vector<8x32xf32>, vector<8x32xf32>, vector<8x8xf32> -> vector<8x8xf32>
    %c0_18 = arith.constant 0 : index
    %c0_19 = arith.constant 0 : index
    %c0_20 = arith.constant 0 : index
    %16 = vector.load %arg7[%c0_18, %c0_19, %c0_20] : memref<4x1x8xf32, #tpu.memory_space<vmem>>, vector<1x1x8xf32>
    %17 = vector.shape_cast %16 : vector<1x1x8xf32> to vector<1x8xf32>
    %18 = vector.broadcast %17 : vector<1x8xf32> to vector<8x8xf32>
    %19 = arith.addf %15, %18 : vector<8x8xf32>
    %c0_21 = arith.constant 0 : index
    %c0_22 = arith.constant 0 : index
    %c0_23 = arith.constant 0 : index
    %20 = vector.load %arg8[%c0_21, %c0_22, %c0_23] : memref<4x8x32xf32, #tpu.memory_space<vmem>>, vector<1x8x32xf32>
    %21 = vector.shape_cast %20 : vector<1x8x32xf32> to vector<8x32xf32>
    %cst_24 = arith.constant dense<0.000000e+00> : vector<8x8xf32>
    %22 = tpu.matmul %3, %21, %cst_24 {dimension_numbers = #tpu.dot_dimension_numbers<[1], [1], [0], [0], [0, 0, 1, 0], [], []>} : vector<8x32xf32>, vector<8x32xf32>, vector<8x8xf32> -> vector<8x8xf32>
    %c0_25 = arith.constant 0 : index
    %c0_26 = arith.constant 0 : index
    %c0_27 = arith.constant 0 : index
    %23 = vector.load %arg9[%c0_25, %c0_26, %c0_27] : memref<4x1x8xf32, #tpu.memory_space<vmem>>, vector<1x1x8xf32>
    %24 = vector.shape_cast %23 : vector<1x1x8xf32> to vector<1x8xf32>
    %25 = vector.broadcast %24 : vector<1x8xf32> to vector<8x8xf32>
    %26 = arith.addf %22, %25 : vector<8x8xf32>
    %cst_28 = arith.constant dense<0.000000e+00> : vector<8x8xf32>
    %27 = tpu.matmul %12, %19, %cst_28 {dimension_numbers = #tpu.dot_dimension_numbers<[1], [1], [0], [0], [0, 0, 1, 0], [], []>} : vector<8x8xf32>, vector<8x8xf32>, vector<8x8xf32> -> vector<8x8xf32>
    %cst_29 = arith.constant 0.353553385 : f32
    %28 = vector.broadcast %cst_29 : f32 to vector<8x8xf32>
    %29 = arith.mulf %27, %28 : vector<8x8xf32>
    %30 = vector.broadcast %5 : vector<1x8xf32> to vector<8x8xf32>
    %31 = arith.addf %29, %30 : vector<8x8xf32>
    %cst_30 = arith.constant dense<0xFF800000> : vector<8xf32>
    %32 = vector.multi_reduction <maximumf>, %31, %cst_30 [1] : vector<8x8xf32> to vector<8xf32>
    %33 = vector.shape_cast %32 : vector<8xf32> to vector<8x1xf32>
    %34 = vector.broadcast %33 : vector<8x1xf32> to vector<8x8xf32>
    %35 = arith.subf %31, %34 : vector<8x8xf32>
    %36 = math.exp %35 : vector<8x8xf32>
    %cst_31 = arith.constant dense<0.000000e+00> : vector<8xf32>
    %37 = vector.multi_reduction <add>, %36, %cst_31 [1] : vector<8x8xf32> to vector<8xf32>
    %38 = vector.shape_cast %37 : vector<8xf32> to vector<8x1xf32>
    %39 = tpu.reciprocal %38 {approx = true} : vector<8x1xf32> -> vector<8x1xf32>
    %40 = vector.broadcast %39 : vector<8x1xf32> to vector<8x8xf32>
    %41 = arith.mulf %36, %40 : vector<8x8xf32>
    %cst_32 = arith.constant dense<0.000000e+00> : vector<8x8xf32>
    %42 = tpu.matmul %41, %26, %cst_32 {dimension_numbers = #tpu.dot_dimension_numbers<[1], [0], [0], [1], [0, 0, 1, 1], [], []>} : vector<8x8xf32>, vector<8x8xf32>, vector<8x8xf32> -> vector<8x8xf32>
    %c0_33 = arith.constant 0 : index
    %c0_34 = arith.constant 0 : index
    %c0_35 = arith.constant 0 : index
    %43 = vector.load %arg10[%c0_33, %c0_34, %c0_35] : memref<4x32x8xf32, #tpu.memory_space<vmem>>, vector<1x32x8xf32>
    %44 = vector.shape_cast %43 : vector<1x32x8xf32> to vector<32x8xf32>
    %cst_36 = arith.constant dense<0.000000e+00> : vector<8x32xf32>
    %45 = tpu.matmul %42, %44, %cst_36 {dimension_numbers = #tpu.dot_dimension_numbers<[1], [1], [0], [0], [0, 0, 1, 0], [], []>} : vector<8x8xf32>, vector<32x8xf32>, vector<8x32xf32> -> vector<8x32xf32>
    %c1 = arith.constant 1 : index
    %c0_37 = arith.constant 0 : index
    %c0_38 = arith.constant 0 : index
    %46 = vector.load %arg4[%c1, %c0_37, %c0_38] : memref<4x8x32xf32, #tpu.memory_space<vmem>>, vector<1x8x32xf32>
    %47 = vector.shape_cast %46 : vector<1x8x32xf32> to vector<8x32xf32>
    %cst_39 = arith.constant dense<0.000000e+00> : vector<8x8xf32>
    %48 = tpu.matmul %1, %47, %cst_39 {dimension_numbers = #tpu.dot_dimension_numbers<[1], [1], [0], [0], [0, 0, 1, 0], [], []>} : vector<8x32xf32>, vector<8x32xf32>, vector<8x8xf32> -> vector<8x8xf32>
    %c1_40 = arith.constant 1 : index
    %c0_41 = arith.constant 0 : index
    %c0_42 = arith.constant 0 : index
    %49 = vector.load %arg5[%c1_40, %c0_41, %c0_42] : memref<4x1x8xf32, #tpu.memory_space<vmem>>, vector<1x1x8xf32>
    %50 = vector.shape_cast %49 : vector<1x1x8xf32> to vector<1x8xf32>
    %51 = vector.broadcast %50 : vector<1x8xf32> to vector<8x8xf32>
    %52 = arith.addf %48, %51 : vector<8x8xf32>
    %c1_43 = arith.constant 1 : index
    %c0_44 = arith.constant 0 : index
    %c0_45 = arith.constant 0 : index
    %53 = vector.load %arg6[%c1_43, %c0_44, %c0_45] : memref<4x8x32xf32, #tpu.memory_space<vmem>>, vector<1x8x32xf32>
    %54 = vector.shape_cast %53 : vector<1x8x32xf32> to vector<8x32xf32>
    %cst_46 = arith.constant dense<0.000000e+00> : vector<8x8xf32>
    %55 = tpu.matmul %3, %54, %cst_46 {dimension_numbers = #tpu.dot_dimension_numbers<[1], [1], [0], [0], [0, 0, 1, 0], [], []>} : vector<8x32xf32>, vector<8x32xf32>, vector<8x8xf32> -> vector<8x8xf32>
    %c1_47 = arith.constant 1 : index
    %c0_48 = arith.constant 0 : index
    %c0_49 = arith.constant 0 : index
    %56 = vector.load %arg7[%c1_47, %c0_48, %c0_49] : memref<4x1x8xf32, #tpu.memory_space<vmem>>, vector<1x1x8xf32>
    %57 = vector.shape_cast %56 : vector<1x1x8xf32> to vector<1x8xf32>
    %58 = vector.broadcast %57 : vector<1x8xf32> to vector<8x8xf32>
    %59 = arith.addf %55, %58 : vector<8x8xf32>
    %c1_50 = arith.constant 1 : index
    %c0_51 = arith.constant 0 : index
    %c0_52 = arith.constant 0 : index
    %60 = vector.load %arg8[%c1_50, %c0_51, %c0_52] : memref<4x8x32xf32, #tpu.memory_space<vmem>>, vector<1x8x32xf32>
    %61 = vector.shape_cast %60 : vector<1x8x32xf32> to vector<8x32xf32>
    %cst_53 = arith.constant dense<0.000000e+00> : vector<8x8xf32>
    %62 = tpu.matmul %3, %61, %cst_53 {dimension_numbers = #tpu.dot_dimension_numbers<[1], [1], [0], [0], [0, 0, 1, 0], [], []>} : vector<8x32xf32>, vector<8x32xf32>, vector<8x8xf32> -> vector<8x8xf32>
    %c1_54 = arith.constant 1 : index
    %c0_55 = arith.constant 0 : index
    %c0_56 = arith.constant 0 : index
    %63 = vector.load %arg9[%c1_54, %c0_55, %c0_56] : memref<4x1x8xf32, #tpu.memory_space<vmem>>, vector<1x1x8xf32>
    %64 = vector.shape_cast %63 : vector<1x1x8xf32> to vector<1x8xf32>
    %65 = vector.broadcast %64 : vector<1x8xf32> to vector<8x8xf32>
    %66 = arith.addf %62, %65 : vector<8x8xf32>
    %cst_57 = arith.constant dense<0.000000e+00> : vector<8x8xf32>
    %67 = tpu.matmul %52, %59, %cst_57 {dimension_numbers = #tpu.dot_dimension_numbers<[1], [1], [0], [0], [0, 0, 1, 0], [], []>} : vector<8x8xf32>, vector<8x8xf32>, vector<8x8xf32> -> vector<8x8xf32>
    %cst_58 = arith.constant 0.353553385 : f32
    %68 = vector.broadcast %cst_58 : f32 to vector<8x8xf32>
    %69 = arith.mulf %67, %68 : vector<8x8xf32>
    %70 = vector.broadcast %5 : vector<1x8xf32> to vector<8x8xf32>
    %71 = arith.addf %69, %70 : vector<8x8xf32>
    %cst_59 = arith.constant dense<0xFF800000> : vector<8xf32>
    %72 = vector.multi_reduction <maximumf>, %71, %cst_59 [1] : vector<8x8xf32> to vector<8xf32>
    %73 = vector.shape_cast %72 : vector<8xf32> to vector<8x1xf32>
    %74 = vector.broadcast %73 : vector<8x1xf32> to vector<8x8xf32>
    %75 = arith.subf %71, %74 : vector<8x8xf32>
    %76 = math.exp %75 : vector<8x8xf32>
    %cst_60 = arith.constant dense<0.000000e+00> : vector<8xf32>
    %77 = vector.multi_reduction <add>, %76, %cst_60 [1] : vector<8x8xf32> to vector<8xf32>
    %78 = vector.shape_cast %77 : vector<8xf32> to vector<8x1xf32>
    %79 = tpu.reciprocal %78 {approx = true} : vector<8x1xf32> -> vector<8x1xf32>
    %80 = vector.broadcast %79 : vector<8x1xf32> to vector<8x8xf32>
    %81 = arith.mulf %76, %80 : vector<8x8xf32>
    %cst_61 = arith.constant dense<0.000000e+00> : vector<8x8xf32>
    %82 = tpu.matmul %81, %66, %cst_61 {dimension_numbers = #tpu.dot_dimension_numbers<[1], [0], [0], [1], [0, 0, 1, 1], [], []>} : vector<8x8xf32>, vector<8x8xf32>, vector<8x8xf32> -> vector<8x8xf32>
    %c1_62 = arith.constant 1 : index
    %c0_63 = arith.constant 0 : index
    %c0_64 = arith.constant 0 : index
    %83 = vector.load %arg10[%c1_62, %c0_63, %c0_64] : memref<4x32x8xf32, #tpu.memory_space<vmem>>, vector<1x32x8xf32>
    %84 = vector.shape_cast %83 : vector<1x32x8xf32> to vector<32x8xf32>
    %cst_65 = arith.constant dense<0.000000e+00> : vector<8x32xf32>
    %85 = tpu.matmul %82, %84, %cst_65 {dimension_numbers = #tpu.dot_dimension_numbers<[1], [1], [0], [0], [0, 0, 1, 0], [], []>} : vector<8x8xf32>, vector<32x8xf32>, vector<8x32xf32> -> vector<8x32xf32>
    %86 = arith.addf %45, %85 : vector<8x32xf32>
    %c2 = arith.constant 2 : index
    %c0_66 = arith.constant 0 : index
    %c0_67 = arith.constant 0 : index
    %87 = vector.load %arg4[%c2, %c0_66, %c0_67] : memref<4x8x32xf32, #tpu.memory_space<vmem>>, vector<1x8x32xf32>
    %88 = vector.shape_cast %87 : vector<1x8x32xf32> to vector<8x32xf32>
    %cst_68 = arith.constant dense<0.000000e+00> : vector<8x8xf32>
    %89 = tpu.matmul %1, %88, %cst_68 {dimension_numbers = #tpu.dot_dimension_numbers<[1], [1], [0], [0], [0, 0, 1, 0], [], []>} : vector<8x32xf32>, vector<8x32xf32>, vector<8x8xf32> -> vector<8x8xf32>
    %c2_69 = arith.constant 2 : index
    %c0_70 = arith.constant 0 : index
    %c0_71 = arith.constant 0 : index
    %90 = vector.load %arg5[%c2_69, %c0_70, %c0_71] : memref<4x1x8xf32, #tpu.memory_space<vmem>>, vector<1x1x8xf32>
    %91 = vector.shape_cast %90 : vector<1x1x8xf32> to vector<1x8xf32>
    %92 = vector.broadcast %91 : vector<1x8xf32> to vector<8x8xf32>
    %93 = arith.addf %89, %92 : vector<8x8xf32>
    %c2_72 = arith.constant 2 : index
    %c0_73 = arith.constant 0 : index
    %c0_74 = arith.constant 0 : index
    %94 = vector.load %arg6[%c2_72, %c0_73, %c0_74] : memref<4x8x32xf32, #tpu.memory_space<vmem>>, vector<1x8x32xf32>
    %95 = vector.shape_cast %94 : vector<1x8x32xf32> to vector<8x32xf32>
    %cst_75 = arith.constant dense<0.000000e+00> : vector<8x8xf32>
    %96 = tpu.matmul %3, %95, %cst_75 {dimension_numbers = #tpu.dot_dimension_numbers<[1], [1], [0], [0], [0, 0, 1, 0], [], []>} : vector<8x32xf32>, vector<8x32xf32>, vector<8x8xf32> -> vector<8x8xf32>
    %c2_76 = arith.constant 2 : index
    %c0_77 = arith.constant 0 : index
    %c0_78 = arith.constant 0 : index
    %97 = vector.load %arg7[%c2_76, %c0_77, %c0_78] : memref<4x1x8xf32, #tpu.memory_space<vmem>>, vector<1x1x8xf32>
    %98 = vector.shape_cast %97 : vector<1x1x8xf32> to vector<1x8xf32>
    %99 = vector.broadcast %98 : vector<1x8xf32> to vector<8x8xf32>
    %100 = arith.addf %96, %99 : vector<8x8xf32>
    %c2_79 = arith.constant 2 : index
    %c0_80 = arith.constant 0 : index
    %c0_81 = arith.constant 0 : index
    %101 = vector.load %arg8[%c2_79, %c0_80, %c0_81] : memref<4x8x32xf32, #tpu.memory_space<vmem>>, vector<1x8x32xf32>
    %102 = vector.shape_cast %101 : vector<1x8x32xf32> to vector<8x32xf32>
    %cst_82 = arith.constant dense<0.000000e+00> : vector<8x8xf32>
    %103 = tpu.matmul %3, %102, %cst_82 {dimension_numbers = #tpu.dot_dimension_numbers<[1], [1], [0], [0], [0, 0, 1, 0], [], []>} : vector<8x32xf32>, vector<8x32xf32>, vector<8x8xf32> -> vector<8x8xf32>
    %c2_83 = arith.constant 2 : index
    %c0_84 = arith.constant 0 : index
    %c0_85 = arith.constant 0 : index
    %104 = vector.load %arg9[%c2_83, %c0_84, %c0_85] : memref<4x1x8xf32, #tpu.memory_space<vmem>>, vector<1x1x8xf32>
    %105 = vector.shape_cast %104 : vector<1x1x8xf32> to vector<1x8xf32>
    %106 = vector.broadcast %105 : vector<1x8xf32> to vector<8x8xf32>
    %107 = arith.addf %103, %106 : vector<8x8xf32>
    %cst_86 = arith.constant dense<0.000000e+00> : vector<8x8xf32>
    %108 = tpu.matmul %93, %100, %cst_86 {dimension_numbers = #tpu.dot_dimension_numbers<[1], [1], [0], [0], [0, 0, 1, 0], [], []>} : vector<8x8xf32>, vector<8x8xf32>, vector<8x8xf32> -> vector<8x8xf32>
    %cst_87 = arith.constant 0.353553385 : f32
    %109 = vector.broadcast %cst_87 : f32 to vector<8x8xf32>
    %110 = arith.mulf %108, %109 : vector<8x8xf32>
    %111 = vector.broadcast %5 : vector<1x8xf32> to vector<8x8xf32>
    %112 = arith.addf %110, %111 : vector<8x8xf32>
    %cst_88 = arith.constant dense<0xFF800000> : vector<8xf32>
    %113 = vector.multi_reduction <maximumf>, %112, %cst_88 [1] : vector<8x8xf32> to vector<8xf32>
    %114 = vector.shape_cast %113 : vector<8xf32> to vector<8x1xf32>
    %115 = vector.broadcast %114 : vector<8x1xf32> to vector<8x8xf32>
    %116 = arith.subf %112, %115 : vector<8x8xf32>
    %117 = math.exp %116 : vector<8x8xf32>
    %cst_89 = arith.constant dense<0.000000e+00> : vector<8xf32>
    %118 = vector.multi_reduction <add>, %117, %cst_89 [1] : vector<8x8xf32> to vector<8xf32>
    %119 = vector.shape_cast %118 : vector<8xf32> to vector<8x1xf32>
    %120 = tpu.reciprocal %119 {approx = true} : vector<8x1xf32> -> vector<8x1xf32>
    %121 = vector.broadcast %120 : vector<8x1xf32> to vector<8x8xf32>
    %122 = arith.mulf %117, %121 : vector<8x8xf32>
    %cst_90 = arith.constant dense<0.000000e+00> : vector<8x8xf32>
    %123 = tpu.matmul %122, %107, %cst_90 {dimension_numbers = #tpu.dot_dimension_numbers<[1], [0], [0], [1], [0, 0, 1, 1], [], []>} : vector<8x8xf32>, vector<8x8xf32>, vector<8x8xf32> -> vector<8x8xf32>
    %c2_91 = arith.constant 2 : index
    %c0_92 = arith.constant 0 : index
    %c0_93 = arith.constant 0 : index
    %124 = vector.load %arg10[%c2_91, %c0_92, %c0_93] : memref<4x32x8xf32, #tpu.memory_space<vmem>>, vector<1x32x8xf32>
    %125 = vector.shape_cast %124 : vector<1x32x8xf32> to vector<32x8xf32>
    %cst_94 = arith.constant dense<0.000000e+00> : vector<8x32xf32>
    %126 = tpu.matmul %123, %125, %cst_94 {dimension_numbers = #tpu.dot_dimension_numbers<[1], [1], [0], [0], [0, 0, 1, 0], [], []>} : vector<8x8xf32>, vector<32x8xf32>, vector<8x32xf32> -> vector<8x32xf32>
    %127 = arith.addf %86, %126 : vector<8x32xf32>
    %c3 = arith.constant 3 : index
    %c0_95 = arith.constant 0 : index
    %c0_96 = arith.constant 0 : index
    %128 = vector.load %arg4[%c3, %c0_95, %c0_96] : memref<4x8x32xf32, #tpu.memory_space<vmem>>, vector<1x8x32xf32>
    %129 = vector.shape_cast %128 : vector<1x8x32xf32> to vector<8x32xf32>
    %cst_97 = arith.constant dense<0.000000e+00> : vector<8x8xf32>
    %130 = tpu.matmul %1, %129, %cst_97 {dimension_numbers = #tpu.dot_dimension_numbers<[1], [1], [0], [0], [0, 0, 1, 0], [], []>} : vector<8x32xf32>, vector<8x32xf32>, vector<8x8xf32> -> vector<8x8xf32>
    %c3_98 = arith.constant 3 : index
    %c0_99 = arith.constant 0 : index
    %c0_100 = arith.constant 0 : index
    %131 = vector.load %arg5[%c3_98, %c0_99, %c0_100] : memref<4x1x8xf32, #tpu.memory_space<vmem>>, vector<1x1x8xf32>
    %132 = vector.shape_cast %131 : vector<1x1x8xf32> to vector<1x8xf32>
    %133 = vector.broadcast %132 : vector<1x8xf32> to vector<8x8xf32>
    %134 = arith.addf %130, %133 : vector<8x8xf32>
    %c3_101 = arith.constant 3 : index
    %c0_102 = arith.constant 0 : index
    %c0_103 = arith.constant 0 : index
    %135 = vector.load %arg6[%c3_101, %c0_102, %c0_103] : memref<4x8x32xf32, #tpu.memory_space<vmem>>, vector<1x8x32xf32>
    %136 = vector.shape_cast %135 : vector<1x8x32xf32> to vector<8x32xf32>
    %cst_104 = arith.constant dense<0.000000e+00> : vector<8x8xf32>
    %137 = tpu.matmul %3, %136, %cst_104 {dimension_numbers = #tpu.dot_dimension_numbers<[1], [1], [0], [0], [0, 0, 1, 0], [], []>} : vector<8x32xf32>, vector<8x32xf32>, vector<8x8xf32> -> vector<8x8xf32>
    %c3_105 = arith.constant 3 : index
    %c0_106 = arith.constant 0 : index
    %c0_107 = arith.constant 0 : index
    %138 = vector.load %arg7[%c3_105, %c0_106, %c0_107] : memref<4x1x8xf32, #tpu.memory_space<vmem>>, vector<1x1x8xf32>
    %139 = vector.shape_cast %138 : vector<1x1x8xf32> to vector<1x8xf32>
    %140 = vector.broadcast %139 : vector<1x8xf32> to vector<8x8xf32>
    %141 = arith.addf %137, %140 : vector<8x8xf32>
    %c3_108 = arith.constant 3 : index
    %c0_109 = arith.constant 0 : index
    %c0_110 = arith.constant 0 : index
    %142 = vector.load %arg8[%c3_108, %c0_109, %c0_110] : memref<4x8x32xf32, #tpu.memory_space<vmem>>, vector<1x8x32xf32>
    %143 = vector.shape_cast %142 : vector<1x8x32xf32> to vector<8x32xf32>
    %cst_111 = arith.constant dense<0.000000e+00> : vector<8x8xf32>
    %144 = tpu.matmul %3, %143, %cst_111 {dimension_numbers = #tpu.dot_dimension_numbers<[1], [1], [0], [0], [0, 0, 1, 0], [], []>} : vector<8x32xf32>, vector<8x32xf32>, vector<8x8xf32> -> vector<8x8xf32>
    %c3_112 = arith.constant 3 : index
    %c0_113 = arith.constant 0 : index
    %c0_114 = arith.constant 0 : index
    %145 = vector.load %arg9[%c3_112, %c0_113, %c0_114] : memref<4x1x8xf32, #tpu.memory_space<vmem>>, vector<1x1x8xf32>
    %146 = vector.shape_cast %145 : vector<1x1x8xf32> to vector<1x8xf32>
    %147 = vector.broadcast %146 : vector<1x8xf32> to vector<8x8xf32>
    %148 = arith.addf %144, %147 : vector<8x8xf32>
    %cst_115 = arith.constant dense<0.000000e+00> : vector<8x8xf32>
    %149 = tpu.matmul %134, %141, %cst_115 {dimension_numbers = #tpu.dot_dimension_numbers<[1], [1], [0], [0], [0, 0, 1, 0], [], []>} : vector<8x8xf32>, vector<8x8xf32>, vector<8x8xf32> -> vector<8x8xf32>
    %cst_116 = arith.constant 0.353553385 : f32
    %150 = vector.broadcast %cst_116 : f32 to vector<8x8xf32>
    %151 = arith.mulf %149, %150 : vector<8x8xf32>
    %152 = vector.broadcast %5 : vector<1x8xf32> to vector<8x8xf32>
    %153 = arith.addf %151, %152 : vector<8x8xf32>
    %cst_117 = arith.constant dense<0xFF800000> : vector<8xf32>
    %154 = vector.multi_reduction <maximumf>, %153, %cst_117 [1] : vector<8x8xf32> to vector<8xf32>
    %155 = vector.shape_cast %154 : vector<8xf32> to vector<8x1xf32>
    %156 = vector.broadcast %155 : vector<8x1xf32> to vector<8x8xf32>
    %157 = arith.subf %153, %156 : vector<8x8xf32>
    %158 = math.exp %157 : vector<8x8xf32>
    %cst_118 = arith.constant dense<0.000000e+00> : vector<8xf32>
    %159 = vector.multi_reduction <add>, %158, %cst_118 [1] : vector<8x8xf32> to vector<8xf32>
    %160 = vector.shape_cast %159 : vector<8xf32> to vector<8x1xf32>
    %161 = tpu.reciprocal %160 {approx = true} : vector<8x1xf32> -> vector<8x1xf32>
    %162 = vector.broadcast %161 : vector<8x1xf32> to vector<8x8xf32>
    %163 = arith.mulf %158, %162 : vector<8x8xf32>
    %cst_119 = arith.constant dense<0.000000e+00> : vector<8x8xf32>
    %164 = tpu.matmul %163, %148, %cst_119 {dimension_numbers = #tpu.dot_dimension_numbers<[1], [0], [0], [1], [0, 0, 1, 1], [], []>} : vector<8x8xf32>, vector<8x8xf32>, vector<8x8xf32> -> vector<8x8xf32>
    %c3_120 = arith.constant 3 : index
    %c0_121 = arith.constant 0 : index
    %c0_122 = arith.constant 0 : index
    %165 = vector.load %arg10[%c3_120, %c0_121, %c0_122] : memref<4x32x8xf32, #tpu.memory_space<vmem>>, vector<1x32x8xf32>
    %166 = vector.shape_cast %165 : vector<1x32x8xf32> to vector<32x8xf32>
    %cst_123 = arith.constant dense<0.000000e+00> : vector<8x32xf32>
    %167 = tpu.matmul %164, %166, %cst_123 {dimension_numbers = #tpu.dot_dimension_numbers<[1], [1], [0], [0], [0, 0, 1, 0], [], []>} : vector<8x8xf32>, vector<32x8xf32>, vector<8x32xf32> -> vector<8x32xf32>
    %168 = arith.addf %127, %167 : vector<8x32xf32>
    %c0_124 = arith.constant 0 : index
    %c0_125 = arith.constant 0 : index
    %169 = vector.load %arg11[%c0_124, %c0_125] : memref<1x32xf32, #tpu.memory_space<vmem>>, vector<1x32xf32>
    %170 = vector.broadcast %169 : vector<1x32xf32> to vector<8x32xf32>
    %171 = arith.addf %168, %170 : vector<8x32xf32>
    %172 = arith.addf %171, %1 : vector<8x32xf32>
    %cst_126 = arith.constant dense<0.000000e+00> : vector<8xf32>
    %173 = vector.multi_reduction <add>, %172, %cst_126 [1] : vector<8x32xf32> to vector<8xf32>
    %174 = vector.shape_cast %173 : vector<8xf32> to vector<8x1xf32>
    %cst_127 = arith.constant 3.200000e+01 : f32
    %175 = vector.broadcast %cst_127 : f32 to vector<8x1xf32>
    %176 = arith.divf %174, %175 : vector<8x1xf32>
    %177 = vector.broadcast %176 : vector<8x1xf32> to vector<8x32xf32>
    %178 = arith.subf %172, %177 : vector<8x32xf32>
    %179 = arith.mulf %178, %178 : vector<8x32xf32>
    %cst_128 = arith.constant dense<0.000000e+00> : vector<8xf32>
    %180 = vector.multi_reduction <add>, %179, %cst_128 [1] : vector<8x32xf32> to vector<8xf32>
    %181 = vector.shape_cast %180 : vector<8xf32> to vector<8x1xf32>
    %cst_129 = arith.constant 3.200000e+01 : f32
    %182 = vector.broadcast %cst_129 : f32 to vector<8x1xf32>
    %183 = arith.divf %181, %182 : vector<8x1xf32>
    %184 = vector.broadcast %176 : vector<8x1xf32> to vector<8x32xf32>
    %185 = arith.subf %172, %184 : vector<8x32xf32>
    %cst_130 = arith.constant 9.99999974E-6 : f32
    %186 = vector.broadcast %cst_130 : f32 to vector<8x1xf32>
    %187 = arith.addf %183, %186 : vector<8x1xf32>
    %188 = math.rsqrt %187 : vector<8x1xf32>
    %189 = vector.broadcast %188 : vector<8x1xf32> to vector<8x32xf32>
    %190 = arith.mulf %185, %189 : vector<8x32xf32>
    %c0_131 = arith.constant 0 : index
    %c0_132 = arith.constant 0 : index
    %191 = vector.load %arg12[%c0_131, %c0_132] : memref<1x32xf32, #tpu.memory_space<vmem>>, vector<1x32xf32>
    %192 = vector.broadcast %191 : vector<1x32xf32> to vector<8x32xf32>
    %193 = arith.mulf %190, %192 : vector<8x32xf32>
    %c0_133 = arith.constant 0 : index
    %c0_134 = arith.constant 0 : index
    %194 = vector.load %arg13[%c0_133, %c0_134] : memref<1x32xf32, #tpu.memory_space<vmem>>, vector<1x32xf32>
    %195 = vector.broadcast %194 : vector<1x32xf32> to vector<8x32xf32>
    %196 = arith.addf %193, %195 : vector<8x32xf32>
    %c0_135 = arith.constant 0 : index
    %c0_136 = arith.constant 0 : index
    %c0_137 = arith.constant 0 : index
    %197 = vector.load %arg14[%c0_135, %c0_136, %c0_137] : memref<1x8x32xf32, #tpu.memory_space<vmem>>, vector<1x8x32xf32>
    %198 = vector.shape_cast %197 : vector<1x8x32xf32> to vector<8x32xf32>
    %199 = vector.shape_cast %196 : vector<8x32xf32> to vector<1x8x32xf32>
    tpu.vector_store %arg14[%c0_135, %c0_136, %c0_137], %199 {strides = array<i32>} : memref<1x8x32xf32, #tpu.memory_space<vmem>>, vector<1x8x32xf32>,
    return
  }
  func.func @transform_0(%arg0: i32) -> (i32, i32, i32) {
    %c0_i32 = arith.constant 0 : i32
    %c0_i32_0 = arith.constant 0 : i32
    %c0_i32_1 = arith.constant 0 : i32
    return %arg0, %c0_i32, %c0_i32_0 : i32, i32, i32
  }
  func.func @transform_1(%arg0: i32) -> (i32, i32, i32) {
    %c0_i32 = arith.constant 0 : i32
    %c0_i32_0 = arith.constant 0 : i32
    %c0_i32_1 = arith.constant 0 : i32
    return %arg0, %c0_i32, %c0_i32_0 : i32, i32, i32
  }
  func.func @transform_2(%arg0: i32) -> (i32, i32, i32) {
    %c0_i32 = arith.constant 0 : i32
    %c0_i32_0 = arith.constant 0 : i32
    %c0_i32_1 = arith.constant 0 : i32
    return %arg0, %c0_i32, %c0_i32_0 : i32, i32, i32
  }
  func.func @transform_3(%arg0: i32) -> (i32, i32, i32) {
    %c0_i32 = arith.constant 0 : i32
    %c0_i32_0 = arith.constant 0 : i32
    %c0_i32_1 = arith.constant 0 : i32
    %c0_i32_2 = arith.constant 0 : i32
    return %c0_i32, %c0_i32_0, %c0_i32_1 : i32, i32, i32
  }
  func.func @transform_4(%arg0: i32) -> (i32, i32, i32) {
    %c0_i32 = arith.constant 0 : i32
    %c0_i32_0 = arith.constant 0 : i32
    %c0_i32_1 = arith.constant 0 : i32
    %c0_i32_2 = arith.constant 0 : i32
    return %c0_i32, %c0_i32_0, %c0_i32_1 : i32, i32, i32
  }
  func.func @transform_5(%arg0: i32) -> (i32, i32, i32) {
    %c0_i32 = arith.constant 0 : i32
    %c0_i32_0 = arith.constant 0 : i32
    %c0_i32_1 = arith.constant 0 : i32
    %c0_i32_2 = arith.constant 0 : i32
    return %c0_i32, %c0_i32_0, %c0_i32_1 : i32, i32, i32
  }
  func.func @transform_6(%arg0: i32) -> (i32, i32, i32) {
    %c0_i32 = arith.constant 0 : i32
    %c0_i32_0 = arith.constant 0 : i32
    %c0_i32_1 = arith.constant 0 : i32
    %c0_i32_2 = arith.constant 0 : i32
    return %c0_i32, %c0_i32_0, %c0_i32_1 : i32, i32, i32
  }
  func.func @transform_7(%arg0: i32) -> (i32, i32, i32) {
    %c0_i32 = arith.constant 0 : i32
    %c0_i32_0 = arith.constant 0 : i32
    %c0_i32_1 = arith.constant 0 : i32
    %c0_i32_2 = arith.constant 0 : i32
    return %c0_i32, %c0_i32_0, %c0_i32_1 : i32, i32, i32
  }
  func.func @transform_8(%arg0: i32) -> (i32, i32, i32) {
    %c0_i32 = arith.constant 0 : i32
    %c0_i32_0 = arith.constant 0 : i32
    %c0_i32_1 = arith.constant 0 : i32
    %c0_i32_2 = arith.constant 0 : i32
    return %c0_i32, %c0_i32_0, %c0_i32_1 : i32, i32, i32
  }
  func.func @transform_9(%arg0: i32) -> (i32, i32, i32) {
    %c0_i32 = arith.constant 0 : i32
    %c0_i32_0 = arith.constant 0 : i32
    %c0_i32_1 = arith.constant 0 : i32
    %c0_i32_2 = arith.constant 0 : i32
    return %c0_i32, %c0_i32_0, %c0_i32_1 : i32, i32, i32
  }
  func.func @transform_10(%arg0: i32) -> (i32, i32) {
    %c0_i32 = arith.constant 0 : i32
    %c0_i32_0 = arith.constant 0 : i32
    %c0_i32_1 = arith.constant 0 : i32
    return %c0_i32, %c0_i32_0 : i32, i32
  }
  func.func @transform_11(%arg0: i32) -> (i32, i32) {
    %c0_i32 = arith.constant 0 : i32
    %c0_i32_0 = arith.constant 0 : i32
    %c0_i32_1 = arith.constant 0 : i32
    return %c0_i32, %c0_i32_0 : i32, i32
  }
  func.func @transform_12(%arg0: i32) -> (i32, i32) {
    %c0_i32 = arith.constant 0 : i32
    %c0_i32_0 = arith.constant 0 : i32
    %c0_i32_1 = arith.constant 0 : i32
    return %c0_i32, %c0_i32_0 : i32, i32
  }
  func.func @transform_13(%arg0: i32) -> (i32, i32, i32) {
    %c0_i32 = arith.constant 0 : i32
    %c0_i32_0 = arith.constant 0 : i32
    %c0_i32_1 = arith.constant 0 : i32
    return %arg0, %c0_i32, %c0_i32_0 : i32, i32, i32
  }
}

module attributes {stable_mosaic.version = 11 : i64} {
  func.func @_mha_sublayer_kernel(%arg0: i32, %arg1: memref<1x8x32xf32, #tpu.memory_space<vmem>>, %arg2: memref<4x8x32xf32, #tpu.memory_space<vmem>>, %arg3: memref<4x1x8xf32, #tpu.memory_space<vmem>>, %arg4: memref<4x8x32xf32, #tpu.memory_space<vmem>>, %arg5: memref<4x1x8xf32, #tpu.memory_space<vmem>>, %arg6: memref<4x8x32xf32, #tpu.memory_space<vmem>>, %arg7: memref<4x1x8xf32, #tpu.memory_space<vmem>>, %arg8: memref<4x32x8xf32, #tpu.memory_space<vmem>>, %arg9: memref<1x32xf32, #tpu.memory_space<vmem>>, %arg10: memref<1x32xf32, #tpu.memory_space<vmem>>, %arg11: memref<1x32xf32, #tpu.memory_space<vmem>>, %arg12: memref<1x8x32xf32, #tpu.memory_space<vmem>>) attributes {dimension_semantics = [#tpu.dimension_semantics<parallel>], iteration_bounds = array<i64: 2>, scalar_prefetch = 0 : i64, scratch_operands = 0 : i64, tpu.core_type = #tpu.core_type<tc>, window_params = [{transform_indices = @transform_0, window_bounds = array<i64: 1, 8, 32>}, {pipeline_mode = #tpu.pipeline_mode<synchronous>, transform_indices = @transform_1, window_bounds = array<i64: 4, 8, 32>}, {pipeline_mode = #tpu.pipeline_mode<synchronous>, transform_indices = @transform_2, window_bounds = array<i64: 4, 1, 8>}, {pipeline_mode = #tpu.pipeline_mode<synchronous>, transform_indices = @transform_3, window_bounds = array<i64: 4, 8, 32>}, {pipeline_mode = #tpu.pipeline_mode<synchronous>, transform_indices = @transform_4, window_bounds = array<i64: 4, 1, 8>}, {pipeline_mode = #tpu.pipeline_mode<synchronous>, transform_indices = @transform_5, window_bounds = array<i64: 4, 8, 32>}, {pipeline_mode = #tpu.pipeline_mode<synchronous>, transform_indices = @transform_6, window_bounds = array<i64: 4, 1, 8>}, {pipeline_mode = #tpu.pipeline_mode<synchronous>, transform_indices = @transform_7, window_bounds = array<i64: 4, 32, 8>}, {pipeline_mode = #tpu.pipeline_mode<synchronous>, transform_indices = @transform_8, window_bounds = array<i64: 1, 32>}, {pipeline_mode = #tpu.pipeline_mode<synchronous>, transform_indices = @transform_9, window_bounds = array<i64: 1, 32>}, {pipeline_mode = #tpu.pipeline_mode<synchronous>, transform_indices = @transform_10, window_bounds = array<i64: 1, 32>}, {transform_indices = @transform_11, window_bounds = array<i64: 1, 8, 32>}]} {
    %c0 = arith.constant 0 : index
    %c0_0 = arith.constant 0 : index
    %c0_1 = arith.constant 0 : index
    %0 = vector.load %arg1[%c0, %c0_0, %c0_1] : memref<1x8x32xf32, #tpu.memory_space<vmem>>, vector<1x8x32xf32>
    %1 = vector.shape_cast %0 : vector<1x8x32xf32> to vector<8x32xf32>
    %c0_2 = arith.constant 0 : index
    %c0_3 = arith.constant 0 : index
    %c0_4 = arith.constant 0 : index
    %2 = vector.load %arg1[%c0_2, %c0_3, %c0_4] : memref<1x8x32xf32, #tpu.memory_space<vmem>>, vector<1x8x32xf32>
    %3 = vector.shape_cast %2 : vector<1x8x32xf32> to vector<8x32xf32>
    %4 = tpu.iota {dimensions = array<i32: 0>} : vector<8x8xi32>
    %5 = tpu.iota {dimensions = array<i32: 1>} : vector<8x8xi32>
    %6 = arith.cmpi sgt, %5, %4 : vector<8x8xi32>
    %cst = arith.constant -1.000000e+30 : f32
    %cst_5 = arith.constant 0.000000e+00 : f32
    %7 = vector.broadcast %cst : f32 to vector<8x8xf32>
    %8 = vector.broadcast %cst_5 : f32 to vector<8x8xf32>
    %9 = arith.select %6, %7, %8 : vector<8x8xi1>, vector<8x8xf32>
    %c0_6 = arith.constant 0 : index
    %c0_7 = arith.constant 0 : index
    %c0_8 = arith.constant 0 : index
    %10 = vector.load %arg2[%c0_6, %c0_7, %c0_8] : memref<4x8x32xf32, #tpu.memory_space<vmem>>, vector<1x8x32xf32>
    %11 = vector.shape_cast %10 : vector<1x8x32xf32> to vector<8x32xf32>
    %cst_9 = arith.constant dense<0.000000e+00> : vector<8x8xf32>
    %12 = tpu.matmul %1, %11, %cst_9 {dimension_numbers = #tpu.dot_dimension_numbers<[1], [1], [0], [0], [0, 0, 1, 0], [], []>} : vector<8x32xf32>, vector<8x32xf32>, vector<8x8xf32> -> vector<8x8xf32>
    %c0_10 = arith.constant 0 : index
    %c0_11 = arith.constant 0 : index
    %c0_12 = arith.constant 0 : index
    %13 = vector.load %arg3[%c0_10, %c0_11, %c0_12] : memref<4x1x8xf32, #tpu.memory_space<vmem>>, vector<1x1x8xf32>
    %14 = vector.shape_cast %13 : vector<1x1x8xf32> to vector<1x8xf32>
    %15 = vector.broadcast %14 : vector<1x8xf32> to vector<8x8xf32>
    %16 = arith.addf %12, %15 : vector<8x8xf32>
    %c0_13 = arith.constant 0 : index
    %c0_14 = arith.constant 0 : index
    %c0_15 = arith.constant 0 : index
    %17 = vector.load %arg4[%c0_13, %c0_14, %c0_15] : memref<4x8x32xf32, #tpu.memory_space<vmem>>, vector<1x8x32xf32>
    %18 = vector.shape_cast %17 : vector<1x8x32xf32> to vector<8x32xf32>
    %cst_16 = arith.constant dense<0.000000e+00> : vector<8x8xf32>
    %19 = tpu.matmul %3, %18, %cst_16 {dimension_numbers = #tpu.dot_dimension_numbers<[1], [1], [0], [0], [0, 0, 1, 0], [], []>} : vector<8x32xf32>, vector<8x32xf32>, vector<8x8xf32> -> vector<8x8xf32>
    %c0_17 = arith.constant 0 : index
    %c0_18 = arith.constant 0 : index
    %c0_19 = arith.constant 0 : index
    %20 = vector.load %arg5[%c0_17, %c0_18, %c0_19] : memref<4x1x8xf32, #tpu.memory_space<vmem>>, vector<1x1x8xf32>
    %21 = vector.shape_cast %20 : vector<1x1x8xf32> to vector<1x8xf32>
    %22 = vector.broadcast %21 : vector<1x8xf32> to vector<8x8xf32>
    %23 = arith.addf %19, %22 : vector<8x8xf32>
    %c0_20 = arith.constant 0 : index
    %c0_21 = arith.constant 0 : index
    %c0_22 = arith.constant 0 : index
    %24 = vector.load %arg6[%c0_20, %c0_21, %c0_22] : memref<4x8x32xf32, #tpu.memory_space<vmem>>, vector<1x8x32xf32>
    %25 = vector.shape_cast %24 : vector<1x8x32xf32> to vector<8x32xf32>
    %cst_23 = arith.constant dense<0.000000e+00> : vector<8x8xf32>
    %26 = tpu.matmul %3, %25, %cst_23 {dimension_numbers = #tpu.dot_dimension_numbers<[1], [1], [0], [0], [0, 0, 1, 0], [], []>} : vector<8x32xf32>, vector<8x32xf32>, vector<8x8xf32> -> vector<8x8xf32>
    %c0_24 = arith.constant 0 : index
    %c0_25 = arith.constant 0 : index
    %c0_26 = arith.constant 0 : index
    %27 = vector.load %arg7[%c0_24, %c0_25, %c0_26] : memref<4x1x8xf32, #tpu.memory_space<vmem>>, vector<1x1x8xf32>
    %28 = vector.shape_cast %27 : vector<1x1x8xf32> to vector<1x8xf32>
    %29 = vector.broadcast %28 : vector<1x8xf32> to vector<8x8xf32>
    %30 = arith.addf %26, %29 : vector<8x8xf32>
    %cst_27 = arith.constant dense<0.000000e+00> : vector<8x8xf32>
    %31 = tpu.matmul %16, %23, %cst_27 {dimension_numbers = #tpu.dot_dimension_numbers<[1], [1], [0], [0], [0, 0, 1, 0], [], []>} : vector<8x8xf32>, vector<8x8xf32>, vector<8x8xf32> -> vector<8x8xf32>
    %cst_28 = arith.constant 0.353553385 : f32
    %32 = vector.broadcast %cst_28 : f32 to vector<8x8xf32>
    %33 = arith.mulf %31, %32 : vector<8x8xf32>
    %34 = arith.addf %33, %9 : vector<8x8xf32>
    %cst_29 = arith.constant dense<0xFF800000> : vector<8xf32>
    %35 = vector.multi_reduction <maximumf>, %34, %cst_29 [1] : vector<8x8xf32> to vector<8xf32>
    %36 = vector.shape_cast %35 : vector<8xf32> to vector<8x1xf32>
    %37 = vector.broadcast %36 : vector<8x1xf32> to vector<8x8xf32>
    %38 = arith.subf %34, %37 : vector<8x8xf32>
    %39 = math.exp %38 : vector<8x8xf32>
    %cst_30 = arith.constant dense<0.000000e+00> : vector<8xf32>
    %40 = vector.multi_reduction <add>, %39, %cst_30 [1] : vector<8x8xf32> to vector<8xf32>
    %41 = vector.shape_cast %40 : vector<8xf32> to vector<8x1xf32>
    %42 = tpu.reciprocal %41 {approx = true} : vector<8x1xf32> -> vector<8x1xf32>
    %43 = vector.broadcast %42 : vector<8x1xf32> to vector<8x8xf32>
    %44 = arith.mulf %39, %43 : vector<8x8xf32>
    %cst_31 = arith.constant dense<0.000000e+00> : vector<8x8xf32>
    %45 = tpu.matmul %44, %30, %cst_31 {dimension_numbers = #tpu.dot_dimension_numbers<[1], [0], [0], [1], [0, 0, 1, 1], [], []>} : vector<8x8xf32>, vector<8x8xf32>, vector<8x8xf32> -> vector<8x8xf32>
    %c0_32 = arith.constant 0 : index
    %c0_33 = arith.constant 0 : index
    %c0_34 = arith.constant 0 : index
    %46 = vector.load %arg8[%c0_32, %c0_33, %c0_34] : memref<4x32x8xf32, #tpu.memory_space<vmem>>, vector<1x32x8xf32>
    %47 = vector.shape_cast %46 : vector<1x32x8xf32> to vector<32x8xf32>
    %cst_35 = arith.constant dense<0.000000e+00> : vector<8x32xf32>
    %48 = tpu.matmul %45, %47, %cst_35 {dimension_numbers = #tpu.dot_dimension_numbers<[1], [1], [0], [0], [0, 0, 1, 0], [], []>} : vector<8x8xf32>, vector<32x8xf32>, vector<8x32xf32> -> vector<8x32xf32>
    %c1 = arith.constant 1 : index
    %c0_36 = arith.constant 0 : index
    %c0_37 = arith.constant 0 : index
    %49 = vector.load %arg2[%c1, %c0_36, %c0_37] : memref<4x8x32xf32, #tpu.memory_space<vmem>>, vector<1x8x32xf32>
    %50 = vector.shape_cast %49 : vector<1x8x32xf32> to vector<8x32xf32>
    %cst_38 = arith.constant dense<0.000000e+00> : vector<8x8xf32>
    %51 = tpu.matmul %1, %50, %cst_38 {dimension_numbers = #tpu.dot_dimension_numbers<[1], [1], [0], [0], [0, 0, 1, 0], [], []>} : vector<8x32xf32>, vector<8x32xf32>, vector<8x8xf32> -> vector<8x8xf32>
    %c1_39 = arith.constant 1 : index
    %c0_40 = arith.constant 0 : index
    %c0_41 = arith.constant 0 : index
    %52 = vector.load %arg3[%c1_39, %c0_40, %c0_41] : memref<4x1x8xf32, #tpu.memory_space<vmem>>, vector<1x1x8xf32>
    %53 = vector.shape_cast %52 : vector<1x1x8xf32> to vector<1x8xf32>
    %54 = vector.broadcast %53 : vector<1x8xf32> to vector<8x8xf32>
    %55 = arith.addf %51, %54 : vector<8x8xf32>
    %c1_42 = arith.constant 1 : index
    %c0_43 = arith.constant 0 : index
    %c0_44 = arith.constant 0 : index
    %56 = vector.load %arg4[%c1_42, %c0_43, %c0_44] : memref<4x8x32xf32, #tpu.memory_space<vmem>>, vector<1x8x32xf32>
    %57 = vector.shape_cast %56 : vector<1x8x32xf32> to vector<8x32xf32>
    %cst_45 = arith.constant dense<0.000000e+00> : vector<8x8xf32>
    %58 = tpu.matmul %3, %57, %cst_45 {dimension_numbers = #tpu.dot_dimension_numbers<[1], [1], [0], [0], [0, 0, 1, 0], [], []>} : vector<8x32xf32>, vector<8x32xf32>, vector<8x8xf32> -> vector<8x8xf32>
    %c1_46 = arith.constant 1 : index
    %c0_47 = arith.constant 0 : index
    %c0_48 = arith.constant 0 : index
    %59 = vector.load %arg5[%c1_46, %c0_47, %c0_48] : memref<4x1x8xf32, #tpu.memory_space<vmem>>, vector<1x1x8xf32>
    %60 = vector.shape_cast %59 : vector<1x1x8xf32> to vector<1x8xf32>
    %61 = vector.broadcast %60 : vector<1x8xf32> to vector<8x8xf32>
    %62 = arith.addf %58, %61 : vector<8x8xf32>
    %c1_49 = arith.constant 1 : index
    %c0_50 = arith.constant 0 : index
    %c0_51 = arith.constant 0 : index
    %63 = vector.load %arg6[%c1_49, %c0_50, %c0_51] : memref<4x8x32xf32, #tpu.memory_space<vmem>>, vector<1x8x32xf32>
    %64 = vector.shape_cast %63 : vector<1x8x32xf32> to vector<8x32xf32>
    %cst_52 = arith.constant dense<0.000000e+00> : vector<8x8xf32>
    %65 = tpu.matmul %3, %64, %cst_52 {dimension_numbers = #tpu.dot_dimension_numbers<[1], [1], [0], [0], [0, 0, 1, 0], [], []>} : vector<8x32xf32>, vector<8x32xf32>, vector<8x8xf32> -> vector<8x8xf32>
    %c1_53 = arith.constant 1 : index
    %c0_54 = arith.constant 0 : index
    %c0_55 = arith.constant 0 : index
    %66 = vector.load %arg7[%c1_53, %c0_54, %c0_55] : memref<4x1x8xf32, #tpu.memory_space<vmem>>, vector<1x1x8xf32>
    %67 = vector.shape_cast %66 : vector<1x1x8xf32> to vector<1x8xf32>
    %68 = vector.broadcast %67 : vector<1x8xf32> to vector<8x8xf32>
    %69 = arith.addf %65, %68 : vector<8x8xf32>
    %cst_56 = arith.constant dense<0.000000e+00> : vector<8x8xf32>
    %70 = tpu.matmul %55, %62, %cst_56 {dimension_numbers = #tpu.dot_dimension_numbers<[1], [1], [0], [0], [0, 0, 1, 0], [], []>} : vector<8x8xf32>, vector<8x8xf32>, vector<8x8xf32> -> vector<8x8xf32>
    %cst_57 = arith.constant 0.353553385 : f32
    %71 = vector.broadcast %cst_57 : f32 to vector<8x8xf32>
    %72 = arith.mulf %70, %71 : vector<8x8xf32>
    %73 = arith.addf %72, %9 : vector<8x8xf32>
    %cst_58 = arith.constant dense<0xFF800000> : vector<8xf32>
    %74 = vector.multi_reduction <maximumf>, %73, %cst_58 [1] : vector<8x8xf32> to vector<8xf32>
    %75 = vector.shape_cast %74 : vector<8xf32> to vector<8x1xf32>
    %76 = vector.broadcast %75 : vector<8x1xf32> to vector<8x8xf32>
    %77 = arith.subf %73, %76 : vector<8x8xf32>
    %78 = math.exp %77 : vector<8x8xf32>
    %cst_59 = arith.constant dense<0.000000e+00> : vector<8xf32>
    %79 = vector.multi_reduction <add>, %78, %cst_59 [1] : vector<8x8xf32> to vector<8xf32>
    %80 = vector.shape_cast %79 : vector<8xf32> to vector<8x1xf32>
    %81 = tpu.reciprocal %80 {approx = true} : vector<8x1xf32> -> vector<8x1xf32>
    %82 = vector.broadcast %81 : vector<8x1xf32> to vector<8x8xf32>
    %83 = arith.mulf %78, %82 : vector<8x8xf32>
    %cst_60 = arith.constant dense<0.000000e+00> : vector<8x8xf32>
    %84 = tpu.matmul %83, %69, %cst_60 {dimension_numbers = #tpu.dot_dimension_numbers<[1], [0], [0], [1], [0, 0, 1, 1], [], []>} : vector<8x8xf32>, vector<8x8xf32>, vector<8x8xf32> -> vector<8x8xf32>
    %c1_61 = arith.constant 1 : index
    %c0_62 = arith.constant 0 : index
    %c0_63 = arith.constant 0 : index
    %85 = vector.load %arg8[%c1_61, %c0_62, %c0_63] : memref<4x32x8xf32, #tpu.memory_space<vmem>>, vector<1x32x8xf32>
    %86 = vector.shape_cast %85 : vector<1x32x8xf32> to vector<32x8xf32>
    %cst_64 = arith.constant dense<0.000000e+00> : vector<8x32xf32>
    %87 = tpu.matmul %84, %86, %cst_64 {dimension_numbers = #tpu.dot_dimension_numbers<[1], [1], [0], [0], [0, 0, 1, 0], [], []>} : vector<8x8xf32>, vector<32x8xf32>, vector<8x32xf32> -> vector<8x32xf32>
    %88 = arith.addf %48, %87 : vector<8x32xf32>
    %c2 = arith.constant 2 : index
    %c0_65 = arith.constant 0 : index
    %c0_66 = arith.constant 0 : index
    %89 = vector.load %arg2[%c2, %c0_65, %c0_66] : memref<4x8x32xf32, #tpu.memory_space<vmem>>, vector<1x8x32xf32>
    %90 = vector.shape_cast %89 : vector<1x8x32xf32> to vector<8x32xf32>
    %cst_67 = arith.constant dense<0.000000e+00> : vector<8x8xf32>
    %91 = tpu.matmul %1, %90, %cst_67 {dimension_numbers = #tpu.dot_dimension_numbers<[1], [1], [0], [0], [0, 0, 1, 0], [], []>} : vector<8x32xf32>, vector<8x32xf32>, vector<8x8xf32> -> vector<8x8xf32>
    %c2_68 = arith.constant 2 : index
    %c0_69 = arith.constant 0 : index
    %c0_70 = arith.constant 0 : index
    %92 = vector.load %arg3[%c2_68, %c0_69, %c0_70] : memref<4x1x8xf32, #tpu.memory_space<vmem>>, vector<1x1x8xf32>
    %93 = vector.shape_cast %92 : vector<1x1x8xf32> to vector<1x8xf32>
    %94 = vector.broadcast %93 : vector<1x8xf32> to vector<8x8xf32>
    %95 = arith.addf %91, %94 : vector<8x8xf32>
    %c2_71 = arith.constant 2 : index
    %c0_72 = arith.constant 0 : index
    %c0_73 = arith.constant 0 : index
    %96 = vector.load %arg4[%c2_71, %c0_72, %c0_73] : memref<4x8x32xf32, #tpu.memory_space<vmem>>, vector<1x8x32xf32>
    %97 = vector.shape_cast %96 : vector<1x8x32xf32> to vector<8x32xf32>
    %cst_74 = arith.constant dense<0.000000e+00> : vector<8x8xf32>
    %98 = tpu.matmul %3, %97, %cst_74 {dimension_numbers = #tpu.dot_dimension_numbers<[1], [1], [0], [0], [0, 0, 1, 0], [], []>} : vector<8x32xf32>, vector<8x32xf32>, vector<8x8xf32> -> vector<8x8xf32>
    %c2_75 = arith.constant 2 : index
    %c0_76 = arith.constant 0 : index
    %c0_77 = arith.constant 0 : index
    %99 = vector.load %arg5[%c2_75, %c0_76, %c0_77] : memref<4x1x8xf32, #tpu.memory_space<vmem>>, vector<1x1x8xf32>
    %100 = vector.shape_cast %99 : vector<1x1x8xf32> to vector<1x8xf32>
    %101 = vector.broadcast %100 : vector<1x8xf32> to vector<8x8xf32>
    %102 = arith.addf %98, %101 : vector<8x8xf32>
    %c2_78 = arith.constant 2 : index
    %c0_79 = arith.constant 0 : index
    %c0_80 = arith.constant 0 : index
    %103 = vector.load %arg6[%c2_78, %c0_79, %c0_80] : memref<4x8x32xf32, #tpu.memory_space<vmem>>, vector<1x8x32xf32>
    %104 = vector.shape_cast %103 : vector<1x8x32xf32> to vector<8x32xf32>
    %cst_81 = arith.constant dense<0.000000e+00> : vector<8x8xf32>
    %105 = tpu.matmul %3, %104, %cst_81 {dimension_numbers = #tpu.dot_dimension_numbers<[1], [1], [0], [0], [0, 0, 1, 0], [], []>} : vector<8x32xf32>, vector<8x32xf32>, vector<8x8xf32> -> vector<8x8xf32>
    %c2_82 = arith.constant 2 : index
    %c0_83 = arith.constant 0 : index
    %c0_84 = arith.constant 0 : index
    %106 = vector.load %arg7[%c2_82, %c0_83, %c0_84] : memref<4x1x8xf32, #tpu.memory_space<vmem>>, vector<1x1x8xf32>
    %107 = vector.shape_cast %106 : vector<1x1x8xf32> to vector<1x8xf32>
    %108 = vector.broadcast %107 : vector<1x8xf32> to vector<8x8xf32>
    %109 = arith.addf %105, %108 : vector<8x8xf32>
    %cst_85 = arith.constant dense<0.000000e+00> : vector<8x8xf32>
    %110 = tpu.matmul %95, %102, %cst_85 {dimension_numbers = #tpu.dot_dimension_numbers<[1], [1], [0], [0], [0, 0, 1, 0], [], []>} : vector<8x8xf32>, vector<8x8xf32>, vector<8x8xf32> -> vector<8x8xf32>
    %cst_86 = arith.constant 0.353553385 : f32
    %111 = vector.broadcast %cst_86 : f32 to vector<8x8xf32>
    %112 = arith.mulf %110, %111 : vector<8x8xf32>
    %113 = arith.addf %112, %9 : vector<8x8xf32>
    %cst_87 = arith.constant dense<0xFF800000> : vector<8xf32>
    %114 = vector.multi_reduction <maximumf>, %113, %cst_87 [1] : vector<8x8xf32> to vector<8xf32>
    %115 = vector.shape_cast %114 : vector<8xf32> to vector<8x1xf32>
    %116 = vector.broadcast %115 : vector<8x1xf32> to vector<8x8xf32>
    %117 = arith.subf %113, %116 : vector<8x8xf32>
    %118 = math.exp %117 : vector<8x8xf32>
    %cst_88 = arith.constant dense<0.000000e+00> : vector<8xf32>
    %119 = vector.multi_reduction <add>, %118, %cst_88 [1] : vector<8x8xf32> to vector<8xf32>
    %120 = vector.shape_cast %119 : vector<8xf32> to vector<8x1xf32>
    %121 = tpu.reciprocal %120 {approx = true} : vector<8x1xf32> -> vector<8x1xf32>
    %122 = vector.broadcast %121 : vector<8x1xf32> to vector<8x8xf32>
    %123 = arith.mulf %118, %122 : vector<8x8xf32>
    %cst_89 = arith.constant dense<0.000000e+00> : vector<8x8xf32>
    %124 = tpu.matmul %123, %109, %cst_89 {dimension_numbers = #tpu.dot_dimension_numbers<[1], [0], [0], [1], [0, 0, 1, 1], [], []>} : vector<8x8xf32>, vector<8x8xf32>, vector<8x8xf32> -> vector<8x8xf32>
    %c2_90 = arith.constant 2 : index
    %c0_91 = arith.constant 0 : index
    %c0_92 = arith.constant 0 : index
    %125 = vector.load %arg8[%c2_90, %c0_91, %c0_92] : memref<4x32x8xf32, #tpu.memory_space<vmem>>, vector<1x32x8xf32>
    %126 = vector.shape_cast %125 : vector<1x32x8xf32> to vector<32x8xf32>
    %cst_93 = arith.constant dense<0.000000e+00> : vector<8x32xf32>
    %127 = tpu.matmul %124, %126, %cst_93 {dimension_numbers = #tpu.dot_dimension_numbers<[1], [1], [0], [0], [0, 0, 1, 0], [], []>} : vector<8x8xf32>, vector<32x8xf32>, vector<8x32xf32> -> vector<8x32xf32>
    %128 = arith.addf %88, %127 : vector<8x32xf32>
    %c3 = arith.constant 3 : index
    %c0_94 = arith.constant 0 : index
    %c0_95 = arith.constant 0 : index
    %129 = vector.load %arg2[%c3, %c0_94, %c0_95] : memref<4x8x32xf32, #tpu.memory_space<vmem>>, vector<1x8x32xf32>
    %130 = vector.shape_cast %129 : vector<1x8x32xf32> to vector<8x32xf32>
    %cst_96 = arith.constant dense<0.000000e+00> : vector<8x8xf32>
    %131 = tpu.matmul %1, %130, %cst_96 {dimension_numbers = #tpu.dot_dimension_numbers<[1], [1], [0], [0], [0, 0, 1, 0], [], []>} : vector<8x32xf32>, vector<8x32xf32>, vector<8x8xf32> -> vector<8x8xf32>
    %c3_97 = arith.constant 3 : index
    %c0_98 = arith.constant 0 : index
    %c0_99 = arith.constant 0 : index
    %132 = vector.load %arg3[%c3_97, %c0_98, %c0_99] : memref<4x1x8xf32, #tpu.memory_space<vmem>>, vector<1x1x8xf32>
    %133 = vector.shape_cast %132 : vector<1x1x8xf32> to vector<1x8xf32>
    %134 = vector.broadcast %133 : vector<1x8xf32> to vector<8x8xf32>
    %135 = arith.addf %131, %134 : vector<8x8xf32>
    %c3_100 = arith.constant 3 : index
    %c0_101 = arith.constant 0 : index
    %c0_102 = arith.constant 0 : index
    %136 = vector.load %arg4[%c3_100, %c0_101, %c0_102] : memref<4x8x32xf32, #tpu.memory_space<vmem>>, vector<1x8x32xf32>
    %137 = vector.shape_cast %136 : vector<1x8x32xf32> to vector<8x32xf32>
    %cst_103 = arith.constant dense<0.000000e+00> : vector<8x8xf32>
    %138 = tpu.matmul %3, %137, %cst_103 {dimension_numbers = #tpu.dot_dimension_numbers<[1], [1], [0], [0], [0, 0, 1, 0], [], []>} : vector<8x32xf32>, vector<8x32xf32>, vector<8x8xf32> -> vector<8x8xf32>
    %c3_104 = arith.constant 3 : index
    %c0_105 = arith.constant 0 : index
    %c0_106 = arith.constant 0 : index
    %139 = vector.load %arg5[%c3_104, %c0_105, %c0_106] : memref<4x1x8xf32, #tpu.memory_space<vmem>>, vector<1x1x8xf32>
    %140 = vector.shape_cast %139 : vector<1x1x8xf32> to vector<1x8xf32>
    %141 = vector.broadcast %140 : vector<1x8xf32> to vector<8x8xf32>
    %142 = arith.addf %138, %141 : vector<8x8xf32>
    %c3_107 = arith.constant 3 : index
    %c0_108 = arith.constant 0 : index
    %c0_109 = arith.constant 0 : index
    %143 = vector.load %arg6[%c3_107, %c0_108, %c0_109] : memref<4x8x32xf32, #tpu.memory_space<vmem>>, vector<1x8x32xf32>
    %144 = vector.shape_cast %143 : vector<1x8x32xf32> to vector<8x32xf32>
    %cst_110 = arith.constant dense<0.000000e+00> : vector<8x8xf32>
    %145 = tpu.matmul %3, %144, %cst_110 {dimension_numbers = #tpu.dot_dimension_numbers<[1], [1], [0], [0], [0, 0, 1, 0], [], []>} : vector<8x32xf32>, vector<8x32xf32>, vector<8x8xf32> -> vector<8x8xf32>
    %c3_111 = arith.constant 3 : index
    %c0_112 = arith.constant 0 : index
    %c0_113 = arith.constant 0 : index
    %146 = vector.load %arg7[%c3_111, %c0_112, %c0_113] : memref<4x1x8xf32, #tpu.memory_space<vmem>>, vector<1x1x8xf32>
    %147 = vector.shape_cast %146 : vector<1x1x8xf32> to vector<1x8xf32>
    %148 = vector.broadcast %147 : vector<1x8xf32> to vector<8x8xf32>
    %149 = arith.addf %145, %148 : vector<8x8xf32>
    %cst_114 = arith.constant dense<0.000000e+00> : vector<8x8xf32>
    %150 = tpu.matmul %135, %142, %cst_114 {dimension_numbers = #tpu.dot_dimension_numbers<[1], [1], [0], [0], [0, 0, 1, 0], [], []>} : vector<8x8xf32>, vector<8x8xf32>, vector<8x8xf32> -> vector<8x8xf32>
    %cst_115 = arith.constant 0.353553385 : f32
    %151 = vector.broadcast %cst_115 : f32 to vector<8x8xf32>
    %152 = arith.mulf %150, %151 : vector<8x8xf32>
    %153 = arith.addf %152, %9 : vector<8x8xf32>
    %cst_116 = arith.constant dense<0xFF800000> : vector<8xf32>
    %154 = vector.multi_reduction <maximumf>, %153, %cst_116 [1] : vector<8x8xf32> to vector<8xf32>
    %155 = vector.shape_cast %154 : vector<8xf32> to vector<8x1xf32>
    %156 = vector.broadcast %155 : vector<8x1xf32> to vector<8x8xf32>
    %157 = arith.subf %153, %156 : vector<8x8xf32>
    %158 = math.exp %157 : vector<8x8xf32>
    %cst_117 = arith.constant dense<0.000000e+00> : vector<8xf32>
    %159 = vector.multi_reduction <add>, %158, %cst_117 [1] : vector<8x8xf32> to vector<8xf32>
    %160 = vector.shape_cast %159 : vector<8xf32> to vector<8x1xf32>
    %161 = tpu.reciprocal %160 {approx = true} : vector<8x1xf32> -> vector<8x1xf32>
    %162 = vector.broadcast %161 : vector<8x1xf32> to vector<8x8xf32>
    %163 = arith.mulf %158, %162 : vector<8x8xf32>
    %cst_118 = arith.constant dense<0.000000e+00> : vector<8x8xf32>
    %164 = tpu.matmul %163, %149, %cst_118 {dimension_numbers = #tpu.dot_dimension_numbers<[1], [0], [0], [1], [0, 0, 1, 1], [], []>} : vector<8x8xf32>, vector<8x8xf32>, vector<8x8xf32> -> vector<8x8xf32>
    %c3_119 = arith.constant 3 : index
    %c0_120 = arith.constant 0 : index
    %c0_121 = arith.constant 0 : index
    %165 = vector.load %arg8[%c3_119, %c0_120, %c0_121] : memref<4x32x8xf32, #tpu.memory_space<vmem>>, vector<1x32x8xf32>
    %166 = vector.shape_cast %165 : vector<1x32x8xf32> to vector<32x8xf32>
    %cst_122 = arith.constant dense<0.000000e+00> : vector<8x32xf32>
    %167 = tpu.matmul %164, %166, %cst_122 {dimension_numbers = #tpu.dot_dimension_numbers<[1], [1], [0], [0], [0, 0, 1, 0], [], []>} : vector<8x8xf32>, vector<32x8xf32>, vector<8x32xf32> -> vector<8x32xf32>
    %168 = arith.addf %128, %167 : vector<8x32xf32>
    %c0_123 = arith.constant 0 : index
    %c0_124 = arith.constant 0 : index
    %169 = vector.load %arg9[%c0_123, %c0_124] : memref<1x32xf32, #tpu.memory_space<vmem>>, vector<1x32xf32>
    %170 = vector.broadcast %169 : vector<1x32xf32> to vector<8x32xf32>
    %171 = arith.addf %168, %170 : vector<8x32xf32>
    %172 = arith.addf %171, %1 : vector<8x32xf32>
    %cst_125 = arith.constant dense<0.000000e+00> : vector<8xf32>
    %173 = vector.multi_reduction <add>, %172, %cst_125 [1] : vector<8x32xf32> to vector<8xf32>
    %174 = vector.shape_cast %173 : vector<8xf32> to vector<8x1xf32>
    %cst_126 = arith.constant 3.200000e+01 : f32
    %175 = vector.broadcast %cst_126 : f32 to vector<8x1xf32>
    %176 = arith.divf %174, %175 : vector<8x1xf32>
    %177 = vector.broadcast %176 : vector<8x1xf32> to vector<8x32xf32>
    %178 = arith.subf %172, %177 : vector<8x32xf32>
    %179 = arith.mulf %178, %178 : vector<8x32xf32>
    %cst_127 = arith.constant dense<0.000000e+00> : vector<8xf32>
    %180 = vector.multi_reduction <add>, %179, %cst_127 [1] : vector<8x32xf32> to vector<8xf32>
    %181 = vector.shape_cast %180 : vector<8xf32> to vector<8x1xf32>
    %cst_128 = arith.constant 3.200000e+01 : f32
    %182 = vector.broadcast %cst_128 : f32 to vector<8x1xf32>
    %183 = arith.divf %181, %182 : vector<8x1xf32>
    %184 = vector.broadcast %176 : vector<8x1xf32> to vector<8x32xf32>
    %185 = arith.subf %172, %184 : vector<8x32xf32>
    %cst_129 = arith.constant 9.99999974E-6 : f32
    %186 = vector.broadcast %cst_129 : f32 to vector<8x1xf32>
    %187 = arith.addf %183, %186 : vector<8x1xf32>
    %188 = math.rsqrt %187 : vector<8x1xf32>
    %189 = vector.broadcast %188 : vector<8x1xf32> to vector<8x32xf32>
    %190 = arith.mulf %185, %189 : vector<8x32xf32>
    %c0_130 = arith.constant 0 : index
    %c0_131 = arith.constant 0 : index
    %191 = vector.load %arg10[%c0_130, %c0_131] : memref<1x32xf32, #tpu.memory_space<vmem>>, vector<1x32xf32>
    %192 = vector.broadcast %191 : vector<1x32xf32> to vector<8x32xf32>
    %193 = arith.mulf %190, %192 : vector<8x32xf32>
    %c0_132 = arith.constant 0 : index
    %c0_133 = arith.constant 0 : index
    %194 = vector.load %arg11[%c0_132, %c0_133] : memref<1x32xf32, #tpu.memory_space<vmem>>, vector<1x32xf32>
    %195 = vector.broadcast %194 : vector<1x32xf32> to vector<8x32xf32>
    %196 = arith.addf %193, %195 : vector<8x32xf32>
    %c0_134 = arith.constant 0 : index
    %c0_135 = arith.constant 0 : index
    %c0_136 = arith.constant 0 : index
    %197 = vector.load %arg12[%c0_134, %c0_135, %c0_136] : memref<1x8x32xf32, #tpu.memory_space<vmem>>, vector<1x8x32xf32>
    %198 = vector.shape_cast %197 : vector<1x8x32xf32> to vector<8x32xf32>
    %199 = vector.shape_cast %196 : vector<8x32xf32> to vector<1x8x32xf32>
    tpu.vector_store %arg12[%c0_134, %c0_135, %c0_136], %199 {strides = array<i32>} : memref<1x8x32xf32, #tpu.memory_space<vmem>>, vector<1x8x32xf32>,
    return
  }
  func.func @transform_0(%arg0: i32) -> (i32, i32, i32) {
    %c0_i32 = arith.constant 0 : i32
    %c0_i32_0 = arith.constant 0 : i32
    %c0_i32_1 = arith.constant 0 : i32
    return %arg0, %c0_i32, %c0_i32_0 : i32, i32, i32
  }
  func.func @transform_1(%arg0: i32) -> (i32, i32, i32) {
    %c0_i32 = arith.constant 0 : i32
    %c0_i32_0 = arith.constant 0 : i32
    %c0_i32_1 = arith.constant 0 : i32
    %c0_i32_2 = arith.constant 0 : i32
    return %c0_i32, %c0_i32_0, %c0_i32_1 : i32, i32, i32
  }
  func.func @transform_2(%arg0: i32) -> (i32, i32, i32) {
    %c0_i32 = arith.constant 0 : i32
    %c0_i32_0 = arith.constant 0 : i32
    %c0_i32_1 = arith.constant 0 : i32
    %c0_i32_2 = arith.constant 0 : i32
    return %c0_i32, %c0_i32_0, %c0_i32_1 : i32, i32, i32
  }
  func.func @transform_3(%arg0: i32) -> (i32, i32, i32) {
    %c0_i32 = arith.constant 0 : i32
    %c0_i32_0 = arith.constant 0 : i32
    %c0_i32_1 = arith.constant 0 : i32
    %c0_i32_2 = arith.constant 0 : i32
    return %c0_i32, %c0_i32_0, %c0_i32_1 : i32, i32, i32
  }
  func.func @transform_4(%arg0: i32) -> (i32, i32, i32) {
    %c0_i32 = arith.constant 0 : i32
    %c0_i32_0 = arith.constant 0 : i32
    %c0_i32_1 = arith.constant 0 : i32
    %c0_i32_2 = arith.constant 0 : i32
    return %c0_i32, %c0_i32_0, %c0_i32_1 : i32, i32, i32
  }
  func.func @transform_5(%arg0: i32) -> (i32, i32, i32) {
    %c0_i32 = arith.constant 0 : i32
    %c0_i32_0 = arith.constant 0 : i32
    %c0_i32_1 = arith.constant 0 : i32
    %c0_i32_2 = arith.constant 0 : i32
    return %c0_i32, %c0_i32_0, %c0_i32_1 : i32, i32, i32
  }
  func.func @transform_6(%arg0: i32) -> (i32, i32, i32) {
    %c0_i32 = arith.constant 0 : i32
    %c0_i32_0 = arith.constant 0 : i32
    %c0_i32_1 = arith.constant 0 : i32
    %c0_i32_2 = arith.constant 0 : i32
    return %c0_i32, %c0_i32_0, %c0_i32_1 : i32, i32, i32
  }
  func.func @transform_7(%arg0: i32) -> (i32, i32, i32) {
    %c0_i32 = arith.constant 0 : i32
    %c0_i32_0 = arith.constant 0 : i32
    %c0_i32_1 = arith.constant 0 : i32
    %c0_i32_2 = arith.constant 0 : i32
    return %c0_i32, %c0_i32_0, %c0_i32_1 : i32, i32, i32
  }
  func.func @transform_8(%arg0: i32) -> (i32, i32) {
    %c0_i32 = arith.constant 0 : i32
    %c0_i32_0 = arith.constant 0 : i32
    %c0_i32_1 = arith.constant 0 : i32
    return %c0_i32, %c0_i32_0 : i32, i32
  }
  func.func @transform_9(%arg0: i32) -> (i32, i32) {
    %c0_i32 = arith.constant 0 : i32
    %c0_i32_0 = arith.constant 0 : i32
    %c0_i32_1 = arith.constant 0 : i32
    return %c0_i32, %c0_i32_0 : i32, i32
  }
  func.func @transform_10(%arg0: i32) -> (i32, i32) {
    %c0_i32 = arith.constant 0 : i32
    %c0_i32_0 = arith.constant 0 : i32
    %c0_i32_1 = arith.constant 0 : i32
    return %c0_i32, %c0_i32_0 : i32, i32
  }
  func.func @transform_11(%arg0: i32) -> (i32, i32, i32) {
    %c0_i32 = arith.constant 0 : i32
    %c0_i32_0 = arith.constant 0 : i32
    %c0_i32_1 = arith.constant 0 : i32
    return %arg0, %c0_i32, %c0_i32_0 : i32, i32, i32
  }
}

module attributes {stable_mosaic.version = 11 : i64} {
  func.func @_ffn_add_ln_kernel(%arg0: i32, %arg1: i32, %arg2: memref<16x32xf32, #tpu.memory_space<vmem>>, %arg3: memref<128x32xf32, #tpu.memory_space<vmem>>, %arg4: memref<1x128xf32, #tpu.memory_space<vmem>>, %arg5: memref<32x128xf32, #tpu.memory_space<vmem>>, %arg6: memref<1x32xf32, #tpu.memory_space<vmem>>, %arg7: memref<1x32xf32, #tpu.memory_space<vmem>>, %arg8: memref<1x32xf32, #tpu.memory_space<vmem>>, %arg9: memref<16x32xf32, #tpu.memory_space<vmem>>, %arg10: memref<16x32xf32, #tpu.memory_space<vmem>>) attributes {dimension_semantics = [#tpu.dimension_semantics<parallel>, #tpu.dimension_semantics<arbitrary>], iteration_bounds = array<i64: 1, 1>, scalar_prefetch = 0 : i64, scratch_operands = 1 : i64, tpu.core_type = #tpu.core_type<tc>, window_params = [{transform_indices = @transform_0, window_bounds = array<i64: 16, 32>}, {transform_indices = @transform_1, window_bounds = array<i64: 128, 32>}, {transform_indices = @transform_2, window_bounds = array<i64: 1, 128>}, {transform_indices = @transform_3, window_bounds = array<i64: 32, 128>}, {pipeline_mode = #tpu.pipeline_mode<synchronous>, transform_indices = @transform_4, window_bounds = array<i64: 1, 32>}, {pipeline_mode = #tpu.pipeline_mode<synchronous>, transform_indices = @transform_5, window_bounds = array<i64: 1, 32>}, {pipeline_mode = #tpu.pipeline_mode<synchronous>, transform_indices = @transform_6, window_bounds = array<i64: 1, 32>}, {transform_indices = @transform_7, window_bounds = array<i64: 16, 32>}]} {
    %c0_i32 = arith.constant 0 : i32
    %0 = arith.cmpi eq, %arg1, %c0_i32 : i32
    %1 = arith.extui %0 : i1 to i32
    %c0_i32_0 = arith.constant 0 : i32
    %2 = arith.cmpi ne, %1, %c0_i32_0 : i32
    scf.if %2 {
      %cst_16 = arith.constant 0.000000e+00 : f32
      %19 = vector.broadcast %cst_16 : f32 to vector<16x32xf32>
      %c0_17 = arith.constant 0 : index
      %c0_18 = arith.constant 0 : index
      %20 = vector.load %arg10[%c0_17, %c0_18] : memref<16x32xf32, #tpu.memory_space<vmem>>, vector<16x32xf32>
      tpu.vector_store %arg10[%c0_17, %c0_18], %19 {strides = array<i32>} : memref<16x32xf32, #tpu.memory_space<vmem>>, vector<16x32xf32>,
    } else {
    }
    %c0 = arith.constant 0 : index
    %c0_1 = arith.constant 0 : index
    %3 = vector.load %arg2[%c0, %c0_1] : memref<16x32xf32, #tpu.memory_space<vmem>>, vector<16x32xf32>
    %c0_2 = arith.constant 0 : index
    %c0_3 = arith.constant 0 : index
    %4 = vector.load %arg3[%c0_2, %c0_3] : memref<128x32xf32, #tpu.memory_space<vmem>>, vector<128x32xf32>
    %cst = arith.constant dense<0.000000e+00> : vector<16x128xf32>
    %5 = tpu.matmul %3, %4, %cst {dimension_numbers = #tpu.dot_dimension_numbers<[1], [1], [0], [0], [0, 0, 1, 0], [], []>} : vector<16x32xf32>, vector<128x32xf32>, vector<16x128xf32> -> vector<16x128xf32>
    %c0_4 = arith.constant 0 : index
    %c0_5 = arith.constant 0 : index
    %6 = vector.load %arg4[%c0_4, %c0_5] : memref<1x128xf32, #tpu.memory_space<vmem>>, vector<1x128xf32>
    %7 = vector.broadcast %6 : vector<1x128xf32> to vector<16x128xf32>
    %8 = arith.addf %5, %7 : vector<16x128xf32>
    %cst_6 = arith.constant 0.000000e+00 : f32
    %9 = vector.broadcast %cst_6 : f32 to vector<16x128xf32>
    %10 = arith.maximumf %8, %9 : vector<16x128xf32>
    %c0_7 = arith.constant 0 : index
    %c0_8 = arith.constant 0 : index
    %11 = vector.load %arg10[%c0_7, %c0_8] : memref<16x32xf32, #tpu.memory_space<vmem>>, vector<16x32xf32>
    %c0_9 = arith.constant 0 : index
    %c0_10 = arith.constant 0 : index
    %12 = vector.load %arg5[%c0_9, %c0_10] : memref<32x128xf32, #tpu.memory_space<vmem>>, vector<32x128xf32>
    %cst_11 = arith.constant dense<0.000000e+00> : vector<16x32xf32>
    %13 = tpu.matmul %10, %12, %cst_11 {dimension_numbers = #tpu.dot_dimension_numbers<[1], [1], [0], [0], [0, 0, 1, 0], [], []>} : vector<16x128xf32>, vector<32x128xf32>, vector<16x32xf32> -> vector<16x32xf32>
    %14 = arith.addf %11, %13 : vector<16x32xf32>
    %c0_12 = arith.constant 0 : index
    %c0_13 = arith.constant 0 : index
    %15 = vector.load %arg10[%c0_12, %c0_13] : memref<16x32xf32, #tpu.memory_space<vmem>>, vector<16x32xf32>
    tpu.vector_store %arg10[%c0_12, %c0_13], %14 {strides = array<i32>} : memref<16x32xf32, #tpu.memory_space<vmem>>, vector<16x32xf32>,
    %c0_i32_14 = arith.constant 0 : i32
    %16 = arith.cmpi eq, %arg1, %c0_i32_14 : i32
    %17 = arith.extui %16 : i1 to i32
    %c0_i32_15 = arith.constant 0 : i32
    %18 = arith.cmpi ne, %17, %c0_i32_15 : i32
    scf.if %18 {
      %c0_16 = arith.constant 0 : index
      %c0_17 = arith.constant 0 : index
      %19 = vector.load %arg10[%c0_16, %c0_17] : memref<16x32xf32, #tpu.memory_space<vmem>>, vector<16x32xf32>
      %c0_18 = arith.constant 0 : index
      %c0_19 = arith.constant 0 : index
      %20 = vector.load %arg6[%c0_18, %c0_19] : memref<1x32xf32, #tpu.memory_space<vmem>>, vector<1x32xf32>
      %21 = vector.broadcast %20 : vector<1x32xf32> to vector<16x32xf32>
      %22 = arith.addf %19, %21 : vector<16x32xf32>
      %c0_20 = arith.constant 0 : index
      %c0_21 = arith.constant 0 : index
      %23 = vector.load %arg2[%c0_20, %c0_21] : memref<16x32xf32, #tpu.memory_space<vmem>>, vector<16x32xf32>
      %24 = arith.addf %22, %23 : vector<16x32xf32>
      %cst_22 = arith.constant dense<0.000000e+00> : vector<16xf32>
      %25 = vector.multi_reduction <add>, %24, %cst_22 [1] : vector<16x32xf32> to vector<16xf32>
      %26 = vector.shape_cast %25 : vector<16xf32> to vector<16x1xf32>
      %cst_23 = arith.constant 3.200000e+01 : f32
      %27 = vector.broadcast %cst_23 : f32 to vector<16x1xf32>
      %28 = arith.divf %26, %27 : vector<16x1xf32>
      %29 = vector.broadcast %28 : vector<16x1xf32> to vector<16x32xf32>
      %30 = arith.subf %24, %29 : vector<16x32xf32>
      %31 = arith.mulf %30, %30 : vector<16x32xf32>
      %cst_24 = arith.constant dense<0.000000e+00> : vector<16xf32>
      %32 = vector.multi_reduction <add>, %31, %cst_24 [1] : vector<16x32xf32> to vector<16xf32>
      %33 = vector.shape_cast %32 : vector<16xf32> to vector<16x1xf32>
      %cst_25 = arith.constant 3.200000e+01 : f32
      %34 = vector.broadcast %cst_25 : f32 to vector<16x1xf32>
      %35 = arith.divf %33, %34 : vector<16x1xf32>
      %36 = vector.broadcast %28 : vector<16x1xf32> to vector<16x32xf32>
      %37 = arith.subf %24, %36 : vector<16x32xf32>
      %cst_26 = arith.constant 9.99999974E-6 : f32
      %38 = vector.broadcast %cst_26 : f32 to vector<16x1xf32>
      %39 = arith.addf %35, %38 : vector<16x1xf32>
      %40 = math.rsqrt %39 : vector<16x1xf32>
      %41 = vector.broadcast %40 : vector<16x1xf32> to vector<16x32xf32>
      %42 = arith.mulf %37, %41 : vector<16x32xf32>
      %c0_27 = arith.constant 0 : index
      %c0_28 = arith.constant 0 : index
      %43 = vector.load %arg7[%c0_27, %c0_28] : memref<1x32xf32, #tpu.memory_space<vmem>>, vector<1x32xf32>
      %44 = vector.broadcast %43 : vector<1x32xf32> to vector<16x32xf32>
      %45 = arith.mulf %42, %44 : vector<16x32xf32>
      %c0_29 = arith.constant 0 : index
      %c0_30 = arith.constant 0 : index
      %46 = vector.load %arg8[%c0_29, %c0_30] : memref<1x32xf32, #tpu.memory_space<vmem>>, vector<1x32xf32>
      %47 = vector.broadcast %46 : vector<1x32xf32> to vector<16x32xf32>
      %48 = arith.addf %45, %47 : vector<16x32xf32>
      %c0_31 = arith.constant 0 : index
      %c0_32 = arith.constant 0 : index
      %49 = vector.load %arg9[%c0_31, %c0_32] : memref<16x32xf32, #tpu.memory_space<vmem>>, vector<16x32xf32>
      tpu.vector_store %arg9[%c0_31, %c0_32], %48 {strides = array<i32>} : memref<16x32xf32, #tpu.memory_space<vmem>>, vector<16x32xf32>,
    } else {
    }
    return
  }
  func.func @transform_0(%arg0: i32, %arg1: i32) -> (i32, i32) {
    %c0_i32 = arith.constant 0 : i32
    %c0_i32_0 = arith.constant 0 : i32
    return %arg0, %c0_i32 : i32, i32
  }
  func.func @transform_1(%arg0: i32, %arg1: i32) -> (i32, i32) {
    %c0_i32 = arith.constant 0 : i32
    %c0_i32_0 = arith.constant 0 : i32
    return %arg1, %c0_i32 : i32, i32
  }
  func.func @transform_2(%arg0: i32, %arg1: i32) -> (i32, i32) {
    %c0_i32 = arith.constant 0 : i32
    %c0_i32_0 = arith.constant 0 : i32
    return %c0_i32, %arg1 : i32, i32
  }
  func.func @transform_3(%arg0: i32, %arg1: i32) -> (i32, i32) {
    %c0_i32 = arith.constant 0 : i32
    %c0_i32_0 = arith.constant 0 : i32
    return %c0_i32, %arg1 : i32, i32
  }
  func.func @transform_4(%arg0: i32, %arg1: i32) -> (i32, i32) {
    %c0_i32 = arith.constant 0 : i32
    %c0_i32_0 = arith.constant 0 : i32
    %c0_i32_1 = arith.constant 0 : i32
    return %c0_i32, %c0_i32_0 : i32, i32
  }
  func.func @transform_5(%arg0: i32, %arg1: i32) -> (i32, i32) {
    %c0_i32 = arith.constant 0 : i32
    %c0_i32_0 = arith.constant 0 : i32
    %c0_i32_1 = arith.constant 0 : i32
    return %c0_i32, %c0_i32_0 : i32, i32
  }
  func.func @transform_6(%arg0: i32, %arg1: i32) -> (i32, i32) {
    %c0_i32 = arith.constant 0 : i32
    %c0_i32_0 = arith.constant 0 : i32
    %c0_i32_1 = arith.constant 0 : i32
    return %c0_i32, %c0_i32_0 : i32, i32
  }
  func.func @transform_7(%arg0: i32, %arg1: i32) -> (i32, i32) {
    %c0_i32 = arith.constant 0 : i32
    %c0_i32_0 = arith.constant 0 : i32
    return %arg0, %c0_i32 : i32, i32
  }
}

module attributes {stable_mosaic.version = 11 : i64} {
  func.func @_linear_kernel(%arg0: i32, %arg1: i32, %arg2: memref<16x32xf32, #tpu.memory_space<vmem>>, %arg3: memref<48x32xf32, #tpu.memory_space<vmem>>, %arg4: memref<1x48xf32, #tpu.memory_space<vmem>>, %arg5: memref<16x48xf32, #tpu.memory_space<vmem>>) attributes {dimension_semantics = [#tpu.dimension_semantics<parallel>, #tpu.dimension_semantics<parallel>], iteration_bounds = array<i64: 1, 1>, scalar_prefetch = 0 : i64, scratch_operands = 0 : i64, tpu.core_type = #tpu.core_type<tc>, window_params = [{transform_indices = @transform_0, window_bounds = array<i64: 16, 32>}, {transform_indices = @transform_1, window_bounds = array<i64: 48, 32>}, {transform_indices = @transform_2, window_bounds = array<i64: 1, 48>}, {transform_indices = @transform_3, window_bounds = array<i64: 16, 48>}]} {
    %c0 = arith.constant 0 : index
    %c0_0 = arith.constant 0 : index
    %0 = vector.load %arg2[%c0, %c0_0] : memref<16x32xf32, #tpu.memory_space<vmem>>, vector<16x32xf32>
    %c0_1 = arith.constant 0 : index
    %c0_2 = arith.constant 0 : index
    %1 = vector.load %arg3[%c0_1, %c0_2] : memref<48x32xf32, #tpu.memory_space<vmem>>, vector<48x32xf32>
    %cst = arith.constant dense<0.000000e+00> : vector<16x48xf32>
    %2 = tpu.matmul %0, %1, %cst {dimension_numbers = #tpu.dot_dimension_numbers<[1], [1], [0], [0], [0, 0, 1, 0], [], []>} : vector<16x32xf32>, vector<48x32xf32>, vector<16x48xf32> -> vector<16x48xf32>
    %c0_3 = arith.constant 0 : index
    %c0_4 = arith.constant 0 : index
    %3 = vector.load %arg4[%c0_3, %c0_4] : memref<1x48xf32, #tpu.memory_space<vmem>>, vector<1x48xf32>
    %4 = vector.broadcast %3 : vector<1x48xf32> to vector<16x48xf32>
    %5 = arith.addf %2, %4 : vector<16x48xf32>
    %c0_5 = arith.constant 0 : index
    %c0_6 = arith.constant 0 : index
    %6 = vector.load %arg5[%c0_5, %c0_6] : memref<16x48xf32, #tpu.memory_space<vmem>>, vector<16x48xf32>
    tpu.vector_store %arg5[%c0_5, %c0_6], %5 {strides = array<i32>} : memref<16x48xf32, #tpu.memory_space<vmem>>, vector<16x48xf32>,
    return
  }
  func.func @transform_0(%arg0: i32, %arg1: i32) -> (i32, i32) {
    %c0_i32 = arith.constant 0 : i32
    %c0_i32_0 = arith.constant 0 : i32
    return %arg0, %c0_i32 : i32, i32
  }
  func.func @transform_1(%arg0: i32, %arg1: i32) -> (i32, i32) {
    %c0_i32 = arith.constant 0 : i32
    %c0_i32_0 = arith.constant 0 : i32
    return %arg1, %c0_i32 : i32, i32
  }
  func.func @transform_2(%arg0: i32, %arg1: i32) -> (i32, i32) {
    %c0_i32 = arith.constant 0 : i32
    %c0_i32_0 = arith.constant 0 : i32
    return %c0_i32, %arg1 : i32, i32
  }
  func.func @transform_3(%arg0: i32, %arg1: i32) -> (i32, i32) {
    %c0_i32 = arith.constant 0 : i32
    return %arg0, %arg1 : i32, i32
  }
}

</mosaic_0001>

<bundles_post_ra>
// kernel: text_decoder_forward.13
= control target key start
LH: loop header
LB: loop body
LE: loop exit
PB: predicated region body
PF: predicated region fallthrough
CT: control target
= control target key end

     0   :  { %vm30_vm0 = vcmask 261120   ;;  %s273_s0 = inlined_call_operand.vmem [shape: f32[16,32], index: 0, kind: input, shape index: {}]   ;;  %s274_s1 = inlined_call_operand.vmem [shape: f32[48,32], index: 1, kind: input, shape index: {}]   ;;  %s275_s2 = inlined_call_operand.vmem [shape: f32[1,48], index: 2, kind: input, shape index: {}]   ;;  %s276_s3 = inlined_call_operand.hbm [shape: f32[16,48], index: 3, kind: output, shape index: {}]  }
   0x1   :  { %v22_v0 = vld [vmem:[%s274_s1 + $0x28] sm:$0xff]  ;;  %v21_v1 = vld [vmem:[%s274_s1 + $0x20] sm:$0xff] }
   0x2   :  { %166 = vmatprep.subr.msk.mxu0 %vm30_vm0, %v22_v0  ;;  %v15_v2 = vld [vmem:[%s273_s0] sm:$0xff] }
   0x3   :  { %167 = vmatpush3.xpose.msk.msra.mxu0 %vm30_vm0, %v22_v0 }
   0x4   :  { %8 = vsyncpa [#allocation3], 0  ;;  %168 = vmatprep.subr.msk.mxu0 %vm30_vm0, %v21_v1  ;;  %178 = vmatprep.mubr.msk.f32.mxu0 %vm30_vm0, %v15_v2  ;;  %v20_v3 = vld [vmem:[%s274_s1 + $0x18] sm:$0xff]  ;;  %v19_v4 = vld [vmem:[%s274_s1 + $0x10] sm:$0xff]  ;;  %s206_s30 = smov [#allocation2]   ;;  %vm130_vm1 = vcmask 392192  }
   0x5   :  { %v18_v5 = vld [vmem:[%s274_s1 + $0x8] sm:$0xff]  ;;  %v17_v6 = vld [vmem:[%s274_s1] sm:$0xff]  ;;  %s138_s4 = sshll.u32 %s206_s30, 4  ;;  %s139_s4 = int_to_ptr.vmem [resolvable:$true] %s138_s4 }
   0x6   :  { %v16_v7 = vld [vmem:[%s273_s0 + $0x8] sm:$0xff]  ;;  %v149_v8 = vld [vmem:[%s275_s2] ss:$0 sm:$0xff]  ;;  %s184_s1 = scalar_lea.vmem %s139_s4, 256  ;;  %p189_p1 = scmp.lt.s32.totalorder %s139_s4, %s139_s4 }
   0x7   :  { %169 = vmatpush3.xpose.msk.msra.mxu0 %vm30_vm0, %v21_v1  ;;  %p185_p0 = scmp.ne.s32.totalorder %s139_s4, %s184_s1  ;;  %p190_p2 = scmp.lt.s32.totalorder %s184_s1, %s184_s1 }
   0x8   :  { %170 = vmatprep.subr.msk.mxu0 %vm30_vm0, %v20_v3 }
   0x9   :  { %p191_p3 = por %p190_p2, %p189_p1 }
   0xb   :  { %171 = vmatpush3.xpose.msk.msra.mxu0 %vm30_vm0, %v20_v3  ;;  %p192_p4 = pnand %p191_p3, %p185_p0 }
   0xc   :  { %172 = vmatprep.subr.msk.mxu0 %vm30_vm0, %v19_v4 }
   0xf   :  { %173 = vmatpush3.xpose.msk.msra.mxu0 %vm30_vm0, %v19_v4 }
  0x10   :  { %174 = vmatprep.subr.msk.mxu0 %vm30_vm0, %v18_v5 }
  0x13   :  { %175 = vmatpush3.xpose.msk.msra.mxu0 %vm30_vm0, %v18_v5 }
  0x14   :  { %176 = vmatprep.subr.msk.mxu0 %vm30_vm0, %v17_v6 }
  0x17   :  { %177 = vmatpush3.xpose.msk.msra.mxu0 %vm30_vm0, %v17_v6 }
  0x1a   :  { %179 = vmatmul.mubr.msk.f32.vlgmr.msra.gmra.mxu0 %vm30_vm0, %v16_v7 }
  0xda   :  { %v180_v9 = vpop.f32.mrf.mxu0 }
  0xdb   :  { %v127_v10 = vadd.f32 %v180_v9, %v149_v8 }
  0xdc   :  { %v121_v11 = vpop.f32.mrf.mxu0 }
  0xdd   :  { %132 = vst.msk [vmem:[#allocation2 + $0x8] sm:$0xff] %vm130_vm1, %v127_v10  ;;  %v122_v12 = vadd.f32 %v149_v8, %v121_v11 }
  0xdf   :  { %131 = vst.msk [vmem:[#allocation2] sm:$0xff] %vm130_vm1, %v122_v12 }
  0xe0   :  { %195 = shalt.err (!%p192_p4)
}
  0xe1   :  { %s207_s0 = smov 128   ;;  %s208_s5 = smov 8  }
  0xe2   :  { %144 = dma.vmem_to_hbm [thread:$0]  %s139_s4, 256, %s276_s3, [#allocation3], %s207_s0, %s207_s0, %s208_s5  }
  0xe3   :  { %204 = dma.done.wait [#allocation3], 256  }
  0xe4   :  { %205 = vsyncadd [#allocation3], 4294967040 }
  0xe5   :  { %148 = vsyncpa [#allocation3], 1 }

// kernel: text_decoder_forward.9
= control target key start
LH: loop header
LB: loop body
LE: loop exit
PB: predicated region body
PF: predicated region fallthrough
CT: control target
= control target key end

     0   :  { %vm30_vm0 = vcmask 261120   ;;  %v441_v22 = vmov 0.0   ;;  %s614_s1 = inlined_call_operand.vmem [shape: f32[128,32], index: 1, kind: input, shape index: {}]   ;;  %s615_s0 = inlined_call_operand.vmem [shape: f32[16,32], index: 0, kind: input, shape index: {}]   ;;  %s616_s3 = inlined_call_operand.vmem [shape: f32[32,128], index: 3, kind: input, shape index: {}]   ;;  %s617_s2 = inlined_call_operand.vmem [shape: f32[1,128], index: 2, kind: input, shape index: {}]   ;;  %s618_s4 = inlined_call_operand.vmem [shape: f32[1,32], index: 4, kind: input, shape index: {}]   ;;  %s619_s5 = inlined_call_operand.vmem [shape: f32[1,32], index: 5, kind: input, shape index: {}]   ;;  %s620_s6 = inlined_call_operand.vmem [shape: f32[1,32], index: 6, kind: input, shape index: {}]   ;;  %s621_s7 = inlined_call_operand.vmem [shape: f32[16,32], index: 7, kind: output, shape index: {}]  }
   0x1   :  { %v50_v0 = vld [vmem:[%s614_s1 + $0x78] sm:$0xff]  ;;  %v49_v1 = vld [vmem:[%s614_s1 + $0x70] sm:$0xff]  ;;  %v48_v2 = vld [vmem:[%s614_s1 + $0x68] sm:$0xff]  ;;  %32 = vst.msk [vmem:[#allocation2 + $0x8] sm:$0xff] %vm30_vm0, %v441_v22 }
   0x2   :  { %390 = vmatprep.subr.msk.mxu0 %vm30_vm0, %v50_v0  ;;  %v497_v3 = vld [vmem:[%s615_s0] sm:$0xff]  ;;  %v195_v4 = vld [vmem:[%s616_s3 + $0x18] sm:$0xff]  ;;  %v194_v5 = vld [vmem:[%s616_s3 + $0x10] sm:$0xff]  ;;  %31 = vst.msk [vmem:[#allocation2] sm:$0xff] %vm30_vm0, %v441_v22 }
   0x3   :  { %391 = vmatpush3.xpose.msk.msra.mxu0 %vm30_vm0, %v50_v0  ;;  %422 = vmatprep.mubr.msk.f32.mxu0 %vm30_vm0, %v497_v3  ;;  %v47_v6 = vld [vmem:[%s614_s1 + $0x60] sm:$0xff]  ;;  %v46_v7 = vld [vmem:[%s614_s1 + $0x58] sm:$0xff]  ;;  %v45_v8 = vld [vmem:[%s614_s1 + $0x50] sm:$0xff] }
   0x4   :  { %392 = vmatprep.subr.msk.mxu0 %vm30_vm0, %v49_v1  ;;  %425 = vmatprep.subr.mxu1 %v195_v4  ;;  %v44_v9 = vld [vmem:[%s614_s1 + $0x48] sm:$0xff]  ;;  %v43_v10 = vld [vmem:[%s614_s1 + $0x40] sm:$0xff]  ;;  %v42_v11 = vld [vmem:[%s614_s1 + $0x38] sm:$0xff] }
   0x5   :  { %426 = vmatpush3.xpose.msra.mxu1 %v195_v4  ;;  %v41_v12 = vld [vmem:[%s614_s1 + $0x30] sm:$0xff]  ;;  %v40_v13 = vld [vmem:[%s614_s1 + $0x28] sm:$0xff]  ;;  %v39_v14 = vld [vmem:[%s614_s1 + $0x20] sm:$0xff] }
   0x6   :  { %427 = vmatprep.subr.mxu1 %v194_v5  ;;  %v38_v15 = vld [vmem:[%s614_s1 + $0x18] sm:$0xff]  ;;  %v37_v16 = vld [vmem:[%s614_s1 + $0x10] sm:$0xff]  ;;  %v36_v17 = vld [vmem:[%s614_s1 + $0x8] sm:$0xff] }
   0x7   :  { %393 = vmatpush3.xpose.msk.msra.mxu0 %vm30_vm0, %v49_v1  ;;  %v35_v18 = vld [vmem:[%s614_s1] sm:$0xff]  ;;  %v34_v19 = vld [vmem:[%s615_s0 + $0x8] sm:$0xff] }
   0x8   :  { %394 = vmatprep.subr.msk.mxu0 %vm30_vm0, %v48_v2  ;;  %v193_v20 = vld [vmem:[%s616_s3 + $0x8] sm:$0xff]  ;;  %v192_v21 = vld [vmem:[%s616_s3] sm:$0xff] }
   0x9   :  { %428 = vmatpush3.xpose.msra.mxu1 %v194_v5  ;;  %v344_v23 = vld [vmem:[%s617_s2] ss:$0 sm:$0xff]  ;;  %v191_v30 = vld [vmem:[#allocation2 + $0x8] sm:$0xff] }
   0xa   :  { %429 = vmatprep.subr.mxu1 %v193_v20  ;;  %v190_v32 = vld [vmem:[#allocation2] sm:$0xff] }
   0xb   :  { %395 = vmatpush3.xpose.msk.msra.mxu0 %vm30_vm0, %v48_v2  ;;  %v363_v36 = vld [vmem:[%s618_s4] ss:$0 sm:$0xff] }
   0xc   :  { %396 = vmatprep.subr.msk.mxu0 %vm30_vm0, %v47_v6  ;;  %v364_v62 = vld [vmem:[%s619_s5] ss:$0 sm:$0xff] }
   0xd   :  { %430 = vmatpush3.xpose.msra.mxu1 %v193_v20  ;;  %v365_v0 = vld [vmem:[%s620_s6] ss:$0 sm:$0xff] }
   0xe   :  { %431 = vmatprep.subr.mxu1 %v192_v21 }
   0xf   :  { %397 = vmatpush3.xpose.msk.msra.mxu0 %vm30_vm0, %v47_v6 }
  0x10   :  { %398 = vmatprep.subr.msk.mxu0 %vm30_vm0, %v46_v7 }
  0x11   :  { %432 = vmatpush3.xpose.msra.mxu1 %v192_v21 }
  0x13   :  { %399 = vmatpush3.xpose.msk.msra.mxu0 %vm30_vm0, %v46_v7 }
  0x14   :  { %400 = vmatprep.subr.msk.mxu0 %vm30_vm0, %v45_v8 }
  0x17   :  { %401 = vmatpush3.xpose.msk.msra.mxu0 %vm30_vm0, %v45_v8 }
  0x18   :  { %402 = vmatprep.subr.msk.mxu0 %vm30_vm0, %v44_v9 }
  0x1b   :  { %403 = vmatpush3.xpose.msk.msra.mxu0 %vm30_vm0, %v44_v9 }
  0x1c   :  { %404 = vmatprep.subr.msk.mxu0 %vm30_vm0, %v43_v10 }
  0x1f   :  { %405 = vmatpush3.xpose.msk.msra.mxu0 %vm30_vm0, %v43_v10 }
  0x20   :  { %406 = vmatprep.subr.msk.mxu0 %vm30_vm0, %v42_v11 }
  0x23   :  { %407 = vmatpush3.xpose.msk.msra.mxu0 %vm30_vm0, %v42_v11 }
  0x24   :  { %408 = vmatprep.subr.msk.mxu0 %vm30_vm0, %v41_v12 }
  0x27   :  { %409 = vmatpush3.xpose.msk.msra.mxu0 %vm30_vm0, %v41_v12 }
  0x28   :  { %410 = vmatprep.subr.msk.mxu0 %vm30_vm0, %v40_v13 }
  0x2b   :  { %411 = vmatpush3.xpose.msk.msra.mxu0 %vm30_vm0, %v40_v13 }
  0x2c   :  { %412 = vmatprep.subr.msk.mxu0 %vm30_vm0, %v39_v14 }
  0x2f   :  { %413 = vmatpush3.xpose.msk.msra.mxu0 %vm30_vm0, %v39_v14 }
  0x30   :  { %414 = vmatprep.subr.msk.mxu0 %vm30_vm0, %v38_v15 }
  0x33   :  { %415 = vmatpush3.xpose.msk.msra.mxu0 %vm30_vm0, %v38_v15 }
  0x34   :  { %416 = vmatprep.subr.msk.mxu0 %vm30_vm0, %v37_v16 }
  0x37   :  { %417 = vmatpush3.xpose.msk.msra.mxu0 %vm30_vm0, %v37_v16 }
  0x38   :  { %418 = vmatprep.subr.msk.mxu0 %vm30_vm0, %v36_v17 }
  0x3b   :  { %419 = vmatpush3.xpose.msk.msra.mxu0 %vm30_vm0, %v36_v17 }
  0x3c   :  { %420 = vmatprep.subr.msk.mxu0 %vm30_vm0, %v35_v18 }
  0x3f   :  { %421 = vmatpush3.xpose.msk.msra.mxu0 %vm30_vm0, %v35_v18 }
  0x42   :  { %423 = vmatmul.mubr.msk.f32.vlgmr.msra.gmra.mxu0 %vm30_vm0, %v34_v19 }
 0x102   :  { %v424_v24 = vpop.f32.mrf.mxu0 }
 0x103   :  { %v185_v25 = vadd.f32 %v424_v24, %v344_v23 }
 0x104   :  { %v179_v26 = vpop.f32.mrf.mxu0 }
 0x105   :  { %v180_v27 = vadd.f32 %v344_v23, %v179_v26  ;;  %v189_v29 = vmax.f32 %v185_v25, 0.0 }
 0x107   :  { %v188_v28 = vmax.f32 %v180_v27, 0.0 }
 0x109   :  { %433 = vmatprep.mubr.f32.mxu1 %v188_v28 }
 0x10a   :  { %434 = vmatmul.mubr.f32.vlgmr.msra.gmra.mxu1 %v189_v29 }
 0x1ca   :  { %v435_v31 = vpop.f32.mrf.mxu1 }
 0x1cb   :  { %v272_v33 = vadd.f32 %v435_v31, %v191_v30 }
 0x1cc   :  { %v262_v34 = vpop.f32.mrf.mxu1 }
 0x1cd   :  { %274 = vst.msk [vmem:[#allocation2 + $0x8] sm:$0xff] %vm30_vm0, %v272_v33  ;;  %v271_v35 = vadd.f32 %v262_v34, %v190_v32 }
 0x1cf   :  { %273 = vst.msk [vmem:[#allocation2] sm:$0xff] %vm30_vm0, %v271_v35 }
 0x1d4   :  { %v279_v37 = vld [vmem:[#allocation2 + $0x8] sm:$0xff] }
 0x1d5   :  { %v288_v40 = vadd.f32 %v363_v36, %v279_v37 }
 0x1d6   :  { %v278_v38 = vld [vmem:[#allocation2] sm:$0xff] }
 0x1d7   :  { %v287_v39 = vadd.f32 %v363_v36, %v278_v38  ;;  %v292_v43 = vadd.f32 %v288_v40, %v34_v19 }
 0x1d9   :  { %v291_v41 = vadd.f32 %v287_v39, %v497_v3  ;;  %v296_v44 = vsel %vm30_vm0, %v292_v43, 0.0 }
 0x1db   :  { %v293_v42 = vsel %vm30_vm0, %v291_v41, 0.0 }
 0x1dc   :  { %294 = vadd.xlane.f32.xlu0 %v293_v42 }
 0x1e0   :  { %297 = vadd.xlane.f32.xlu0 %v296_v44 }
 0x265   :  { %v295_v45 = vpop.xlane.xlu0 %294 }
 0x266   :  { %v300_v46 = vmul.f32 0.03125, %v295_v45 }
 0x268   :  { %v302_v47 = vsub.f32 %v291_v41, %v300_v46 }
 0x269   :  { %v298_v48 = vpop.xlane.xlu0 %297 }
 0x26a   :  { %v301_v49 = vmul.f32 0.03125, %v298_v48  ;;  %v304_v50 = vmul.f32 %v302_v47, %v302_v47 }
 0x26c   :  { %v303_v51 = vsub.f32 %v292_v43, %v301_v49  ;;  %v306_v52 = vsel %vm30_vm0, %v304_v50, 0.0 }
 0x26d   :  { %307 = vadd.xlane.f32.xlu1 %v306_v52 }
 0x26e   :  { %v305_v53 = vmul.f32 %v303_v51, %v303_v51 }
 0x270   :  { %v309_v54 = vsel %vm30_vm0, %v305_v53, 0.0 }
 0x271   :  { %310 = vadd.xlane.f32.xlu1 %v309_v54 }
 0x2f6   :  { %v308_v55 = vpop.xlane.xlu1 %307 }
 0x2f7   :  { %v312_v56 = vmul.f32 0.03125, %v308_v55 }
 0x2f9   :  { %v314_v57 = vadd.f32 1e-05, %v312_v56 }
 0x2fa   :  { %v311_v58 = vpop.xlane.xlu1 %310 }
 0x2fb   :  { %437 = vrsqrt.f32 %v314_v57  ;;  %v313_v59 = vmul.f32 0.03125, %v311_v58 }
 0x2fd   :  { %v315_v60 = vadd.f32 1e-05, %v313_v59 }
 0x2ff   :  { %439 = vrsqrt.f32 %v315_v60 }
 0x308   :  { %v438_v61 = vpop.eup %437 }
 0x309   :  { %v318_v63 = vmul.f32 %v438_v61, %v302_v47 }
 0x30b   :  { %v327_v1 = vmul.f32 %v364_v62, %v318_v63 }
 0x30c   :  { %v440_v2 = vpop.eup %439 }
 0x30d   :  { %v336_v3 = vadd.f32 %v365_v0, %v327_v1  ;;  %v319_v4 = vmul.f32 %v440_v2, %v303_v51 }
 0x30f   :  { %338 = vst.msk [vmem:[%s621_s7] sm:$0xff] %vm30_vm0, %v336_v3  ;;  %v328_v5 = vmul.f32 %v364_v62, %v319_v4 }
 0x311   :  { %v337_v6 = vadd.f32 %v365_v0, %v328_v5 }
 0x313   :  { %339 = vst.msk [vmem:[%s621_s7 + $0x8] sm:$0xff] %vm30_vm0, %v337_v6 }

// kernel: text_decoder_forward.8
= control target key start
LH: loop header
LB: loop body
LE: loop exit
PB: predicated region body
PF: predicated region fallthrough
CT: control target
= control target key end

     0   :  { %s3021_s25 = smov 0   ;;  %s3365_s0 = inlined_call_operand.vmem [shape: f32[2,8,32], index: 0, kind: input, shape index: {}]   ;;  %s3366_s1 = inlined_call_operand.vmem [shape: f32[2,8,32], index: 1, kind: input, shape index: {}]   ;;  %s3367_s2 = inlined_call_operand.vmem [shape: f32[2,1,8], index: 2, kind: input, shape index: {}]   ;;  %s3368_s3 = inlined_call_operand.vmem [shape: f32[4,8,32], index: 3, kind: input, shape index: {}]   ;;  %s3369_s4 = inlined_call_operand.vmem [shape: f32[4,1,8], index: 4, kind: input, shape index: {}]   ;;  %s3370_s5 = inlined_call_operand.vmem [shape: f32[4,8,32], index: 5, kind: input, shape index: {}]   ;;  %s3371_s6 = inlined_call_operand.vmem [shape: f32[4,1,8], index: 6, kind: input, shape index: {}]   ;;  %s3372_s7 = inlined_call_operand.vmem [shape: f32[4,8,32], index: 7, kind: input, shape index: {}]   ;;  %s3373_s8 = inlined_call_operand.vmem [shape: f32[4,1,8], index: 8, kind: input, shape index: {}]   ;;  %s3374_s9 = inlined_call_operand.vmem [shape: f32[4,32,8], index: 9, kind: input, shape index: {}]   ;;  %s3375_s10 = inlined_call_operand.vmem [shape: f32[1,32], index: 10, kind: input, shape index: {}]   ;;  %s3376_s11 = inlined_call_operand.vmem [shape: f32[1,32], index: 11, kind: input, shape index: {}]   ;;  %s3377_s12 = inlined_call_operand.vmem [shape: f32[1,32], index: 12, kind: input, shape index: {}]   ;;  %s3378_s13 = inlined_call_operand.vmem [shape: f32[2,8,32], index: 13, kind: output, shape index: {}]  }
   0x1 LB: > { %s2597_s26 = sadd.s32 4294967295, %s2947_s25   ;;  %p2601_p0 = scmp.ge.s32.totalorder %s2947_s25, 1  ;;  %s2947_s25 = sphi %s3021_s25, %s23_s25  }
   0x2   : > { %p403_p1 = scmp.lt.s32.totalorder %s2947_s25, 3 }
   0x4   : > { %p404_p2 = pnand %p2601_p0, %p403_p1 }
   0x5   : > { %p452_p3 = scmp.lt.s32.totalorder (!%p404_p2), %s2597_s26, 1 }
   0x6   : > { %407 = sbr.rel (%p404_p2) target bundleno = 3755 (0xeab), region = 72 }
   0xb   : > { %v470_v0 = vld [vmem:[%s3368_s3] sm:$0xff]  ;;  %vm478_vm0 = vcmask 261120   ;;  %v2949_v1 = vmov 0.0   ;;  %vm2950_vm1 = vmmov 0   ;;  %s3380_s26 = smov (!%p452_p3, %s2597_s26), 1  ;;  %vm720_vm2 = vcmask 64512  }
   0xc   : > { %2769 = vmatprep.subr.mxu1 %v2949_v1  ;;  %2771 = vmatprep.mubr.msk.f32.mxu1 %vm2950_vm1, %v2949_v1  ;;  %s3043_s29 = sshll.u32 %s3380_s26, 3  ;;  %v555_v2 = vld [vmem:[%s3370_s5] sm:$0xff]  ;;  %s462_s17 = scalar_lea.vmem %s3367_s2, %s3380_s26  ;;  %v2618_v29 = vld [vmem:[%s3368_s3 + $0x8] sm:$0xff]  ;;  %v2639_v59 = vld [vmem:[%s3374_s9 + $0x38] sm:$0xff] }
   0xd   : > { %2770 = vmatpush3.xpose.msk.msra.mxu1 %vm478_vm0, %v470_v0  ;;  %2789 = vmatprep.subr.mxu0 %v2949_v1  ;;  %s455_s15 = scalar_lea.vmem %s3365_s0, %s3043_s29  ;;  %s459_s18 = scalar_lea.vmem %s3366_s1, %s3043_s29  ;;  %v639_v5 = vld [vmem:[%s3372_s7] sm:$0xff]  ;;  %v2623_v33 = vld [vmem:[%s3370_s5 + $0x8] sm:$0xff]  ;;  %v2638_v60 = vld [vmem:[%s3374_s9 + $0x30] sm:$0xff] }
   0xe   : > { %2774 = vmatprep.subr.mxu1 %v2949_v1  ;;  %2791 = vmatprep.mubr.msk.f32.mxu0 %vm2950_vm1, %v2949_v1  ;;  %v3056_v3 = vld [vmem:[%s455_s15] sm:$0xff]  ;;  %v2628_v44 = vld [vmem:[%s3372_s7 + $0x8] sm:$0xff]  ;;  %s466_s26 = scalar_lea.vmem %s3378_s13, %s3043_s29 }
   0xf   : > { %v3060_v4 = vld [vmem:[%s459_s18] sm:$0xff]  ;;  %v2637_v61 = vld [vmem:[%s3374_s9 + $0x28] sm:$0xff] }
  0x10   : > { %2772 = vmatmul.mubr.msk.f32.vlgmr.msra.gmra.mxu1 %vm478_vm0, %v3056_v3  ;;  %v2608_v8 = vld [vmem:[%s3371_s6] ss:$0 sm:$0xff]  ;;  %v2625_v38 = vld [vmem:[%s3371_s6 + $0x1] ss:$0 sm:$0xff] }
  0x11   : > { %2775 = vmatpush3.xpose.msk.msra.mxu1 %vm478_vm0, %v555_v2  ;;  %2776 = vmatprep.mubr.msk.f32.mxu1 %vm2950_vm1, %v2949_v1  ;;  %v2605_v10 = vld [vmem:[%s3369_s4] ss:$0 sm:$0xff]  ;;  %v2620_v39 = vld [vmem:[%s3369_s4 + $0x1] ss:$0 sm:$0xff] }
  0x12   : > { %2779 = vmatprep.subr.mxu1 %v2949_v1  ;;  %v2611_v14 = vld [vmem:[%s3373_s8] ss:$0 sm:$0xff]  ;;  %v2630_v55 = vld [vmem:[%s3373_s8 + $0x1] ss:$0 sm:$0xff] }
  0x13   : > { %v3098_v19 = vld [vmem:[%s462_s17] ss:$0 sm:$0xff] }
  0x14   : > { %2777 = vmatmul.mubr.msk.f32.vlgmr.msra.gmra.mxu1 %vm478_vm0, %v3060_v4  ;;  %v2636_v62 = vld [vmem:[%s3374_s9 + $0x20] sm:$0xff] }
  0x15   : > { %2781 = vmatprep.mubr.msk.f32.mxu1 %vm2950_vm1, %v2949_v1  ;;  %2780 = vmatpush3.xpose.msk.msra.mxu1 %vm478_vm0, %v639_v5  ;;  %v892_v5 = vld [vmem:[%s3374_s9 + $0x18] sm:$0xff] }
  0x16   : > { %2784 = vmatprep.subr.mxu1 %v2949_v1 }
  0x18   : > { %2782 = vmatmul.mubr.msk.f32.vlgmr.msra.gmra.mxu1 %vm478_vm0, %v3060_v4 }
  0x19   : > { %2786 = vmatprep.mubr.msk.f32.mxu1 %vm2950_vm1, %v2949_v1 }
  0xd0   : > { %v551_v6 = vpop.f32.mrf.mxu1 }
  0xd1   : > { %v552_v13 = vadd.f32 %v2605_v10, %v551_v6  ;;  %v891_v6 = vld [vmem:[%s3374_s9 + $0x10] sm:$0xff] }
  0xd2   : > { %v2773_v7 = vpop.f32.mrf.mxu1  ;;  %v2650_v10 = vld [vmem:[%s3368_s3 + $0x10] sm:$0xff] }
  0xd3   : > { %v890_v7 = vld [vmem:[%s3374_s9 + $0x8] sm:$0xff] }
  0xd4   : > { %v635_v9 = vpop.f32.mrf.mxu1 }
  0xd5   : > { %v636_v11 = vadd.f32 %v2608_v8, %v635_v9  ;;  %v889_v8 = vld [vmem:[%s3374_s9] sm:$0xff]  ;;  %v2655_v9 = vld [vmem:[%s3370_s5 + $0x10] sm:$0xff] }
  0xd6   : > { %v2778_v12 = vpop.f32.mrf.mxu1 }
  0xd7   : > { %2785 = vmatpush3.xpose.msk.msra.mxu1 %vm720_vm2, %v636_v11 }
  0xd8   : > { %2794 = vmatprep.subr.mxu1 %v2949_v1  ;;  %v716_v15 = vpop.f32.mrf.mxu1 }
  0xd9   : > { %v717_v16 = vadd.f32 %v2611_v14, %v716_v15  ;;  %v2657_v15 = vld [vmem:[%s3371_s6 + $0x2] ss:$0 sm:$0xff] }
  0xda   : > { %2787 = vmatmul.mubr.msk.f32.vlgmr.msra.gmra.mxu1 %vm720_vm2, %v552_v13  ;;  %v2783_v17 = vpop.f32.mrf.mxu1 }
  0xdb   : > { %2796 = vmatprep.mubr.msk.f32.mxu1 %vm2950_vm1, %v2949_v1  ;;  %2790 = vmatpush3.msra.mxu0 %v717_v16 }
  0xdc   : > { %2799 = vmatprep.subr.mxu0 %v2949_v1  ;;  %2795 = vmatpush3.xpose.msk.msra.mxu1 %vm478_vm0, %v2618_v29 }
  0xdd   : > { %2804 = vmatprep.subr.mxu1 %v2949_v1 }
  0xdf   : > { %2797 = vmatmul.mubr.msk.f32.vlgmr.msra.gmra.mxu1 %vm478_vm0, %v3056_v3 }
  0xe0   : > { %2806 = vmatprep.mubr.msk.f32.mxu1 %vm2950_vm1, %v2949_v1  ;;  %2805 = vmatpush3.xpose.msk.msra.mxu1 %vm478_vm0, %v2628_v44  ;;  %v2668_v44 = vld [vmem:[%s3374_s9 + $0x40] sm:$0xff] }
  0xe1   : > { %2814 = vmatprep.subr.mxu1 %v2949_v1 }
  0xe3   : > { %2807 = vmatmul.mubr.msk.f32.vlgmr.msra.gmra.mxu1 %vm478_vm0, %v3060_v4 }
  0xe4   : > { %2816 = vmatprep.mubr.msk.f32.mxu1 %vm2950_vm1, %v2949_v1 }
 0x19a   : > { %v793_v18 = vpop.f32.mrf.mxu1 }
 0x19b   : > { %v797_v20 = vmul.f32 0.35355338, %v793_v18 }
 0x19c   : > { %v2788_v21 = vpop.f32.mrf.mxu1 }
 0x19d   : > { %v804_v22 = vadd.f32 %v3098_v19, %v797_v20 }
 0x19f   : > { %v805_v23 = vsel %vm720_vm2, %v804_v22, -inf  ;;  %v972_v34 = vpop.f32.mrf.mxu1 }
 0x1a0   : > { %806 = vmax.xlane.f32.xlu0 %v805_v23  ;;  %v973_v42 = vadd.f32 %v2620_v39, %v972_v34 }
 0x1a1   : > { %v2798_v35 = vpop.f32.mrf.mxu1 }
 0x1a3   : > { %v1138_v56 = vpop.f32.mrf.mxu1 }
 0x1a4   : > { %v1139_v57 = vadd.f32 %v2630_v55, %v1138_v56  ;;  %v2684_v55 = vld [vmem:[%s3371_s6 + $0x3] ss:$0 sm:$0xff] }
 0x1a5   : > { %v2808_v58 = vpop.f32.mrf.mxu1 }
 0x1a6   : > { %2815 = vmatpush3.msra.mxu1 %v1139_v57 }
 0x1a7   : > { %2830 = vmatprep.subr.mxu1 %v2949_v1 }
 0x229   : > { %v807_v24 = vpop.xlane.xlu0 %806 }
 0x22a   : > { %v808_v25 = vsub.f32 %v804_v22, %v807_v24  ;;  %v2652_v22 = vld [vmem:[%s3369_s4 + $0x2] ss:$0 sm:$0xff] }
 0x22c   : > { %v809_v26 = vmul.f32 1.442695, %v808_v25 }
 0x22e   : > { %2923 = vpow2.f32 %v809_v26  ;;  %v2660_v26 = vld [vmem:[%s3372_s7 + $0x10] sm:$0xff] }
 0x23b   : > { %v2924_v27 = vpop.eup %2923 }
 0x23c   : > { %v811_v28 = vsel %vm720_vm2, %v2924_v27, 0.0 }
 0x23d   : > { %812 = vadd.xlane.f32.xlu0 %v811_v28 }
 0x2c6   : > { %v813_v30 = vpop.xlane.xlu0 %812 }
 0x2c7   : > { %2925 = vrcp.f32 %v813_v30 }
 0x2d4   : > { %v2926_v31 = vpop.eup %2925 }
 0x2d5   : > { %v815_v32 = vmul.f32 %v2926_v31, %v2924_v27 }
 0x2d7   : > { %2792 = vmatmul.mubr.msk.f32.vlgmr.msra.gmra.mxu0 %vm720_vm2, %v815_v32 }
 0x2d8   : > { %2800 = vmatpush3.xpose.msk.msra.mxu0 %vm478_vm0, %v2623_v33  ;;  %2801 = vmatprep.mubr.msk.f32.mxu0 %vm2950_vm1, %v2949_v1 }
 0x2d9   : > { %2809 = vmatprep.subr.mxu0 %v2949_v1 }
 0x2db   : > { %2802 = vmatmul.mubr.msk.f32.vlgmr.msra.gmra.mxu0 %vm478_vm0, %v3060_v4 }
 0x2dc   : > { %2811 = vmatprep.mubr.msk.f32.mxu0 %vm2950_vm1, %v2949_v1 }
 0x397   : > { %v3124_v36 = vpop.f32.mrf.mxu0 }
 0x399   : > { %v2793_v37 = vpop.f32.mrf.mxu0 }
 0x39a   : > { %v2662_v37 = vld [vmem:[%s3373_s8 + $0x2] ss:$0 sm:$0xff] }
 0x39b   : > { %v1055_v40 = vpop.f32.mrf.mxu0 }
 0x39c   : > { %v1056_v41 = vadd.f32 %v2625_v38, %v1055_v40 }
 0x39d   : > { %v2803_v43 = vpop.f32.mrf.mxu0 }
 0x39e   : > { %2810 = vmatpush3.xpose.msk.msra.mxu0 %vm720_vm2, %v1056_v41  ;;  %v2671_v41 = vld [vmem:[%s3374_s9 + $0x58] sm:$0xff]  ;;  %v2669_v43 = vld [vmem:[%s3374_s9 + $0x48] sm:$0xff] }
 0x39f   : > { %2819 = vmatprep.subr.mxu0 %v2949_v1 }
 0x3a1   : > { %2812 = vmatmul.mubr.msk.f32.vlgmr.msra.gmra.mxu0 %vm720_vm2, %v973_v42  ;;  %v2670_v42 = vld [vmem:[%s3374_s9 + $0x50] sm:$0xff] }
 0x3a2   : > { %2827 = vmatprep.mubr.msk.f32.mxu0 %vm2950_vm1, %v2949_v1  ;;  %2820 = vmatpush3.xpose.msk.msra.mxu0 %vm720_vm2, %v2639_v59 }
 0x3a3   : > { %2821 = vmatprep.subr.mxu0 %v2949_v1 }
 0x3a6   : > { %2822 = vmatpush3.xpose.msk.msra.mxu0 %vm720_vm2, %v2638_v60  ;;  %v2689_v60 = vld [vmem:[%s3373_s8 + $0x3] ss:$0 sm:$0xff] }
 0x3a7   : > { %2823 = vmatprep.subr.mxu0 %v2949_v1 }
 0x3aa   : > { %2824 = vmatpush3.xpose.msk.msra.mxu0 %vm720_vm2, %v2637_v61 }
 0x3ab   : > { %2825 = vmatprep.subr.mxu0 %v2949_v1 }
 0x3ae   : > { %2826 = vmatpush3.xpose.msk.msra.mxu0 %vm720_vm2, %v2636_v62 }
 0x3af   : > { %2841 = vmatprep.subr.mxu0 %v2949_v1 }
 0x461   : > { %v1214_v45 = vpop.f32.mrf.mxu0 }
 0x462   : > { %v1218_v46 = vmul.f32 0.35355338, %v1214_v45 }
 0x463   : > { %v2813_v47 = vpop.f32.mrf.mxu0 }
 0x464   : > { %v1219_v48 = vadd.f32 %v3098_v19, %v1218_v46 }
 0x466   : > { %v1220_v49 = vsel %vm720_vm2, %v1219_v48, -inf }
 0x467   : > { %1221 = vmax.xlane.f32.xlu1 %v1220_v49  ;;  %v2682_v49 = vld [vmem:[%s3370_s5 + $0x18] sm:$0xff] }
 0x4f0   : > { %v1222_v50 = vpop.xlane.xlu1 %1221 }
 0x4f1   : > { %v1223_v51 = vsub.f32 %v1219_v48, %v1222_v50  ;;  %v2677_v48 = vld [vmem:[%s3368_s3 + $0x18] sm:$0xff] }
 0x4f2   : > { %v2687_v50 = vld [vmem:[%s3372_s7 + $0x18] sm:$0xff] }
 0x4f3   : > { %v1224_v52 = vmul.f32 1.442695, %v1223_v51 }
 0x4f5   : > { %2927 = vpow2.f32 %v1224_v52 }
 0x502   : > { %v2928_v53 = vpop.eup %2927 }
 0x503   : > { %v1226_v54 = vsel %vm720_vm2, %v2928_v53, 0.0 }
 0x504   : > { %1227 = vadd.xlane.f32.xlu1 %v1226_v54 }
 0x58d   : > { %v1228_v63 = vpop.xlane.xlu1 %1227 }
 0x58e   : > { %2929 = vrcp.f32 %v1228_v63 }
 0x59b   : > { %v2930_v0 = vpop.eup %2929 }
 0x59c   : > { %v1230_v2 = vmul.f32 %v2930_v0, %v2928_v53 }
 0x59e   : > { %2817 = vmatmul.mubr.msk.f32.vlgmr.msra.gmra.mxu1 %vm720_vm2, %v1230_v2 }
 0x59f   : > { %2831 = vmatpush3.xpose.msk.msra.mxu1 %vm720_vm2, %v892_v5  ;;  %2838 = vmatprep.mubr.msk.f32.mxu1 %vm2950_vm1, %v2949_v1 }
 0x5a0   : > { %2832 = vmatprep.subr.mxu1 %v2949_v1 }
 0x5a3   : > { %2833 = vmatpush3.xpose.msk.msra.mxu1 %vm720_vm2, %v891_v6 }
 0x5a4   : > { %2834 = vmatprep.subr.mxu1 %v2949_v1 }
 0x5a7   : > { %2835 = vmatpush3.xpose.msk.msra.mxu1 %vm720_vm2, %v890_v7 }
 0x5a8   : > { %2836 = vmatprep.subr.mxu1 %v2949_v1 }
 0x5ab   : > { %2837 = vmatpush3.xpose.msk.msra.mxu1 %vm720_vm2, %v889_v8 }
 0x5ac   : > { %2846 = vmatprep.subr.mxu1 %v2949_v1 }
 0x5ae   : > { %2839 = vmatmul.mubr.msk.f32.vlgmr.msra.gmra.mxu1 %vm720_vm2, %v3124_v36 }
 0x5af   : > { %2847 = vmatpush3.xpose.msk.msra.mxu1 %vm478_vm0, %v2655_v9  ;;  %2848 = vmatprep.mubr.msk.f32.mxu1 %vm2950_vm1, %v2949_v1 }
 0x5b0   : > { %2856 = vmatprep.subr.mxu1 %v2949_v1 }
 0x5b2   : > { %2849 = vmatmul.mubr.msk.f32.vlgmr.msra.gmra.mxu1 %vm478_vm0, %v3060_v4 }
 0x5b3   : > { %2858 = vmatprep.mubr.msk.f32.mxu1 %vm2950_vm1, %v2949_v1 }
 0x65e   : > { %v1300_v11 = vpop.f32.mrf.mxu1 }
 0x65f   : > { %2828 = vmatmul.mubr.msk.f32.vlgmr.msra.gmra.mxu0 %vm720_vm2, %v1300_v11 }
 0x660   : > { %v2818_v12 = vpop.f32.mrf.mxu1  ;;  %2842 = vmatpush3.xpose.msk.msra.mxu0 %vm478_vm0, %v2650_v10  ;;  %2843 = vmatprep.mubr.msk.f32.mxu0 %vm2950_vm1, %v2949_v1 }
 0x661   : > { %2851 = vmatprep.subr.mxu0 %v2949_v1 }
 0x663   : > { %2844 = vmatmul.mubr.msk.f32.vlgmr.msra.gmra.mxu0 %vm478_vm0, %v3056_v3 }
 0x664   : > { %2853 = vmatprep.mubr.msk.f32.mxu0 %vm2950_vm1, %v2949_v1  ;;  %2852 = vmatpush3.xpose.msk.msra.mxu0 %vm478_vm0, %v2660_v26 }
 0x665   : > { %2861 = vmatprep.subr.mxu0 %v2949_v1 }
 0x667   : > { %2854 = vmatmul.mubr.msk.f32.vlgmr.msra.gmra.mxu0 %vm478_vm0, %v3060_v4 }
 0x668   : > { %2863 = vmatprep.mubr.msk.f32.mxu0 %vm2950_vm1, %v2949_v1 }
 0x66e   : > { %v3221_v13 = vpop.f32.mrf.mxu1 }
 0x670   : > { %v2840_v14 = vpop.f32.mrf.mxu1 }
 0x672   : > { %v1641_v16 = vpop.f32.mrf.mxu1 }
 0x673   : > { %v1642_v17 = vadd.f32 %v2657_v15, %v1641_v16 }
 0x674   : > { %v2850_v18 = vpop.f32.mrf.mxu1 }
 0x675   : > { %2857 = vmatpush3.xpose.msk.msra.mxu1 %vm720_vm2, %v1642_v17  ;;  %v2696_v18 = vld [vmem:[%s3374_s9 + $0x68] sm:$0xff] }
 0x676   : > { %2866 = vmatprep.subr.mxu1 %v2949_v1 }
 0x71f   : > { %v3228_v20 = vpop.f32.mrf.mxu0 }
 0x720   : > { %v1476_v0 = vadd.f32 %v3221_v13, %v3228_v20  ;;  %v2698_v13 = vld [vmem:[%s3374_s9 + $0x78] sm:$0xff]  ;;  %v2695_v20 = vld [vmem:[%s3374_s9 + $0x60] sm:$0xff] }
 0x721   : > { %v2829_v21 = vpop.f32.mrf.mxu0 }
 0x723   : > { %v1558_v23 = vpop.f32.mrf.mxu0 }
 0x724   : > { %v1559_v24 = vadd.f32 %v2652_v22, %v1558_v23 }
 0x725   : > { %v2845_v25 = vpop.f32.mrf.mxu0 }
 0x726   : > { %2859 = vmatmul.mubr.msk.f32.vlgmr.msra.gmra.mxu1 %vm720_vm2, %v1559_v24 }
 0x727   : > { %2874 = vmatprep.mubr.msk.f32.mxu1 %vm2950_vm1, %v2949_v1  ;;  %v1724_v38 = vpop.f32.mrf.mxu0  ;;  %2867 = vmatpush3.xpose.msk.msra.mxu1 %vm720_vm2, %v2671_v41 }
 0x728   : > { %v1725_v39 = vadd.f32 %v2662_v37, %v1724_v38  ;;  %2868 = vmatprep.subr.mxu1 %v2949_v1 }
 0x729   : > { %v2855_v40 = vpop.f32.mrf.mxu0 }
 0x72a   : > { %2862 = vmatpush3.msra.mxu0 %v1725_v39 }
 0x72b   : > { %2877 = vmatprep.subr.mxu0 %v2949_v1  ;;  %2869 = vmatpush3.xpose.msk.msra.mxu1 %vm720_vm2, %v2670_v42  ;;  %v2706_v42 = vld [vmem:[%s3377_s12] ss:$0 sm:$0xff] }
 0x72c   : > { %2870 = vmatprep.subr.mxu1 %v2949_v1 }
 0x72f   : > { %2871 = vmatpush3.xpose.msk.msra.mxu1 %vm720_vm2, %v2669_v43 }
 0x730   : > { %2872 = vmatprep.subr.mxu1 %v2949_v1 }
 0x733   : > { %2873 = vmatpush3.xpose.msk.msra.mxu1 %vm720_vm2, %v2668_v44 }
 0x734   : > { %2897 = vmatprep.subr.mxu1 %v2949_v1 }
 0x7e6   : > { %v1800_v27 = vpop.f32.mrf.mxu1 }
 0x7e7   : > { %v1804_v28 = vmul.f32 0.35355338, %v1800_v27 }
 0x7e8   : > { %v2860_v29 = vpop.f32.mrf.mxu1 }
 0x7e9   : > { %v1805_v30 = vadd.f32 %v3098_v19, %v1804_v28 }
 0x7eb   : > { %v1806_v31 = vsel %vm720_vm2, %v1805_v30, -inf }
 0x7ec   : > { %1807 = vmax.xlane.f32.xlu0 %v1806_v31 }
 0x875   : > { %v1808_v32 = vpop.xlane.xlu0 %1807 }
 0x876   : > { %v1809_v33 = vsub.f32 %v1805_v30, %v1808_v32 }
 0x878   : > { %v1810_v34 = vmul.f32 1.442695, %v1809_v33 }
 0x87a   : > { %2931 = vpow2.f32 %v1810_v34 }
 0x887   : > { %v2932_v35 = vpop.eup %2931 }
 0x888   : > { %v1812_v36 = vsel %vm720_vm2, %v2932_v35, 0.0 }
 0x889   : > { %1813 = vadd.xlane.f32.xlu1 %v1812_v36 }
 0x912   : > { %v1814_v45 = vpop.xlane.xlu1 %1813 }
 0x913   : > { %2933 = vrcp.f32 %v1814_v45 }
 0x920   : > { %v2934_v46 = vpop.eup %2933 }
 0x921   : > { %v1816_v47 = vmul.f32 %v2934_v46, %v2932_v35 }
 0x923   : > { %2864 = vmatmul.mubr.msk.f32.vlgmr.msra.gmra.mxu0 %vm720_vm2, %v1816_v47 }
 0x924   : > { %2878 = vmatpush3.xpose.msk.msra.mxu0 %vm478_vm0, %v2677_v48  ;;  %2879 = vmatprep.mubr.msk.f32.mxu0 %vm2950_vm1, %v2949_v1 }
 0x925   : > { %2882 = vmatprep.subr.mxu0 %v2949_v1 }
 0x927   : > { %2880 = vmatmul.mubr.msk.f32.vlgmr.msra.gmra.mxu0 %vm478_vm0, %v3056_v3 }
 0x928   : > { %2883 = vmatpush3.xpose.msk.msra.mxu0 %vm478_vm0, %v2682_v49  ;;  %2884 = vmatprep.mubr.msk.f32.mxu0 %vm2950_vm1, %v2949_v1 }
 0x929   : > { %2887 = vmatprep.subr.mxu0 %v2949_v1 }
 0x92b   : > { %2885 = vmatmul.mubr.msk.f32.vlgmr.msra.gmra.mxu0 %vm478_vm0, %v3060_v4 }
 0x92c   : > { %2889 = vmatprep.mubr.msk.f32.mxu0 %vm2950_vm1, %v2949_v1  ;;  %2888 = vmatpush3.xpose.msk.msra.mxu0 %vm478_vm0, %v2687_v50 }
 0x92d   : > { %2892 = vmatprep.subr.mxu0 %v2949_v1 }
 0x92f   : > { %2890 = vmatmul.mubr.msk.f32.vlgmr.msra.gmra.mxu0 %vm478_vm0, %v3060_v4  ;;  %v2679_v4 = vld [vmem:[%s3369_s4 + $0x3] ss:$0 sm:$0xff] }
 0x930   : > { %2894 = vmatprep.mubr.msk.f32.mxu0 %vm2950_vm1, %v2949_v1 }
 0x9e3   : > { %v1886_v51 = vpop.f32.mrf.mxu0 }
 0x9e4   : > { %2875 = vmatmul.mubr.msk.f32.vlgmr.msra.gmra.mxu1 %vm720_vm2, %v1886_v51 }
 0x9e5   : > { %v2865_v52 = vpop.f32.mrf.mxu0  ;;  %2899 = vmatprep.mubr.msk.f32.mxu1 %vm2950_vm1, %v2949_v1 }
 0x9e7   : > { %v2060_v53 = vpop.f32.mrf.mxu0 }
 0x9e8   : > { %v2061_v59 = vadd.f32 %v2679_v4, %v2060_v53 }
 0x9e9   : > { %v2881_v54 = vpop.f32.mrf.mxu0 }
 0x9eb   : > { %v2143_v56 = vpop.f32.mrf.mxu0 }
 0x9ec   : > { %v2144_v57 = vadd.f32 %v2684_v55, %v2143_v56 }
 0x9ed   : > { %v2886_v58 = vpop.f32.mrf.mxu0 }
 0x9ee   : > { %2893 = vmatpush3.xpose.msk.msra.mxu0 %vm720_vm2, %v2144_v57 }
 0x9ef   : > { %2902 = vmatprep.subr.mxu0 %v2949_v1  ;;  %v2226_v61 = vpop.f32.mrf.mxu0 }
 0x9f0   : > { %v2227_v62 = vadd.f32 %v2689_v60, %v2226_v61 }
 0x9f1   : > { %2895 = vmatmul.mubr.msk.f32.vlgmr.msra.gmra.mxu0 %vm720_vm2, %v2061_v59  ;;  %v2891_v63 = vpop.f32.mrf.mxu0 }
 0x9f2   : > { %2910 = vmatprep.mubr.msk.f32.mxu0 %vm2950_vm1, %v2949_v1  ;;  %2898 = vmatpush3.msra.mxu1 %v2227_v62 }
 0x9f3   : > { %2903 = vmatpush3.xpose.msk.msra.mxu0 %vm720_vm2, %v2698_v13 }
 0x9f4   : > { %2904 = vmatprep.subr.mxu0 %v2949_v1 }
 0xaa4   : > { %v1976_v2 = vpop.f32.mrf.mxu1 }
 0xaa5   : > { %v1980_v5 = vadd.f32 %v1976_v2, %v1476_v0 }
 0xaa6   : > { %v2876_v6 = vpop.f32.mrf.mxu1 }
 0xab1   : > { %v2302_v7 = vpop.f32.mrf.mxu0 }
 0xab2   : > { %v2306_v8 = vmul.f32 0.35355338, %v2302_v7 }
 0xab3   : > { %v2896_v9 = vpop.f32.mrf.mxu0 }
 0xab4   : > { %v2307_v10 = vadd.f32 %v3098_v19, %v2306_v8  ;;  %v2697_v19 = vld [vmem:[%s3374_s9 + $0x70] sm:$0xff] }
 0xab5   : > { %2905 = vmatpush3.xpose.msk.msra.mxu0 %vm720_vm2, %v2697_v19 }
 0xab6   : > { %v2308_v11 = vsel %vm720_vm2, %v2307_v10, -inf  ;;  %2906 = vmatprep.subr.mxu0 %v2949_v1 }
 0xab7   : > { %2309 = vmax.xlane.f32.xlu0 %v2308_v11 }
 0xab9   : > { %2907 = vmatpush3.xpose.msk.msra.mxu0 %vm720_vm2, %v2696_v18 }
 0xaba   : > { %2908 = vmatprep.subr.mxu0 %v2949_v1  ;;  %v2704_v1 = vld [vmem:[%s3375_s10] ss:$0 sm:$0xff] }
 0xabd   : > { %2909 = vmatpush3.xpose.msk.msra.mxu0 %vm720_vm2, %v2695_v20 }
 0xb40   : > { %v2310_v12 = vpop.xlane.xlu0 %2309 }
 0xb41   : > { %v2311_v14 = vsub.f32 %v2307_v10, %v2310_v12 }
 0xb43   : > { %v2312_v15 = vmul.f32 1.442695, %v2311_v14 }
 0xb45   : > { %2935 = vpow2.f32 %v2312_v15 }
 0xb52   : > { %v2936_v16 = vpop.eup %2935 }
 0xb53   : > { %v2314_v17 = vsel %vm720_vm2, %v2936_v16, 0.0 }
 0xb54   : > { %2315 = vadd.xlane.f32.xlu1 %v2314_v17 }
 0xbdd   : > { %v2316_v21 = vpop.xlane.xlu1 %2315 }
 0xbde   : > { %2937 = vrcp.f32 %v2316_v21 }
 0xbeb   : > { %v2938_v22 = vpop.eup %2937 }
 0xbec   : > { %v2318_v23 = vmul.f32 %v2938_v22, %v2936_v16 }
 0xbee   : > { %2900 = vmatmul.mubr.msk.f32.vlgmr.msra.gmra.mxu1 %vm720_vm2, %v2318_v23 }
 0xcae   : > { %v2388_v24 = vpop.f32.mrf.mxu1 }
 0xcaf   : > { %2911 = vmatmul.mubr.msk.f32.vlgmr.msra.gmra.mxu0 %vm720_vm2, %v2388_v24 }
 0xcb0   : > { %v2901_v25 = vpop.f32.mrf.mxu1 }
 0xd6f   : > { %v2478_v26 = vpop.f32.mrf.mxu0 }
 0xd70   : > { %v2482_v27 = vadd.f32 %v2478_v26, %v1980_v5 }
 0xd71   : > { %v2912_v28 = vpop.f32.mrf.mxu0 }
 0xd72   : > { %v2490_v29 = vadd.f32 %v2704_v1, %v2482_v27 }
 0xd74   : > { %v2491_v30 = vadd.f32 %v2490_v29, %v3056_v3  ;;  %v2705_v3 = vld [vmem:[%s3376_s11] ss:$0 sm:$0xff] }
 0xd76   : > { %v2492_v31 = vsel %vm478_vm0, %v2491_v30, 0.0 }
 0xd77   : > { %2493 = vadd.xlane.f32.xlu0 %v2492_v31 }
 0xe00   : > { %v2494_v32 = vpop.xlane.xlu0 %2493 }
 0xe01   : > { %v2496_v33 = vmul.f32 0.03125, %v2494_v32 }
 0xe03   : > { %v2497_v34 = vsub.f32 %v2491_v30, %v2496_v33 }
 0xe05   : > { %v2498_v35 = vmul.f32 %v2497_v34, %v2497_v34 }
 0xe07   : > { %v2499_v36 = vsel %vm478_vm0, %v2498_v35, 0.0 }
 0xe08   : > { %2500 = vadd.xlane.f32.xlu1 %v2499_v36 }
 0xe91   : > { %v2501_v37 = vpop.xlane.xlu1 %2500 }
 0xe92   : > { %v2502_v38 = vmul.f32 0.03125, %v2501_v37 }
 0xe94   : > { %v2503_v39 = vadd.f32 1e-05, %v2502_v38 }
 0xe96   : > { %2939 = vrsqrt.f32 %v2503_v39 }
 0xea3   : > { %v2940_v40 = vpop.eup %2939 }
 0xea4   : > { %v2505_v41 = vmul.f32 %v2940_v40, %v2497_v34 }
 0xea6   : > { %v2513_v43 = vmul.f32 %v2705_v3, %v2505_v41 }
 0xea8   : > { %v2521_v44 = vadd.f32 %v2706_v42, %v2513_v43 }
 0xeaa   : > { %2522 = vst.msk [vmem:[%s466_s26] sm:$0xff] %vm478_vm0, %v2521_v44 }
 0xeab PF: > { %s23_s25 = sadd.s32 1, %s2947_s25  }
 0xeac   : > { %p20_p4 = scmp.ge.s32.totalorder %s23_s25, 4  }
 0xeae   :  { %22 = sbr.rel (!%p20_p4) target bundleno = 1 (0x1), region = 129 }

// kernel: text_decoder_forward.7
= control target key start
LH: loop header
LB: loop body
LE: loop exit
PB: predicated region body
PF: predicated region fallthrough
CT: control target
= control target key end

     0   :  { %s2898_s17 = smov 0   ;;  %s3233_s0 = inlined_call_operand.vmem [shape: f32[2,8,32], index: 0, kind: input, shape index: {}]   ;;  %s3234_s1 = inlined_call_operand.vmem [shape: f32[4,8,32], index: 1, kind: input, shape index: {}]   ;;  %s3235_s2 = inlined_call_operand.vmem [shape: f32[4,1,8], index: 2, kind: input, shape index: {}]   ;;  %s3236_s3 = inlined_call_operand.vmem [shape: f32[4,8,32], index: 3, kind: input, shape index: {}]   ;;  %s3237_s4 = inlined_call_operand.vmem [shape: f32[4,1,8], index: 4, kind: input, shape index: {}]   ;;  %s3238_s5 = inlined_call_operand.vmem [shape: f32[4,8,32], index: 5, kind: input, shape index: {}]   ;;  %s3239_s6 = inlined_call_operand.vmem [shape: f32[4,1,8], index: 6, kind: input, shape index: {}]   ;;  %s3240_s7 = inlined_call_operand.vmem [shape: f32[4,32,8], index: 7, kind: input, shape index: {}]   ;;  %s3241_s8 = inlined_call_operand.vmem [shape: f32[1,32], index: 8, kind: input, shape index: {}]   ;;  %s3242_s9 = inlined_call_operand.vmem [shape: f32[1,32], index: 9, kind: input, shape index: {}]   ;;  %s3243_s10 = inlined_call_operand.vmem [shape: f32[1,32], index: 10, kind: input, shape index: {}]   ;;  %s3244_s11 = inlined_call_operand.vmem [shape: f32[2,8,32], index: 11, kind: output, shape index: {}]  }
   0x1 LB: > { %s2486_s18 = sadd.s32 4294967295, %s2834_s17   ;;  %p2490_p0 = scmp.ge.s32.totalorder %s2834_s17, 1  ;;  %s2834_s17 = sphi %s2898_s17, %s21_s17  }
   0x2   : > { %p336_p1 = scmp.lt.s32.totalorder %s2834_s17, 3 }
   0x4   : > { %p337_p2 = pnand %p2490_p0, %p336_p1 }
   0x5   : > { %p374_p3 = scmp.lt.s32.totalorder (!%p337_p2), %s2486_s18, 1 }
   0x6   : > { %340 = sbr.rel (%p337_p2) target bundleno = 3755 (0xeab), region = 64 }
   0xb   : > { %v389_v0 = vld [vmem:[%s3234_s1] sm:$0xff]  ;;  %vm397_vm0 = vcmask 261120   ;;  %v2836_v1 = vmov 0.0   ;;  %vm2837_vm1 = vmmov 0   ;;  %s3246_s18 = smov (!%p374_p3, %s2486_s18), 1  ;;  %vm636_vm2 = vcmask 64512  }
   0xc   : > { %2656 = vmatprep.subr.mxu1 %v2836_v1  ;;  %2658 = vmatprep.mubr.msk.f32.mxu1 %vm2837_vm1, %v2836_v1  ;;  %s2491_s21 = sshll.u32 %s3246_s18, 3  ;;  %v474_v2 = vld [vmem:[%s3236_s3] sm:$0xff]  ;;  %v383_v17 = vlaneseq  ;;  %v2505_v31 = vld [vmem:[%s3234_s1 + $0x8] sm:$0xff]  ;;  %v2526_v61 = vld [vmem:[%s3240_s7 + $0x38] sm:$0xff] }
   0xd   : > { %2657 = vmatpush3.xpose.msk.msra.mxu1 %vm397_vm0, %v389_v0  ;;  %2676 = vmatprep.subr.mxu0 %v2836_v1  ;;  %s377_s24 = scalar_lea.vmem %s3233_s0, %s2491_s21  ;;  %v555_v4 = vld [vmem:[%s3238_s5] sm:$0xff]  ;;  %v2510_v35 = vld [vmem:[%s3236_s3 + $0x8] sm:$0xff]  ;;  %v2525_v62 = vld [vmem:[%s3240_s7 + $0x30] sm:$0xff]  ;;  %s381_s12 = scalar_lea.vmem %s3244_s11, %s2491_s21 }
   0xe   : > { %2661 = vmatprep.subr.mxu1 %v2836_v1  ;;  %2678 = vmatprep.mubr.msk.f32.mxu0 %vm2837_vm1, %v2836_v1  ;;  %v2928_v3 = vld [vmem:[%s377_s24] sm:$0xff]  ;;  %v384_v18 = vshrl.u32 %v383_v17, 7  ;;  %v386_v19 = vand.u32 127, %v383_v17  ;;  %v2515_v46 = vld [vmem:[%s3238_s5 + $0x8] sm:$0xff] }
   0xf   : > { %v2496_v7 = vld [vmem:[%s3237_s4] ss:$0 sm:$0xff]  ;;  %v2512_v40 = vld [vmem:[%s3237_s4 + $0x1] ss:$0 sm:$0xff]  ;;  %v2524_v63 = vld [vmem:[%s3240_s7 + $0x28] sm:$0xff] }
  0x10   : > { %2659 = vmatmul.mubr.msk.f32.vlgmr.msra.gmra.mxu1 %vm397_vm0, %v2928_v3  ;;  %v2493_v9 = vld [vmem:[%s3235_s2] ss:$0 sm:$0xff]  ;;  %vm387_vm3 = vcmp.gt.s32.totalorder %v386_v19, %v384_v18  ;;  %v2507_v41 = vld [vmem:[%s3235_s2 + $0x1] ss:$0 sm:$0xff] }
  0x11   : > { %2662 = vmatpush3.xpose.msk.msra.mxu1 %vm397_vm0, %v474_v2  ;;  %2663 = vmatprep.mubr.msk.f32.mxu1 %vm2837_vm1, %v2836_v1  ;;  %v2499_v13 = vld [vmem:[%s3239_s6] ss:$0 sm:$0xff]  ;;  %v2965_v21 = vsel %vm387_vm3, -1e+30, %v2836_v1  ;;  %v2517_v57 = vld [vmem:[%s3239_s6 + $0x1] ss:$0 sm:$0xff] }
  0x12   : > { %2666 = vmatprep.subr.mxu1 %v2836_v1  ;;  %v2523_v0 = vld [vmem:[%s3240_s7 + $0x20] sm:$0xff] }
  0x14   : > { %2664 = vmatmul.mubr.msk.f32.vlgmr.msra.gmra.mxu1 %vm397_vm0, %v2928_v3 }
  0x15   : > { %2668 = vmatprep.mubr.msk.f32.mxu1 %vm2837_vm1, %v2836_v1  ;;  %2667 = vmatpush3.xpose.msk.msra.mxu1 %vm397_vm0, %v555_v4 }
  0x16   : > { %2671 = vmatprep.subr.mxu1 %v2836_v1 }
  0x18   : > { %2669 = vmatmul.mubr.msk.f32.vlgmr.msra.gmra.mxu1 %vm397_vm0, %v2928_v3 }
  0x19   : > { %2673 = vmatprep.mubr.msk.f32.mxu1 %vm2837_vm1, %v2836_v1 }
  0xd0   : > { %v470_v5 = vpop.f32.mrf.mxu1 }
  0xd1   : > { %v471_v12 = vadd.f32 %v2493_v9, %v470_v5  ;;  %v799_v9 = vld [vmem:[%s3240_s7] sm:$0xff] }
  0xd2   : > { %v2660_v6 = vpop.f32.mrf.mxu1 }
  0xd3   : > { %v802_v6 = vld [vmem:[%s3240_s7 + $0x18] sm:$0xff] }
  0xd4   : > { %v551_v8 = vpop.f32.mrf.mxu1 }
  0xd5   : > { %v552_v10 = vadd.f32 %v2496_v7, %v551_v8  ;;  %v801_v7 = vld [vmem:[%s3240_s7 + $0x10] sm:$0xff]  ;;  %v800_v8 = vld [vmem:[%s3240_s7 + $0x8] sm:$0xff] }
  0xd6   : > { %v2665_v11 = vpop.f32.mrf.mxu1 }
  0xd7   : > { %2672 = vmatpush3.xpose.msk.msra.mxu1 %vm636_vm2, %v552_v10  ;;  %v2542_v10 = vld [vmem:[%s3236_s3 + $0x10] sm:$0xff] }
  0xd8   : > { %2681 = vmatprep.subr.mxu1 %v2836_v1  ;;  %v632_v14 = vpop.f32.mrf.mxu1  ;;  %v2537_v11 = vld [vmem:[%s3234_s1 + $0x10] sm:$0xff] }
  0xd9   : > { %v633_v15 = vadd.f32 %v2499_v13, %v632_v14 }
  0xda   : > { %2674 = vmatmul.mubr.msk.f32.vlgmr.msra.gmra.mxu1 %vm636_vm2, %v471_v12  ;;  %v2670_v16 = vpop.f32.mrf.mxu1 }
  0xdb   : > { %2683 = vmatprep.mubr.msk.f32.mxu1 %vm2837_vm1, %v2836_v1  ;;  %2677 = vmatpush3.msra.mxu0 %v633_v15  ;;  %v2544_v16 = vld [vmem:[%s3237_s4 + $0x2] ss:$0 sm:$0xff] }
  0xdc   : > { %2686 = vmatprep.subr.mxu0 %v2836_v1  ;;  %2682 = vmatpush3.xpose.msk.msra.mxu1 %vm397_vm0, %v2505_v31 }
  0xdd   : > { %2691 = vmatprep.subr.mxu1 %v2836_v1 }
  0xdf   : > { %2684 = vmatmul.mubr.msk.f32.vlgmr.msra.gmra.mxu1 %vm397_vm0, %v2928_v3 }
  0xe0   : > { %2693 = vmatprep.mubr.msk.f32.mxu1 %vm2837_vm1, %v2836_v1  ;;  %2692 = vmatpush3.xpose.msk.msra.mxu1 %vm397_vm0, %v2515_v46 }
  0xe1   : > { %2701 = vmatprep.subr.mxu1 %v2836_v1 }
  0xe3   : > { %2694 = vmatmul.mubr.msk.f32.vlgmr.msra.gmra.mxu1 %vm397_vm0, %v2928_v3 }
  0xe4   : > { %2703 = vmatprep.mubr.msk.f32.mxu1 %vm2837_vm1, %v2836_v1 }
 0x19a   : > { %v709_v20 = vpop.f32.mrf.mxu1 }
 0x19b   : > { %v713_v22 = vmul.f32 0.35355338, %v709_v20 }
 0x19c   : > { %v2675_v23 = vpop.f32.mrf.mxu1 }
 0x19d   : > { %v714_v24 = vadd.f32 %v713_v22, %v2965_v21  ;;  %v2539_v23 = vld [vmem:[%s3235_s2 + $0x2] ss:$0 sm:$0xff] }
 0x19f   : > { %v715_v25 = vsel %vm636_vm2, %v714_v24, -inf  ;;  %v882_v36 = vpop.f32.mrf.mxu1 }
 0x1a0   : > { %716 = vmax.xlane.f32.xlu0 %v715_v25  ;;  %v883_v44 = vadd.f32 %v2507_v41, %v882_v36 }
 0x1a1   : > { %v2685_v37 = vpop.f32.mrf.mxu1 }
 0x1a3   : > { %v1048_v58 = vpop.f32.mrf.mxu1 }
 0x1a4   : > { %v1049_v59 = vadd.f32 %v2517_v57, %v1048_v58  ;;  %v2566_v58 = vld [vmem:[%s3235_s2 + $0x3] ss:$0 sm:$0xff] }
 0x1a5   : > { %v2695_v60 = vpop.f32.mrf.mxu1 }
 0x1a6   : > { %2702 = vmatpush3.msra.mxu1 %v1049_v59 }
 0x1a7   : > { %2717 = vmatprep.subr.mxu1 %v2836_v1 }
 0x229   : > { %v717_v26 = vpop.xlane.xlu0 %716 }
 0x22a   : > { %v718_v27 = vsub.f32 %v714_v24, %v717_v26 }
 0x22c   : > { %v719_v28 = vmul.f32 1.442695, %v718_v27  ;;  %v2547_v27 = vld [vmem:[%s3238_s5 + $0x10] sm:$0xff] }
 0x22e   : > { %2810 = vpow2.f32 %v719_v28 }
 0x23b   : > { %v2811_v29 = vpop.eup %2810 }
 0x23c   : > { %v721_v30 = vsel %vm636_vm2, %v2811_v29, 0.0 }
 0x23d   : > { %722 = vadd.xlane.f32.xlu0 %v721_v30 }
 0x2c6   : > { %v723_v32 = vpop.xlane.xlu0 %722 }
 0x2c7   : > { %2812 = vrcp.f32 %v723_v32 }
 0x2d4   : > { %v2813_v33 = vpop.eup %2812 }
 0x2d5   : > { %v725_v34 = vmul.f32 %v2813_v33, %v2811_v29 }
 0x2d7   : > { %2679 = vmatmul.mubr.msk.f32.vlgmr.msra.gmra.mxu0 %vm636_vm2, %v725_v34 }
 0x2d8   : > { %2687 = vmatpush3.xpose.msk.msra.mxu0 %vm397_vm0, %v2510_v35  ;;  %2688 = vmatprep.mubr.msk.f32.mxu0 %vm2837_vm1, %v2836_v1 }
 0x2d9   : > { %2696 = vmatprep.subr.mxu0 %v2836_v1 }
 0x2db   : > { %2689 = vmatmul.mubr.msk.f32.vlgmr.msra.gmra.mxu0 %vm397_vm0, %v2928_v3 }
 0x2dc   : > { %2698 = vmatprep.mubr.msk.f32.mxu0 %vm2837_vm1, %v2836_v1 }
 0x397   : > { %v2991_v38 = vpop.f32.mrf.mxu0 }
 0x399   : > { %v2680_v39 = vpop.f32.mrf.mxu0 }
 0x39b   : > { %v965_v42 = vpop.f32.mrf.mxu0 }
 0x39c   : > { %v966_v43 = vadd.f32 %v2512_v40, %v965_v42  ;;  %v2558_v42 = vld [vmem:[%s3240_s7 + $0x58] sm:$0xff] }
 0x39d   : > { %v2690_v45 = vpop.f32.mrf.mxu0 }
 0x39e   : > { %2697 = vmatpush3.xpose.msk.msra.mxu0 %vm636_vm2, %v966_v43  ;;  %v2557_v43 = vld [vmem:[%s3240_s7 + $0x50] sm:$0xff]  ;;  %v2555_v45 = vld [vmem:[%s3240_s7 + $0x40] sm:$0xff] }
 0x39f   : > { %2706 = vmatprep.subr.mxu0 %v2836_v1 }
 0x3a1   : > { %2699 = vmatmul.mubr.msk.f32.vlgmr.msra.gmra.mxu0 %vm636_vm2, %v883_v44  ;;  %v2556_v44 = vld [vmem:[%s3240_s7 + $0x48] sm:$0xff] }
 0x3a2   : > { %2714 = vmatprep.mubr.msk.f32.mxu0 %vm2837_vm1, %v2836_v1  ;;  %2707 = vmatpush3.xpose.msk.msra.mxu0 %vm636_vm2, %v2526_v61 }
 0x3a3   : > { %2708 = vmatprep.subr.mxu0 %v2836_v1 }
 0x3a6   : > { %2709 = vmatpush3.xpose.msk.msra.mxu0 %vm636_vm2, %v2525_v62  ;;  %v2576_v62 = vld [vmem:[%s3239_s6 + $0x3] ss:$0 sm:$0xff] }
 0x3a7   : > { %2710 = vmatprep.subr.mxu0 %v2836_v1 }
 0x3aa   : > { %2711 = vmatpush3.xpose.msk.msra.mxu0 %vm636_vm2, %v2524_v63 }
 0x3ab   : > { %2712 = vmatprep.subr.mxu0 %v2836_v1 }
 0x3ae   : > { %2713 = vmatpush3.xpose.msk.msra.mxu0 %vm636_vm2, %v2523_v0 }
 0x3af   : > { %2728 = vmatprep.subr.mxu0 %v2836_v1 }
 0x461   : > { %v1124_v47 = vpop.f32.mrf.mxu0 }
 0x462   : > { %v1128_v48 = vmul.f32 0.35355338, %v1124_v47 }
 0x463   : > { %v2700_v49 = vpop.f32.mrf.mxu0 }
 0x464   : > { %v1129_v50 = vadd.f32 %v1128_v48, %v2965_v21  ;;  %v2564_v49 = vld [vmem:[%s3234_s1 + $0x18] sm:$0xff] }
 0x466   : > { %v1130_v51 = vsel %vm636_vm2, %v1129_v50, -inf }
 0x467   : > { %1131 = vmax.xlane.f32.xlu1 %v1130_v51  ;;  %v2574_v51 = vld [vmem:[%s3238_s5 + $0x18] sm:$0xff] }
 0x4f0   : > { %v1132_v52 = vpop.xlane.xlu1 %1131 }
 0x4f1   : > { %v1133_v53 = vsub.f32 %v1129_v50, %v1132_v52  ;;  %v2569_v50 = vld [vmem:[%s3236_s3 + $0x18] sm:$0xff] }
 0x4f3   : > { %v1134_v54 = vmul.f32 1.442695, %v1133_v53 }
 0x4f5   : > { %2814 = vpow2.f32 %v1134_v54 }
 0x502   : > { %v2815_v55 = vpop.eup %2814 }
 0x503   : > { %v1136_v56 = vsel %vm636_vm2, %v2815_v55, 0.0 }
 0x504   : > { %1137 = vadd.xlane.f32.xlu1 %v1136_v56  ;;  %v2571_v56 = vld [vmem:[%s3237_s4 + $0x3] ss:$0 sm:$0xff] }
 0x58d   : > { %v1138_v2 = vpop.xlane.xlu1 %1137 }
 0x58e   : > { %2816 = vrcp.f32 %v1138_v2 }
 0x59b   : > { %v2817_v4 = vpop.eup %2816 }
 0x59c   : > { %v1140_v5 = vmul.f32 %v2817_v4, %v2815_v55 }
 0x59e   : > { %2704 = vmatmul.mubr.msk.f32.vlgmr.msra.gmra.mxu1 %vm636_vm2, %v1140_v5 }
 0x59f   : > { %2718 = vmatpush3.xpose.msk.msra.mxu1 %vm636_vm2, %v802_v6  ;;  %2725 = vmatprep.mubr.msk.f32.mxu1 %vm2837_vm1, %v2836_v1 }
 0x5a0   : > { %2719 = vmatprep.subr.mxu1 %v2836_v1 }
 0x5a3   : > { %2720 = vmatpush3.xpose.msk.msra.mxu1 %vm636_vm2, %v801_v7 }
 0x5a4   : > { %2721 = vmatprep.subr.mxu1 %v2836_v1 }
 0x5a7   : > { %2722 = vmatpush3.xpose.msk.msra.mxu1 %vm636_vm2, %v800_v8 }
 0x5a8   : > { %2723 = vmatprep.subr.mxu1 %v2836_v1 }
 0x5ab   : > { %2724 = vmatpush3.xpose.msk.msra.mxu1 %vm636_vm2, %v799_v9 }
 0x5ac   : > { %2733 = vmatprep.subr.mxu1 %v2836_v1 }
 0x5ae   : > { %2726 = vmatmul.mubr.msk.f32.vlgmr.msra.gmra.mxu1 %vm636_vm2, %v2991_v38  ;;  %v2549_v38 = vld [vmem:[%s3239_s6 + $0x2] ss:$0 sm:$0xff] }
 0x5af   : > { %2734 = vmatpush3.xpose.msk.msra.mxu1 %vm397_vm0, %v2542_v10  ;;  %2735 = vmatprep.mubr.msk.f32.mxu1 %vm2837_vm1, %v2836_v1 }
 0x5b0   : > { %2743 = vmatprep.subr.mxu1 %v2836_v1 }
 0x5b2   : > { %2736 = vmatmul.mubr.msk.f32.vlgmr.msra.gmra.mxu1 %vm397_vm0, %v2928_v3 }
 0x5b3   : > { %2745 = vmatprep.mubr.msk.f32.mxu1 %vm2837_vm1, %v2836_v1 }
 0x65e   : > { %v1210_v12 = vpop.f32.mrf.mxu1 }
 0x65f   : > { %2715 = vmatmul.mubr.msk.f32.vlgmr.msra.gmra.mxu0 %vm636_vm2, %v1210_v12 }
 0x660   : > { %v2705_v13 = vpop.f32.mrf.mxu1  ;;  %2729 = vmatpush3.xpose.msk.msra.mxu0 %vm397_vm0, %v2537_v11  ;;  %2730 = vmatprep.mubr.msk.f32.mxu0 %vm2837_vm1, %v2836_v1 }
 0x661   : > { %2738 = vmatprep.subr.mxu0 %v2836_v1 }
 0x663   : > { %2731 = vmatmul.mubr.msk.f32.vlgmr.msra.gmra.mxu0 %vm397_vm0, %v2928_v3 }
 0x664   : > { %2740 = vmatprep.mubr.msk.f32.mxu0 %vm2837_vm1, %v2836_v1  ;;  %2739 = vmatpush3.xpose.msk.msra.mxu0 %vm397_vm0, %v2547_v27 }
 0x665   : > { %2748 = vmatprep.subr.mxu0 %v2836_v1 }
 0x667   : > { %2741 = vmatmul.mubr.msk.f32.vlgmr.msra.gmra.mxu0 %vm397_vm0, %v2928_v3 }
 0x668   : > { %2750 = vmatprep.mubr.msk.f32.mxu0 %vm2837_vm1, %v2836_v1 }
 0x66e   : > { %v3088_v14 = vpop.f32.mrf.mxu1 }
 0x670   : > { %v2727_v15 = vpop.f32.mrf.mxu1 }
 0x672   : > { %v1551_v17 = vpop.f32.mrf.mxu1 }
 0x673   : > { %v1552_v18 = vadd.f32 %v2544_v16, %v1551_v17 }
 0x674   : > { %v2737_v19 = vpop.f32.mrf.mxu1 }
 0x675   : > { %2744 = vmatpush3.xpose.msk.msra.mxu1 %vm636_vm2, %v1552_v18  ;;  %v2583_v19 = vld [vmem:[%s3240_s7 + $0x68] sm:$0xff] }
 0x676   : > { %2753 = vmatprep.subr.mxu1 %v2836_v1 }
 0x71f   : > { %v3095_v20 = vpop.f32.mrf.mxu0 }
 0x720   : > { %v1386_v4 = vadd.f32 %v3088_v14, %v3095_v20  ;;  %v2585_v14 = vld [vmem:[%s3240_s7 + $0x78] sm:$0xff]  ;;  %v2582_v20 = vld [vmem:[%s3240_s7 + $0x60] sm:$0xff] }
 0x721   : > { %v2716_v22 = vpop.f32.mrf.mxu0 }
 0x723   : > { %v1468_v24 = vpop.f32.mrf.mxu0 }
 0x724   : > { %v1469_v25 = vadd.f32 %v2539_v23, %v1468_v24 }
 0x725   : > { %v2732_v26 = vpop.f32.mrf.mxu0 }
 0x726   : > { %2746 = vmatmul.mubr.msk.f32.vlgmr.msra.gmra.mxu1 %vm636_vm2, %v1469_v25 }
 0x727   : > { %2761 = vmatprep.mubr.msk.f32.mxu1 %vm2837_vm1, %v2836_v1  ;;  %v1634_v39 = vpop.f32.mrf.mxu0  ;;  %2754 = vmatpush3.xpose.msk.msra.mxu1 %vm636_vm2, %v2558_v42 }
 0x728   : > { %v1635_v40 = vadd.f32 %v2549_v38, %v1634_v39  ;;  %2755 = vmatprep.subr.mxu1 %v2836_v1 }
 0x729   : > { %v2742_v41 = vpop.f32.mrf.mxu0 }
 0x72a   : > { %2749 = vmatpush3.msra.mxu0 %v1635_v40 }
 0x72b   : > { %2764 = vmatprep.subr.mxu0 %v2836_v1  ;;  %2756 = vmatpush3.xpose.msk.msra.mxu1 %vm636_vm2, %v2557_v43  ;;  %v2593_v43 = vld [vmem:[%s3243_s10] ss:$0 sm:$0xff] }
 0x72c   : > { %2757 = vmatprep.subr.mxu1 %v2836_v1 }
 0x72f   : > { %2758 = vmatpush3.xpose.msk.msra.mxu1 %vm636_vm2, %v2556_v44 }
 0x730   : > { %2759 = vmatprep.subr.mxu1 %v2836_v1 }
 0x733   : > { %2760 = vmatpush3.xpose.msk.msra.mxu1 %vm636_vm2, %v2555_v45 }
 0x734   : > { %2784 = vmatprep.subr.mxu1 %v2836_v1 }
 0x7e6   : > { %v1710_v28 = vpop.f32.mrf.mxu1 }
 0x7e7   : > { %v1714_v29 = vmul.f32 0.35355338, %v1710_v28 }
 0x7e8   : > { %v2747_v30 = vpop.f32.mrf.mxu1 }
 0x7e9   : > { %v1715_v31 = vadd.f32 %v1714_v29, %v2965_v21 }
 0x7eb   : > { %v1716_v32 = vsel %vm636_vm2, %v1715_v31, -inf }
 0x7ec   : > { %1717 = vmax.xlane.f32.xlu0 %v1716_v32 }
 0x875   : > { %v1718_v33 = vpop.xlane.xlu0 %1717 }
 0x876   : > { %v1719_v34 = vsub.f32 %v1715_v31, %v1718_v33 }
 0x878   : > { %v1720_v35 = vmul.f32 1.442695, %v1719_v34 }
 0x87a   : > { %2818 = vpow2.f32 %v1720_v35 }
 0x887   : > { %v2819_v36 = vpop.eup %2818 }
 0x888   : > { %v1722_v37 = vsel %vm636_vm2, %v2819_v36, 0.0 }
 0x889   : > { %1723 = vadd.xlane.f32.xlu1 %v1722_v37 }
 0x912   : > { %v1724_v46 = vpop.xlane.xlu1 %1723 }
 0x913   : > { %2820 = vrcp.f32 %v1724_v46 }
 0x920   : > { %v2821_v47 = vpop.eup %2820 }
 0x921   : > { %v1726_v48 = vmul.f32 %v2821_v47, %v2819_v36 }
 0x923   : > { %2751 = vmatmul.mubr.msk.f32.vlgmr.msra.gmra.mxu0 %vm636_vm2, %v1726_v48 }
 0x924   : > { %2765 = vmatpush3.xpose.msk.msra.mxu0 %vm397_vm0, %v2564_v49  ;;  %2766 = vmatprep.mubr.msk.f32.mxu0 %vm2837_vm1, %v2836_v1 }
 0x925   : > { %2769 = vmatprep.subr.mxu0 %v2836_v1 }
 0x927   : > { %2767 = vmatmul.mubr.msk.f32.vlgmr.msra.gmra.mxu0 %vm397_vm0, %v2928_v3 }
 0x928   : > { %2770 = vmatpush3.xpose.msk.msra.mxu0 %vm397_vm0, %v2569_v50  ;;  %2771 = vmatprep.mubr.msk.f32.mxu0 %vm2837_vm1, %v2836_v1 }
 0x929   : > { %2774 = vmatprep.subr.mxu0 %v2836_v1 }
 0x92b   : > { %2772 = vmatmul.mubr.msk.f32.vlgmr.msra.gmra.mxu0 %vm397_vm0, %v2928_v3 }
 0x92c   : > { %2776 = vmatprep.mubr.msk.f32.mxu0 %vm2837_vm1, %v2836_v1  ;;  %2775 = vmatpush3.xpose.msk.msra.mxu0 %vm397_vm0, %v2574_v51 }
 0x92d   : > { %2779 = vmatprep.subr.mxu0 %v2836_v1 }
 0x92f   : > { %2777 = vmatmul.mubr.msk.f32.vlgmr.msra.gmra.mxu0 %vm397_vm0, %v2928_v3 }
 0x930   : > { %2781 = vmatprep.mubr.msk.f32.mxu0 %vm2837_vm1, %v2836_v1 }
 0x9e3   : > { %v1796_v52 = vpop.f32.mrf.mxu0 }
 0x9e4   : > { %2762 = vmatmul.mubr.msk.f32.vlgmr.msra.gmra.mxu1 %vm636_vm2, %v1796_v52 }
 0x9e5   : > { %v2752_v53 = vpop.f32.mrf.mxu0  ;;  %2786 = vmatprep.mubr.msk.f32.mxu1 %vm2837_vm1, %v2836_v1 }
 0x9e7   : > { %v1970_v54 = vpop.f32.mrf.mxu0 }
 0x9e8   : > { %v1971_v61 = vadd.f32 %v2566_v58, %v1970_v54 }
 0x9e9   : > { %v2768_v55 = vpop.f32.mrf.mxu0 }
 0x9eb   : > { %v2053_v57 = vpop.f32.mrf.mxu0 }
 0x9ec   : > { %v2054_v59 = vadd.f32 %v2571_v56, %v2053_v57 }
 0x9ed   : > { %v2773_v60 = vpop.f32.mrf.mxu0 }
 0x9ee   : > { %2780 = vmatpush3.xpose.msk.msra.mxu0 %vm636_vm2, %v2054_v59 }
 0x9ef   : > { %2789 = vmatprep.subr.mxu0 %v2836_v1  ;;  %v2136_v63 = vpop.f32.mrf.mxu0 }
 0x9f0   : > { %v2137_v0 = vadd.f32 %v2576_v62, %v2136_v63 }
 0x9f1   : > { %2782 = vmatmul.mubr.msk.f32.vlgmr.msra.gmra.mxu0 %vm636_vm2, %v1971_v61  ;;  %v2778_v2 = vpop.f32.mrf.mxu0 }
 0x9f2   : > { %2797 = vmatprep.mubr.msk.f32.mxu0 %vm2837_vm1, %v2836_v1  ;;  %2785 = vmatpush3.msra.mxu1 %v2137_v0 }
 0x9f3   : > { %2790 = vmatpush3.xpose.msk.msra.mxu0 %vm636_vm2, %v2585_v14 }
 0x9f4   : > { %2791 = vmatprep.subr.mxu0 %v2836_v1 }
 0xaa4   : > { %v1886_v5 = vpop.f32.mrf.mxu1 }
 0xaa5   : > { %v1890_v6 = vadd.f32 %v1886_v5, %v1386_v4 }
 0xaa6   : > { %v2763_v7 = vpop.f32.mrf.mxu1 }
 0xab1   : > { %v2212_v8 = vpop.f32.mrf.mxu0 }
 0xab2   : > { %v2216_v9 = vmul.f32 0.35355338, %v2212_v8 }
 0xab3   : > { %v2783_v10 = vpop.f32.mrf.mxu0 }
 0xab4   : > { %v2217_v11 = vadd.f32 %v2216_v9, %v2965_v21  ;;  %v2584_v21 = vld [vmem:[%s3240_s7 + $0x70] sm:$0xff] }
 0xab5   : > { %2792 = vmatpush3.xpose.msk.msra.mxu0 %vm636_vm2, %v2584_v21 }
 0xab6   : > { %v2218_v12 = vsel %vm636_vm2, %v2217_v11, -inf  ;;  %2793 = vmatprep.subr.mxu0 %v2836_v1 }
 0xab7   : > { %2219 = vmax.xlane.f32.xlu0 %v2218_v12 }
 0xab9   : > { %2794 = vmatpush3.xpose.msk.msra.mxu0 %vm636_vm2, %v2583_v19 }
 0xaba   : > { %2795 = vmatprep.subr.mxu0 %v2836_v1  ;;  %v2591_v1 = vld [vmem:[%s3241_s8] ss:$0 sm:$0xff] }
 0xabd   : > { %2796 = vmatpush3.xpose.msk.msra.mxu0 %vm636_vm2, %v2582_v20 }
 0xb40   : > { %v2220_v13 = vpop.xlane.xlu0 %2219 }
 0xb41   : > { %v2221_v15 = vsub.f32 %v2217_v11, %v2220_v13 }
 0xb43   : > { %v2222_v16 = vmul.f32 1.442695, %v2221_v15 }
 0xb45   : > { %2822 = vpow2.f32 %v2222_v16 }
 0xb52   : > { %v2823_v17 = vpop.eup %2822 }
 0xb53   : > { %v2224_v18 = vsel %vm636_vm2, %v2823_v17, 0.0 }
 0xb54   : > { %2225 = vadd.xlane.f32.xlu1 %v2224_v18 }
 0xbdd   : > { %v2226_v22 = vpop.xlane.xlu1 %2225 }
 0xbde   : > { %2824 = vrcp.f32 %v2226_v22 }
 0xbeb   : > { %v2825_v23 = vpop.eup %2824 }
 0xbec   : > { %v2228_v24 = vmul.f32 %v2825_v23, %v2823_v17 }
 0xbee   : > { %2787 = vmatmul.mubr.msk.f32.vlgmr.msra.gmra.mxu1 %vm636_vm2, %v2228_v24 }
 0xcae   : > { %v2298_v25 = vpop.f32.mrf.mxu1 }
 0xcaf   : > { %2798 = vmatmul.mubr.msk.f32.vlgmr.msra.gmra.mxu0 %vm636_vm2, %v2298_v25 }
 0xcb0   : > { %v2788_v26 = vpop.f32.mrf.mxu1 }
 0xd6f   : > { %v2388_v27 = vpop.f32.mrf.mxu0 }
 0xd70   : > { %v2392_v28 = vadd.f32 %v2388_v27, %v1890_v6 }
 0xd71   : > { %v2799_v29 = vpop.f32.mrf.mxu0 }
 0xd72   : > { %v2400_v30 = vadd.f32 %v2591_v1, %v2392_v28 }
 0xd74   : > { %v2401_v31 = vadd.f32 %v2400_v30, %v2928_v3  ;;  %v2592_v3 = vld [vmem:[%s3242_s9] ss:$0 sm:$0xff] }
 0xd76   : > { %v2402_v32 = vsel %vm397_vm0, %v2401_v31, 0.0 }
 0xd77   : > { %2403 = vadd.xlane.f32.xlu0 %v2402_v32 }
 0xe00   : > { %v2404_v33 = vpop.xlane.xlu0 %2403 }
 0xe01   : > { %v2406_v34 = vmul.f32 0.03125, %v2404_v33 }
 0xe03   : > { %v2407_v35 = vsub.f32 %v2401_v31, %v2406_v34 }
 0xe05   : > { %v2408_v36 = vmul.f32 %v2407_v35, %v2407_v35 }
 0xe07   : > { %v2409_v37 = vsel %vm397_vm0, %v2408_v36, 0.0 }
 0xe08   : > { %2410 = vadd.xlane.f32.xlu1 %v2409_v37 }
 0xe91   : > { %v2411_v38 = vpop.xlane.xlu1 %2410 }
 0xe92   : > { %v2412_v39 = vmul.f32 0.03125, %v2411_v38 }
 0xe94   : > { %v2413_v40 = vadd.f32 1e-05, %v2412_v39 }
 0xe96   : > { %2826 = vrsqrt.f32 %v2413_v40 }
 0xea3   : > { %v2827_v41 = vpop.eup %2826 }
 0xea4   : > { %v2415_v42 = vmul.f32 %v2827_v41, %v2407_v35 }
 0xea6   : > { %v2423_v44 = vmul.f32 %v2592_v3, %v2415_v42 }
 0xea8   : > { %v2431_v45 = vadd.f32 %v2593_v43, %v2423_v44 }
 0xeaa   : > { %2432 = vst.msk [vmem:[%s381_s12] sm:$0xff] %vm397_vm0, %v2431_v45 }
 0xeab PF: > { %s21_s17 = sadd.s32 1, %s2834_s17  }
 0xeac   : > { %p18_p4 = scmp.ge.s32.totalorder %s21_s17, 4  }
 0xeae   :  { %20 = sbr.rel (!%p18_p4) target bundleno = 1 (0x1), region = 115 }

</bundles_post_ra>
